<compile_context>
chip_gen: v6e
topology: v6e:2x2x1
jax: 0.10.0
libtpu: 0.0.40
codegen_flags: <defaults>
</compile_context>

<pallas_src>
import functools

import jax
import jax.numpy as jnp
from jax.experimental import pallas as pl
from jax.experimental.pallas import tpu as pltpu

_VMEM_LIMIT = 64 * 1024 * 1024  # <= physical VMEM on v5e/v6e/v7x


def _round_up(x, m):
    return (x + m - 1) // m * m


# ----------------------------------------------------------------------------
# Pallas kernels
# ----------------------------------------------------------------------------
def _matmul_bias_act_kernel(p_ref, w_ref, b_ref, o_ref, *, negative_slope):
    """out = leaky_relu(P @ W + b) for one M-tile (conv-as-matmul, f32 accum)."""
    acc = jnp.dot(p_ref[...], w_ref[...], preferred_element_type=jnp.float32)
    acc = acc + b_ref[...]
    if negative_slope is not None:
        acc = jnp.where(acc >= 0, acc, negative_slope * acc)
    o_ref[...] = acc.astype(o_ref.dtype)


def _instance_norm_kernel(x_ref, o_ref, *, eps):
    """Per-(n, c) normalization over the spatial axis; block = (1, H*W, C_blk)."""
    x = x_ref[...].astype(jnp.float32)
    mean = jnp.mean(x, axis=1, keepdims=True)
    d = x - mean
    var = jnp.mean(d * d, axis=1, keepdims=True)      # biased var (PyTorch)
    o_ref[...] = (d * jax.lax.rsqrt(var + eps)).astype(o_ref.dtype)


# ----------------------------------------------------------------------------
# Wrappers
# ----------------------------------------------------------------------------
def _choose_tile_m(M, K, c_out, max_tile=1024, budget_bytes=24 * 1024 * 1024):
    """Largest M-tile that keeps the double-buffered working set in budget."""
    per_row = 2 * (K + c_out) * 2            # 2x bf16 patch row + 2x bf16 out row
    fixed = 2 * (K * c_out + c_out) * 2      # double-buffered bf16 weight + bias
    avail = max(budget_bytes - fixed, per_row * 128)
    cap = min(max_tile, avail // per_row)
    if M <= cap:
        return M, M                          # single/whole-dim tiles, no padding
    t = (cap // 128) * 128
    while t > 128 and M % t != 0:
        t -= 128
    if M % t == 0:
        return t, M
    return t, _round_up(M, t)


def fused_matmul_bias_act(patches, w_mat, bias, *, negative_slope,
                          out_dtype=jnp.bfloat16):
    M, K = patches.shape
    Kw, c_out = w_mat.shape
    assert K == Kw and bias.shape[0] == c_out
    tile_m, m_pad = _choose_tile_m(M, K, c_out)
    if m_pad != M:
        patches = jnp.pad(patches, ((0, m_pad - M), (0, 0)))
    bias2d = bias.reshape(1, c_out).astype(jnp.float32)

    out = pl.pallas_call(
        functools.partial(_matmul_bias_act_kernel, negative_slope=negative_slope),
        out_shape=jax.ShapeDtypeStruct((m_pad, c_out), out_dtype),
        grid_spec=pltpu.PrefetchScalarGridSpec(
            num_scalar_prefetch=0,
            grid=(m_pad // tile_m,),
            in_specs=[
                pl.BlockSpec((tile_m, K), lambda i: (i, 0)),
                pl.BlockSpec((K, c_out), lambda i: (0, 0)),
                pl.BlockSpec((1, c_out), lambda i: (0, 0)),
            ],
            out_specs=pl.BlockSpec((tile_m, c_out), lambda i: (i, 0)),
        ),
        compiler_params=pltpu.CompilerParams(
            dimension_semantics=("parallel",),
            vmem_limit_bytes=_VMEM_LIMIT,
        ),
    )(patches, w_mat, bias2d)
    if m_pad != M:
        out = out[:M]
    return out


def instance_norm_nhwc(x, eps=1e-5):
    """InstanceNorm2d (affine=False) on an NHWC tensor, tiled over (N, C-blocks)."""
    n, h, w, c = x.shape
    hw = h * w
    x2 = x.reshape(n, hw, c)
    if c % 128 == 0:
        c_blk = min(c, 256)
        while c % c_blk:
            c_blk -= 128
    else:
        c_blk = c                                        # full (small) channel dim
    out = pl.pallas_call(
        functools.partial(_instance_norm_kernel, eps=eps),
        out_shape=jax.ShapeDtypeStruct(x2.shape, x2.dtype),
        grid_spec=pltpu.PrefetchScalarGridSpec(
            num_scalar_prefetch=0,
            grid=(n, c // c_blk),
            in_specs=[pl.BlockSpec((1, hw, c_blk), lambda i, j: (i, 0, j))],
            out_specs=pl.BlockSpec((1, hw, c_blk), lambda i, j: (i, 0, j)),
        ),
        compiler_params=pltpu.CompilerParams(
            dimension_semantics=("parallel", "parallel"),
            vmem_limit_bytes=_VMEM_LIMIT,
        ),
    )(x2)
    return out.reshape(n, h, w, c)


def _im2col_nhwc(x, kh, kw, stride, pad_h, pad_w):
    """NHWC -> (N*H_out*W_out, kh*kw*C) patch matrix (tap-major, C contiguous)."""
    n, h, w, c = x.shape
    x_p = jnp.pad(x, ((0, 0), pad_h, pad_w, (0, 0)))
    hp = h + pad_h[0] + pad_h[1]
    wp = w + pad_w[0] + pad_w[1]
    h_out = (hp - kh) // stride + 1
    w_out = (wp - kw) // stride + 1
    cols = []
    for i in range(kh):
        for j in range(kw):
            cols.append(
                x_p[:, i:i + stride * h_out:stride, j:j + stride * w_out:stride, :]
            )
    patches = jnp.stack(cols, axis=3)                    # (n, ho, wo, kh*kw, c)
    return patches.reshape(n * h_out * w_out, kh * kw * c), h_out, w_out


def conv2d_nhwc(x, w, b, *, stride, pad_h, pad_w, negative_slope=None):
    """x: NHWC bf16 (channels possibly zero-padded); w/b: PyTorch-layout f32.

    Returns NHWC bf16 with C_out zero-padded to a multiple of 128 (lane-dense),
    plus the true (unpadded) C_out.
    """
    n, _, _, c_in_pad = x.shape
    c_out, c_in, kh, kw = w.shape
    assert c_in_pad >= c_in
    # Weight -> (kh, kw, c_in, c_out), zero-pad input channels to match x,
    # flatten to (K, C_out), zero-pad C_out to a multiple of 128.
    w_t = jnp.transpose(w, (2, 3, 1, 0))
    if c_in_pad != c_in:
        w_t = jnp.pad(w_t, ((0, 0), (0, 0), (0, c_in_pad - c_in), (0, 0)))
    w_mat = w_t.reshape(kh * kw * c_in_pad, c_out)
    c_out_pad = _round_up(c_out, 128)
    bias = b
    if c_out_pad != c_out:
        w_mat = jnp.pad(w_mat, ((0, 0), (0, c_out_pad - c_out)))
        bias = jnp.pad(b, (0, c_out_pad - c_out))
    w_mat = w_mat.astype(jnp.bfloat16)

    patches, h_out, w_out = _im2col_nhwc(x, kh, kw, stride, pad_h, pad_w)
    out = fused_matmul_bias_act(patches, w_mat, bias,
                                negative_slope=negative_slope)
    return out.reshape(n, h_out, w_out, c_out_pad), c_out


# ----------------------------------------------------------------------------
# Discriminator
# ----------------------------------------------------------------------------
def init_params(key, channels, df):
    def conv_init(k, c_out, c_in, ksz):
        k1, k2 = jax.random.split(k)
        fan_in = c_in * ksz * ksz
        bound = 1.0 / jnp.sqrt(jnp.float32(fan_in))
        w = jax.random.uniform(k1, (c_out, c_in, ksz, ksz), jnp.float32, -bound, bound)
        b = jax.random.uniform(k2, (c_out,), jnp.float32, -bound, bound)
        return w, b

    keys = jax.random.split(key, 5)
    p = {}
    p["w1"], p["b1"] = conv_init(keys[0], df, channels, 4)
    p["w2"], p["b2"] = conv_init(keys[1], df * 2, df, 4)
    p["w3"], p["b3"] = conv_init(keys[2], df * 4, df * 2, 4)
    p["w4"], p["b4"] = conv_init(keys[3], df * 8, df * 4, 4)
    p["w5"], p["b5"] = conv_init(keys[4], 1, df * 8, 4)
    return p


@jax.jit
def discriminator_forward(params, img):
    slope = 0.2
    s2 = dict(stride=2, pad_h=(1, 1), pad_w=(1, 1))
    # NCHW -> NHWC once at the boundary; internal activations are bf16 NHWC.
    x = jnp.transpose(img, (0, 2, 3, 1)).astype(jnp.bfloat16)
    # block 1: conv(s=2,p=1) + LeakyReLU(0.2), no normalization
    x, _ = conv2d_nhwc(x, params["w1"], params["b1"], negative_slope=slope, **s2)
    # block 2: conv + LeakyReLU + InstanceNorm2d   (PyTorch order: norm AFTER act)
    x, _ = conv2d_nhwc(x, params["w2"], params["b2"], negative_slope=slope, **s2)
    x = instance_norm_nhwc(x)
    # block 3
    x, _ = conv2d_nhwc(x, params["w3"], params["b3"], negative_slope=slope, **s2)
    x = instance_norm_nhwc(x)
    # block 4
    x, _ = conv2d_nhwc(x, params["w4"], params["b4"], negative_slope=slope, **s2)
    x = instance_norm_nhwc(x)
    # final: Conv2d(df*8, 1, kernel=4, stride=1, padding='same')
    #   PyTorch 'same' with even kernel pads asymmetrically: (1 before, 2 after).
    x, c_out = conv2d_nhwc(x, params["w5"], params["b5"], stride=1,
                           pad_h=(1, 2), pad_w=(1, 2), negative_slope=None)
    x = x[..., :c_out]                                   # drop lane padding (-> 1 ch)
    return jnp.transpose(x, (0, 3, 1, 2)).astype(jnp.float32)   # back to NCHW f32


if __name__ == "__main__":
    channels, df = 3, 8            # small df for the synthetic test (module default 64)
    N, H, W = 2, 32, 32            # small spatial size; module was written for 256x256

    key = jax.random.PRNGKey(0)
    k_param, k_img = jax.random.split(key)
    params = init_params(k_param, channels, df)
    img = jax.random.normal(k_img, (N, channels, H, W), jnp.float32)

    out = discriminator_forward(params, img)
    out = jax.block_until_ready(out)

    expected = (N, 1, H // 2 ** 4, W // 2 ** 4)
    assert out.shape == expected, (out.shape, expected)
    assert jnp.all(jnp.isfinite(out))
    print("KERNEL_OK")
</pallas_src>

<mosaic_0001>
module attributes {stable_mosaic.version = 11 : i64} {
  func.func @_matmul_bias_act_kernel(%arg0: i32, %arg1: memref<512x48xbf16, #tpu.memory_space<vmem>>, %arg2: memref<48x128xbf16, #tpu.memory_space<vmem>>, %arg3: memref<1x128xf32, #tpu.memory_space<vmem>>, %arg4: memref<512x128xbf16, #tpu.memory_space<vmem>>) attributes {dimension_semantics = [#tpu.dimension_semantics<parallel>], iteration_bounds = array<i64: 1>, scalar_prefetch = 0 : i64, scratch_operands = 0 : i64, tpu.core_type = #tpu.core_type<tc>, window_params = [{transform_indices = @transform_0, window_bounds = array<i64: 512, 48>}, {pipeline_mode = #tpu.pipeline_mode<synchronous>, transform_indices = @transform_1, window_bounds = array<i64: 48, 128>}, {pipeline_mode = #tpu.pipeline_mode<synchronous>, transform_indices = @transform_2, window_bounds = array<i64: 1, 128>}, {transform_indices = @transform_3, window_bounds = array<i64: 512, 128>}]} {
    %c0 = arith.constant 0 : index
    %c0_0 = arith.constant 0 : index
    %0 = vector.load %arg1[%c0, %c0_0] : memref<512x48xbf16, #tpu.memory_space<vmem>>, vector<512x48xbf16>
    %c0_1 = arith.constant 0 : index
    %c0_2 = arith.constant 0 : index
    %1 = vector.load %arg2[%c0_1, %c0_2] : memref<48x128xbf16, #tpu.memory_space<vmem>>, vector<48x128xbf16>
    %cst = arith.constant dense<0.000000e+00> : vector<512x128xf32>
    %2 = tpu.matmul %0, %1, %cst {dimension_numbers = #tpu.dot_dimension_numbers<[1], [0], [0], [1], [0, 0, 1, 1], [], []>} : vector<512x48xbf16>, vector<48x128xbf16>, vector<512x128xf32> -> vector<512x128xf32>
    %c0_3 = arith.constant 0 : index
    %c0_4 = arith.constant 0 : index
    %3 = vector.load %arg3[%c0_3, %c0_4] : memref<1x128xf32, #tpu.memory_space<vmem>>, vector<1x128xf32>
    %4 = vector.broadcast %3 : vector<1x128xf32> to vector<512x128xf32>
    %5 = arith.addf %2, %4 : vector<512x128xf32>
    %cst_5 = arith.constant 0.000000e+00 : f32
    %6 = vector.broadcast %cst_5 : f32 to vector<512x128xf32>
    %7 = arith.cmpf oge, %5, %6 : vector<512x128xf32>
    %cst_6 = arith.constant 2.000000e-01 : f32
    %8 = vector.broadcast %cst_6 : f32 to vector<512x128xf32>
    %9 = arith.mulf %8, %5 : vector<512x128xf32>
    %10 = arith.select %7, %5, %9 : vector<512x128xi1>, vector<512x128xf32>
    %11 = arith.truncf %10 : vector<512x128xf32> to vector<512x128xbf16>
    %c0_7 = arith.constant 0 : index
    %c0_8 = arith.constant 0 : index
    %12 = vector.load %arg4[%c0_7, %c0_8] : memref<512x128xbf16, #tpu.memory_space<vmem>>, vector<512x128xbf16>
    tpu.vector_store %arg4[%c0_7, %c0_8], %11 {strides = array<i32>} : memref<512x128xbf16, #tpu.memory_space<vmem>>, vector<512x128xbf16>,
    return
  }
  func.func @transform_0(%arg0: i32) -> (i32, i32) {
    %c0_i32 = arith.constant 0 : i32
    %c0_i32_0 = arith.constant 0 : i32
    return %arg0, %c0_i32 : i32, i32
  }
  func.func @transform_1(%arg0: i32) -> (i32, i32) {
    %c0_i32 = arith.constant 0 : i32
    %c0_i32_0 = arith.constant 0 : i32
    %c0_i32_1 = arith.constant 0 : i32
    return %c0_i32, %c0_i32_0 : i32, i32
  }
  func.func @transform_2(%arg0: i32) -> (i32, i32) {
    %c0_i32 = arith.constant 0 : i32
    %c0_i32_0 = arith.constant 0 : i32
    %c0_i32_1 = arith.constant 0 : i32
    return %c0_i32, %c0_i32_0 : i32, i32
  }
  func.func @transform_3(%arg0: i32) -> (i32, i32) {
    %c0_i32 = arith.constant 0 : i32
    %c0_i32_0 = arith.constant 0 : i32
    return %arg0, %c0_i32 : i32, i32
  }
}

module attributes {stable_mosaic.version = 11 : i64} {
  func.func @_instance_norm_kernel(%arg0: i32, %arg1: i32, %arg2: memref<1x64x128xbf16, #tpu.memory_space<vmem>>, %arg3: memref<1x64x128xbf16, #tpu.memory_space<vmem>>) attributes {dimension_semantics = [#tpu.dimension_semantics<parallel>, #tpu.dimension_semantics<parallel>], iteration_bounds = array<i64: 2, 1>, scalar_prefetch = 0 : i64, scratch_operands = 0 : i64, tpu.core_type = #tpu.core_type<tc>, window_params = [{transform_indices = @transform_0, window_bounds = array<i64: 1, 64, 128>}, {transform_indices = @transform_1, window_bounds = array<i64: 1, 64, 128>}]} {
    %c0 = arith.constant 0 : index
    %c0_0 = arith.constant 0 : index
    %c0_1 = arith.constant 0 : index
    %0 = vector.load %arg2[%c0, %c0_0, %c0_1] : memref<1x64x128xbf16, #tpu.memory_space<vmem>>, vector<1x64x128xbf16>
    %1 = arith.extf %0 : vector<1x64x128xbf16> to vector<1x64x128xf32>
    %cst = arith.constant dense<0.000000e+00> : vector<1x128xf32>
    %2 = vector.multi_reduction <add>, %1, %cst [1] : vector<1x64x128xf32> to vector<1x128xf32>
    %3 = vector.shape_cast %2 : vector<1x128xf32> to vector<1x1x128xf32>
    %cst_2 = arith.constant 6.400000e+01 : f32
    %4 = vector.broadcast %cst_2 : f32 to vector<1x1x128xf32>
    %5 = arith.divf %3, %4 : vector<1x1x128xf32>
    %6 = vector.broadcast %5 : vector<1x1x128xf32> to vector<1x64x128xf32>
    %7 = arith.subf %1, %6 : vector<1x64x128xf32>
    %8 = arith.mulf %7, %7 : vector<1x64x128xf32>
    %cst_3 = arith.constant dense<0.000000e+00> : vector<1x128xf32>
    %9 = vector.multi_reduction <add>, %8, %cst_3 [1] : vector<1x64x128xf32> to vector<1x128xf32>
    %10 = vector.shape_cast %9 : vector<1x128xf32> to vector<1x1x128xf32>
    %cst_4 = arith.constant 6.400000e+01 : f32
    %11 = vector.broadcast %cst_4 : f32 to vector<1x1x128xf32>
    %12 = arith.divf %10, %11 : vector<1x1x128xf32>
    %cst_5 = arith.constant 9.99999974E-6 : f32
    %13 = vector.broadcast %cst_5 : f32 to vector<1x1x128xf32>
    %14 = arith.addf %12, %13 : vector<1x1x128xf32>
    %15 = math.rsqrt %14 : vector<1x1x128xf32>
    %16 = vector.broadcast %15 : vector<1x1x128xf32> to vector<1x64x128xf32>
    %17 = arith.mulf %7, %16 : vector<1x64x128xf32>
    %18 = arith.truncf %17 : vector<1x64x128xf32> to vector<1x64x128xbf16>
    %c0_6 = arith.constant 0 : index
    %c0_7 = arith.constant 0 : index
    %c0_8 = arith.constant 0 : index
    %19 = vector.load %arg3[%c0_6, %c0_7, %c0_8] : memref<1x64x128xbf16, #tpu.memory_space<vmem>>, vector<1x64x128xbf16>
    tpu.vector_store %arg3[%c0_6, %c0_7, %c0_8], %18 {strides = array<i32>} : memref<1x64x128xbf16, #tpu.memory_space<vmem>>, vector<1x64x128xbf16>,
    return
  }
  func.func @transform_0(%arg0: i32, %arg1: i32) -> (i32, i32, i32) {
    %c0_i32 = arith.constant 0 : i32
    %c0_i32_0 = arith.constant 0 : i32
    return %arg0, %c0_i32, %arg1 : i32, i32, i32
  }
  func.func @transform_1(%arg0: i32, %arg1: i32) -> (i32, i32, i32) {
    %c0_i32 = arith.constant 0 : i32
    %c0_i32_0 = arith.constant 0 : i32
    return %arg0, %c0_i32, %arg1 : i32, i32, i32
  }
}

module attributes {stable_mosaic.version = 11 : i64} {
  func.func @_matmul_bias_act_kernel(%arg0: i32, %arg1: memref<128x2048xbf16, #tpu.memory_space<vmem>>, %arg2: memref<2048x128xbf16, #tpu.memory_space<vmem>>, %arg3: memref<1x128xf32, #tpu.memory_space<vmem>>, %arg4: memref<128x128xbf16, #tpu.memory_space<vmem>>) attributes {dimension_semantics = [#tpu.dimension_semantics<parallel>], iteration_bounds = array<i64: 1>, scalar_prefetch = 0 : i64, scratch_operands = 0 : i64, tpu.core_type = #tpu.core_type<tc>, window_params = [{transform_indices = @transform_0, window_bounds = array<i64: 128, 2048>}, {pipeline_mode = #tpu.pipeline_mode<synchronous>, transform_indices = @transform_1, window_bounds = array<i64: 2048, 128>}, {pipeline_mode = #tpu.pipeline_mode<synchronous>, transform_indices = @transform_2, window_bounds = array<i64: 1, 128>}, {transform_indices = @transform_3, window_bounds = array<i64: 128, 128>}]} {
    %c0 = arith.constant 0 : index
    %c0_0 = arith.constant 0 : index
    %0 = vector.load %arg1[%c0, %c0_0] : memref<128x2048xbf16, #tpu.memory_space<vmem>>, vector<128x2048xbf16>
    %c0_1 = arith.constant 0 : index
    %c0_2 = arith.constant 0 : index
    %1 = vector.load %arg2[%c0_1, %c0_2] : memref<2048x128xbf16, #tpu.memory_space<vmem>>, vector<2048x128xbf16>
    %cst = arith.constant dense<0.000000e+00> : vector<128x128xf32>
    %2 = tpu.matmul %0, %1, %cst {dimension_numbers = #tpu.dot_dimension_numbers<[1], [0], [0], [1], [0, 0, 1, 1], [], []>} : vector<128x2048xbf16>, vector<2048x128xbf16>, vector<128x128xf32> -> vector<128x128xf32>
    %c0_3 = arith.constant 0 : index
    %c0_4 = arith.constant 0 : index
    %3 = vector.load %arg3[%c0_3, %c0_4] : memref<1x128xf32, #tpu.memory_space<vmem>>, vector<1x128xf32>
    %4 = vector.broadcast %3 : vector<1x128xf32> to vector<128x128xf32>
    %5 = arith.addf %2, %4 : vector<128x128xf32>
    %cst_5 = arith.constant 0.000000e+00 : f32
    %6 = vector.broadcast %cst_5 : f32 to vector<128x128xf32>
    %7 = arith.cmpf oge, %5, %6 : vector<128x128xf32>
    %cst_6 = arith.constant 2.000000e-01 : f32
    %8 = vector.broadcast %cst_6 : f32 to vector<128x128xf32>
    %9 = arith.mulf %8, %5 : vector<128x128xf32>
    %10 = arith.select %7, %5, %9 : vector<128x128xi1>, vector<128x128xf32>
    %11 = arith.truncf %10 : vector<128x128xf32> to vector<128x128xbf16>
    %c0_7 = arith.constant 0 : index
    %c0_8 = arith.constant 0 : index
    %12 = vector.load %arg4[%c0_7, %c0_8] : memref<128x128xbf16, #tpu.memory_space<vmem>>, vector<128x128xbf16>
    tpu.vector_store %arg4[%c0_7, %c0_8], %11 {strides = array<i32>} : memref<128x128xbf16, #tpu.memory_space<vmem>>, vector<128x128xbf16>,
    return
  }
  func.func @transform_0(%arg0: i32) -> (i32, i32) {
    %c0_i32 = arith.constant 0 : i32
    %c0_i32_0 = arith.constant 0 : i32
    return %arg0, %c0_i32 : i32, i32
  }
  func.func @transform_1(%arg0: i32) -> (i32, i32) {
    %c0_i32 = arith.constant 0 : i32
    %c0_i32_0 = arith.constant 0 : i32
    %c0_i32_1 = arith.constant 0 : i32
    return %c0_i32, %c0_i32_0 : i32, i32
  }
  func.func @transform_2(%arg0: i32) -> (i32, i32) {
    %c0_i32 = arith.constant 0 : i32
    %c0_i32_0 = arith.constant 0 : i32
    %c0_i32_1 = arith.constant 0 : i32
    return %c0_i32, %c0_i32_0 : i32, i32
  }
  func.func @transform_3(%arg0: i32) -> (i32, i32) {
    %c0_i32 = arith.constant 0 : i32
    %c0_i32_0 = arith.constant 0 : i32
    return %arg0, %c0_i32 : i32, i32
  }
}

module attributes {stable_mosaic.version = 11 : i64} {
  func.func @_matmul_bias_act_kernel(%arg0: i32, %arg1: memref<32x2048xbf16, #tpu.memory_space<vmem>>, %arg2: memref<2048x128xbf16, #tpu.memory_space<vmem>>, %arg3: memref<1x128xf32, #tpu.memory_space<vmem>>, %arg4: memref<32x128xbf16, #tpu.memory_space<vmem>>) attributes {dimension_semantics = [#tpu.dimension_semantics<parallel>], iteration_bounds = array<i64: 1>, scalar_prefetch = 0 : i64, scratch_operands = 0 : i64, tpu.core_type = #tpu.core_type<tc>, window_params = [{transform_indices = @transform_0, window_bounds = array<i64: 32, 2048>}, {pipeline_mode = #tpu.pipeline_mode<synchronous>, transform_indices = @transform_1, window_bounds = array<i64: 2048, 128>}, {pipeline_mode = #tpu.pipeline_mode<synchronous>, transform_indices = @transform_2, window_bounds = array<i64: 1, 128>}, {transform_indices = @transform_3, window_bounds = array<i64: 32, 128>}]} {
    %c0 = arith.constant 0 : index
    %c0_0 = arith.constant 0 : index
    %0 = vector.load %arg1[%c0, %c0_0] : memref<32x2048xbf16, #tpu.memory_space<vmem>>, vector<32x2048xbf16>
    %c0_1 = arith.constant 0 : index
    %c0_2 = arith.constant 0 : index
    %1 = vector.load %arg2[%c0_1, %c0_2] : memref<2048x128xbf16, #tpu.memory_space<vmem>>, vector<2048x128xbf16>
    %cst = arith.constant dense<0.000000e+00> : vector<32x128xf32>
    %2 = tpu.matmul %0, %1, %cst {dimension_numbers = #tpu.dot_dimension_numbers<[1], [0], [0], [1], [0, 0, 1, 1], [], []>} : vector<32x2048xbf16>, vector<2048x128xbf16>, vector<32x128xf32> -> vector<32x128xf32>
    %c0_3 = arith.constant 0 : index
    %c0_4 = arith.constant 0 : index
    %3 = vector.load %arg3[%c0_3, %c0_4] : memref<1x128xf32, #tpu.memory_space<vmem>>, vector<1x128xf32>
    %4 = vector.broadcast %3 : vector<1x128xf32> to vector<32x128xf32>
    %5 = arith.addf %2, %4 : vector<32x128xf32>
    %cst_5 = arith.constant 0.000000e+00 : f32
    %6 = vector.broadcast %cst_5 : f32 to vector<32x128xf32>
    %7 = arith.cmpf oge, %5, %6 : vector<32x128xf32>
    %cst_6 = arith.constant 2.000000e-01 : f32
    %8 = vector.broadcast %cst_6 : f32 to vector<32x128xf32>
    %9 = arith.mulf %8, %5 : vector<32x128xf32>
    %10 = arith.select %7, %5, %9 : vector<32x128xi1>, vector<32x128xf32>
    %11 = arith.truncf %10 : vector<32x128xf32> to vector<32x128xbf16>
    %c0_7 = arith.constant 0 : index
    %c0_8 = arith.constant 0 : index
    %12 = vector.load %arg4[%c0_7, %c0_8] : memref<32x128xbf16, #tpu.memory_space<vmem>>, vector<32x128xbf16>
    tpu.vector_store %arg4[%c0_7, %c0_8], %11 {strides = array<i32>} : memref<32x128xbf16, #tpu.memory_space<vmem>>, vector<32x128xbf16>,
    return
  }
  func.func @transform_0(%arg0: i32) -> (i32, i32) {
    %c0_i32 = arith.constant 0 : i32
    %c0_i32_0 = arith.constant 0 : i32
    return %arg0, %c0_i32 : i32, i32
  }
  func.func @transform_1(%arg0: i32) -> (i32, i32) {
    %c0_i32 = arith.constant 0 : i32
    %c0_i32_0 = arith.constant 0 : i32
    %c0_i32_1 = arith.constant 0 : i32
    return %c0_i32, %c0_i32_0 : i32, i32
  }
  func.func @transform_2(%arg0: i32) -> (i32, i32) {
    %c0_i32 = arith.constant 0 : i32
    %c0_i32_0 = arith.constant 0 : i32
    %c0_i32_1 = arith.constant 0 : i32
    return %c0_i32, %c0_i32_0 : i32, i32
  }
  func.func @transform_3(%arg0: i32) -> (i32, i32) {
    %c0_i32 = arith.constant 0 : i32
    %c0_i32_0 = arith.constant 0 : i32
    return %arg0, %c0_i32 : i32, i32
  }
}

module attributes {stable_mosaic.version = 11 : i64} {
  func.func @_instance_norm_kernel(%arg0: i32, %arg1: i32, %arg2: memref<1x16x128xbf16, #tpu.memory_space<vmem>>, %arg3: memref<1x16x128xbf16, #tpu.memory_space<vmem>>) attributes {dimension_semantics = [#tpu.dimension_semantics<parallel>, #tpu.dimension_semantics<parallel>], iteration_bounds = array<i64: 2, 1>, scalar_prefetch = 0 : i64, scratch_operands = 0 : i64, tpu.core_type = #tpu.core_type<tc>, window_params = [{transform_indices = @transform_0, window_bounds = array<i64: 1, 16, 128>}, {transform_indices = @transform_1, window_bounds = array<i64: 1, 16, 128>}]} {
    %c0 = arith.constant 0 : index
    %c0_0 = arith.constant 0 : index
    %c0_1 = arith.constant 0 : index
    %0 = vector.load %arg2[%c0, %c0_0, %c0_1] : memref<1x16x128xbf16, #tpu.memory_space<vmem>>, vector<1x16x128xbf16>
    %1 = arith.extf %0 : vector<1x16x128xbf16> to vector<1x16x128xf32>
    %cst = arith.constant dense<0.000000e+00> : vector<1x128xf32>
    %2 = vector.multi_reduction <add>, %1, %cst [1] : vector<1x16x128xf32> to vector<1x128xf32>
    %3 = vector.shape_cast %2 : vector<1x128xf32> to vector<1x1x128xf32>
    %cst_2 = arith.constant 1.600000e+01 : f32
    %4 = vector.broadcast %cst_2 : f32 to vector<1x1x128xf32>
    %5 = arith.divf %3, %4 : vector<1x1x128xf32>
    %6 = vector.broadcast %5 : vector<1x1x128xf32> to vector<1x16x128xf32>
    %7 = arith.subf %1, %6 : vector<1x16x128xf32>
    %8 = arith.mulf %7, %7 : vector<1x16x128xf32>
    %cst_3 = arith.constant dense<0.000000e+00> : vector<1x128xf32>
    %9 = vector.multi_reduction <add>, %8, %cst_3 [1] : vector<1x16x128xf32> to vector<1x128xf32>
    %10 = vector.shape_cast %9 : vector<1x128xf32> to vector<1x1x128xf32>
    %cst_4 = arith.constant 1.600000e+01 : f32
    %11 = vector.broadcast %cst_4 : f32 to vector<1x1x128xf32>
    %12 = arith.divf %10, %11 : vector<1x1x128xf32>
    %cst_5 = arith.constant 9.99999974E-6 : f32
    %13 = vector.broadcast %cst_5 : f32 to vector<1x1x128xf32>
    %14 = arith.addf %12, %13 : vector<1x1x128xf32>
    %15 = math.rsqrt %14 : vector<1x1x128xf32>
    %16 = vector.broadcast %15 : vector<1x1x128xf32> to vector<1x16x128xf32>
    %17 = arith.mulf %7, %16 : vector<1x16x128xf32>
    %18 = arith.truncf %17 : vector<1x16x128xf32> to vector<1x16x128xbf16>
    %c0_6 = arith.constant 0 : index
    %c0_7 = arith.constant 0 : index
    %c0_8 = arith.constant 0 : index
    %19 = vector.load %arg3[%c0_6, %c0_7, %c0_8] : memref<1x16x128xbf16, #tpu.memory_space<vmem>>, vector<1x16x128xbf16>
    tpu.vector_store %arg3[%c0_6, %c0_7, %c0_8], %18 {strides = array<i32>} : memref<1x16x128xbf16, #tpu.memory_space<vmem>>, vector<1x16x128xbf16>,
    return
  }
  func.func @transform_0(%arg0: i32, %arg1: i32) -> (i32, i32, i32) {
    %c0_i32 = arith.constant 0 : i32
    %c0_i32_0 = arith.constant 0 : i32
    return %arg0, %c0_i32, %arg1 : i32, i32, i32
  }
  func.func @transform_1(%arg0: i32, %arg1: i32) -> (i32, i32, i32) {
    %c0_i32 = arith.constant 0 : i32
    %c0_i32_0 = arith.constant 0 : i32
    return %arg0, %c0_i32, %arg1 : i32, i32, i32
  }
}

module attributes {stable_mosaic.version = 11 : i64} {
  func.func @_instance_norm_kernel(%arg0: i32, %arg1: i32, %arg2: memref<1x4x128xbf16, #tpu.memory_space<vmem>>, %arg3: memref<1x4x128xbf16, #tpu.memory_space<vmem>>) attributes {dimension_semantics = [#tpu.dimension_semantics<parallel>, #tpu.dimension_semantics<parallel>], iteration_bounds = array<i64: 2, 1>, scalar_prefetch = 0 : i64, scratch_operands = 0 : i64, tpu.core_type = #tpu.core_type<tc>, window_params = [{transform_indices = @transform_0, window_bounds = array<i64: 1, 4, 128>}, {transform_indices = @transform_1, window_bounds = array<i64: 1, 4, 128>}]} {
    %c0 = arith.constant 0 : index
    %c0_0 = arith.constant 0 : index
    %c0_1 = arith.constant 0 : index
    %0 = vector.load %arg2[%c0, %c0_0, %c0_1] : memref<1x4x128xbf16, #tpu.memory_space<vmem>>, vector<1x4x128xbf16>
    %1 = arith.extf %0 : vector<1x4x128xbf16> to vector<1x4x128xf32>
    %cst = arith.constant dense<0.000000e+00> : vector<1x128xf32>
    %2 = vector.multi_reduction <add>, %1, %cst [1] : vector<1x4x128xf32> to vector<1x128xf32>
    %3 = vector.shape_cast %2 : vector<1x128xf32> to vector<1x1x128xf32>
    %cst_2 = arith.constant 4.000000e+00 : f32
    %4 = vector.broadcast %cst_2 : f32 to vector<1x1x128xf32>
    %5 = arith.divf %3, %4 : vector<1x1x128xf32>
    %6 = vector.broadcast %5 : vector<1x1x128xf32> to vector<1x4x128xf32>
    %7 = arith.subf %1, %6 : vector<1x4x128xf32>
    %8 = arith.mulf %7, %7 : vector<1x4x128xf32>
    %cst_3 = arith.constant dense<0.000000e+00> : vector<1x128xf32>
    %9 = vector.multi_reduction <add>, %8, %cst_3 [1] : vector<1x4x128xf32> to vector<1x128xf32>
    %10 = vector.shape_cast %9 : vector<1x128xf32> to vector<1x1x128xf32>
    %cst_4 = arith.constant 4.000000e+00 : f32
    %11 = vector.broadcast %cst_4 : f32 to vector<1x1x128xf32>
    %12 = arith.divf %10, %11 : vector<1x1x128xf32>
    %cst_5 = arith.constant 9.99999974E-6 : f32
    %13 = vector.broadcast %cst_5 : f32 to vector<1x1x128xf32>
    %14 = arith.addf %12, %13 : vector<1x1x128xf32>
    %15 = math.rsqrt %14 : vector<1x1x128xf32>
    %16 = vector.broadcast %15 : vector<1x1x128xf32> to vector<1x4x128xf32>
    %17 = arith.mulf %7, %16 : vector<1x4x128xf32>
    %18 = arith.truncf %17 : vector<1x4x128xf32> to vector<1x4x128xbf16>
    %c0_6 = arith.constant 0 : index
    %c0_7 = arith.constant 0 : index
    %c0_8 = arith.constant 0 : index
    %19 = vector.load %arg3[%c0_6, %c0_7, %c0_8] : memref<1x4x128xbf16, #tpu.memory_space<vmem>>, vector<1x4x128xbf16>
    tpu.vector_store %arg3[%c0_6, %c0_7, %c0_8], %18 {strides = array<i32>} : memref<1x4x128xbf16, #tpu.memory_space<vmem>>, vector<1x4x128xbf16>,
    return
  }
  func.func @transform_0(%arg0: i32, %arg1: i32) -> (i32, i32, i32) {
    %c0_i32 = arith.constant 0 : i32
    %c0_i32_0 = arith.constant 0 : i32
    return %arg0, %c0_i32, %arg1 : i32, i32, i32
  }
  func.func @transform_1(%arg0: i32, %arg1: i32) -> (i32, i32, i32) {
    %c0_i32 = arith.constant 0 : i32
    %c0_i32_0 = arith.constant 0 : i32
    return %arg0, %c0_i32, %arg1 : i32, i32, i32
  }
}

module attributes {stable_mosaic.version = 11 : i64} {
  func.func @_matmul_bias_act_kernel(%arg0: i32, %arg1: memref<8x2048xbf16, #tpu.memory_space<vmem>>, %arg2: memref<2048x128xbf16, #tpu.memory_space<vmem>>, %arg3: memref<1x128xf32, #tpu.memory_space<vmem>>, %arg4: memref<8x128xbf16, #tpu.memory_space<vmem>>) attributes {dimension_semantics = [#tpu.dimension_semantics<parallel>], iteration_bounds = array<i64: 1>, scalar_prefetch = 0 : i64, scratch_operands = 0 : i64, tpu.core_type = #tpu.core_type<tc>, window_params = [{transform_indices = @transform_0, window_bounds = array<i64: 8, 2048>}, {pipeline_mode = #tpu.pipeline_mode<synchronous>, transform_indices = @transform_1, window_bounds = array<i64: 2048, 128>}, {pipeline_mode = #tpu.pipeline_mode<synchronous>, transform_indices = @transform_2, window_bounds = array<i64: 1, 128>}, {transform_indices = @transform_3, window_bounds = array<i64: 8, 128>}]} {
    %c0 = arith.constant 0 : index
    %c0_0 = arith.constant 0 : index
    %0 = vector.load %arg1[%c0, %c0_0] : memref<8x2048xbf16, #tpu.memory_space<vmem>>, vector<8x2048xbf16>
    %c0_1 = arith.constant 0 : index
    %c0_2 = arith.constant 0 : index
    %1 = vector.load %arg2[%c0_1, %c0_2] : memref<2048x128xbf16, #tpu.memory_space<vmem>>, vector<2048x128xbf16>
    %cst = arith.constant dense<0.000000e+00> : vector<8x128xf32>
    %2 = tpu.matmul %0, %1, %cst {dimension_numbers = #tpu.dot_dimension_numbers<[1], [0], [0], [1], [0, 0, 1, 1], [], []>} : vector<8x2048xbf16>, vector<2048x128xbf16>, vector<8x128xf32> -> vector<8x128xf32>
    %c0_3 = arith.constant 0 : index
    %c0_4 = arith.constant 0 : index
    %3 = vector.load %arg3[%c0_3, %c0_4] : memref<1x128xf32, #tpu.memory_space<vmem>>, vector<1x128xf32>
    %4 = vector.broadcast %3 : vector<1x128xf32> to vector<8x128xf32>
    %5 = arith.addf %2, %4 : vector<8x128xf32>
    %cst_5 = arith.constant 0.000000e+00 : f32
    %6 = vector.broadcast %cst_5 : f32 to vector<8x128xf32>
    %7 = arith.cmpf oge, %5, %6 : vector<8x128xf32>
    %cst_6 = arith.constant 2.000000e-01 : f32
    %8 = vector.broadcast %cst_6 : f32 to vector<8x128xf32>
    %9 = arith.mulf %8, %5 : vector<8x128xf32>
    %10 = arith.select %7, %5, %9 : vector<8x128xi1>, vector<8x128xf32>
    %11 = arith.truncf %10 : vector<8x128xf32> to vector<8x128xbf16>
    %c0_7 = arith.constant 0 : index
    %c0_8 = arith.constant 0 : index
    %12 = vector.load %arg4[%c0_7, %c0_8] : memref<8x128xbf16, #tpu.memory_space<vmem>>, vector<8x128xbf16>
    tpu.vector_store %arg4[%c0_7, %c0_8], %11 {strides = array<i32>} : memref<8x128xbf16, #tpu.memory_space<vmem>>, vector<8x128xbf16>,
    return
  }
  func.func @transform_0(%arg0: i32) -> (i32, i32) {
    %c0_i32 = arith.constant 0 : i32
    %c0_i32_0 = arith.constant 0 : i32
    return %arg0, %c0_i32 : i32, i32
  }
  func.func @transform_1(%arg0: i32) -> (i32, i32) {
    %c0_i32 = arith.constant 0 : i32
    %c0_i32_0 = arith.constant 0 : i32
    %c0_i32_1 = arith.constant 0 : i32
    return %c0_i32, %c0_i32_0 : i32, i32
  }
  func.func @transform_2(%arg0: i32) -> (i32, i32) {
    %c0_i32 = arith.constant 0 : i32
    %c0_i32_0 = arith.constant 0 : i32
    %c0_i32_1 = arith.constant 0 : i32
    return %c0_i32, %c0_i32_0 : i32, i32
  }
  func.func @transform_3(%arg0: i32) -> (i32, i32) {
    %c0_i32 = arith.constant 0 : i32
    %c0_i32_0 = arith.constant 0 : i32
    return %arg0, %c0_i32 : i32, i32
  }
}

module attributes {stable_mosaic.version = 11 : i64} {
  func.func @_matmul_bias_act_kernel(%arg0: i32, %arg1: memref<8x2048xbf16, #tpu.memory_space<vmem>>, %arg2: memref<2048x128xbf16, #tpu.memory_space<vmem>>, %arg3: memref<1x128xf32, #tpu.memory_space<vmem>>, %arg4: memref<8x128xbf16, #tpu.memory_space<vmem>>) attributes {dimension_semantics = [#tpu.dimension_semantics<parallel>], iteration_bounds = array<i64: 1>, scalar_prefetch = 0 : i64, scratch_operands = 0 : i64, tpu.core_type = #tpu.core_type<tc>, window_params = [{transform_indices = @transform_0, window_bounds = array<i64: 8, 2048>}, {pipeline_mode = #tpu.pipeline_mode<synchronous>, transform_indices = @transform_1, window_bounds = array<i64: 2048, 128>}, {pipeline_mode = #tpu.pipeline_mode<synchronous>, transform_indices = @transform_2, window_bounds = array<i64: 1, 128>}, {transform_indices = @transform_3, window_bounds = array<i64: 8, 128>}]} {
    %c0 = arith.constant 0 : index
    %c0_0 = arith.constant 0 : index
    %0 = vector.load %arg1[%c0, %c0_0] : memref<8x2048xbf16, #tpu.memory_space<vmem>>, vector<8x2048xbf16>
    %c0_1 = arith.constant 0 : index
    %c0_2 = arith.constant 0 : index
    %1 = vector.load %arg2[%c0_1, %c0_2] : memref<2048x128xbf16, #tpu.memory_space<vmem>>, vector<2048x128xbf16>
    %cst = arith.constant dense<0.000000e+00> : vector<8x128xf32>
    %2 = tpu.matmul %0, %1, %cst {dimension_numbers = #tpu.dot_dimension_numbers<[1], [0], [0], [1], [0, 0, 1, 1], [], []>} : vector<8x2048xbf16>, vector<2048x128xbf16>, vector<8x128xf32> -> vector<8x128xf32>
    %c0_3 = arith.constant 0 : index
    %c0_4 = arith.constant 0 : index
    %3 = vector.load %arg3[%c0_3, %c0_4] : memref<1x128xf32, #tpu.memory_space<vmem>>, vector<1x128xf32>
    %4 = vector.broadcast %3 : vector<1x128xf32> to vector<8x128xf32>
    %5 = arith.addf %2, %4 : vector<8x128xf32>
    %6 = arith.truncf %5 : vector<8x128xf32> to vector<8x128xbf16>
    %c0_5 = arith.constant 0 : index
    %c0_6 = arith.constant 0 : index
    %7 = vector.load %arg4[%c0_5, %c0_6] : memref<8x128xbf16, #tpu.memory_space<vmem>>, vector<8x128xbf16>
    tpu.vector_store %arg4[%c0_5, %c0_6], %6 {strides = array<i32>} : memref<8x128xbf16, #tpu.memory_space<vmem>>, vector<8x128xbf16>,
    return
  }
  func.func @transform_0(%arg0: i32) -> (i32, i32) {
    %c0_i32 = arith.constant 0 : i32
    %c0_i32_0 = arith.constant 0 : i32
    return %arg0, %c0_i32 : i32, i32
  }
  func.func @transform_1(%arg0: i32) -> (i32, i32) {
    %c0_i32 = arith.constant 0 : i32
    %c0_i32_0 = arith.constant 0 : i32
    %c0_i32_1 = arith.constant 0 : i32
    return %c0_i32, %c0_i32_0 : i32, i32
  }
  func.func @transform_2(%arg0: i32) -> (i32, i32) {
    %c0_i32 = arith.constant 0 : i32
    %c0_i32_0 = arith.constant 0 : i32
    %c0_i32_1 = arith.constant 0 : i32
    return %c0_i32, %c0_i32_0 : i32, i32
  }
  func.func @transform_3(%arg0: i32) -> (i32, i32) {
    %c0_i32 = arith.constant 0 : i32
    %c0_i32_0 = arith.constant 0 : i32
    return %arg0, %c0_i32 : i32, i32
  }
}

</mosaic_0001>

<bundles_post_ra>
// kernel: discriminator_forward.8
= control target key start
LH: loop header
LB: loop body
LE: loop exit
PB: predicated region body
PF: predicated region fallthrough
CT: control target
= control target key end

     0   :  { %vm270_vm0 = vcmask 392192   ;;  %s2030_s1 = inlined_call_operand.vmem [shape: bf16[48,128], index: 1, kind: input, shape index: {}]   ;;  %s2031_s0 = inlined_call_operand.vmem [shape: bf16[512,48], index: 0, kind: input, shape index: {}]   ;;  %s2032_s2 = inlined_call_operand.vmem [shape: f32[1,128], index: 2, kind: input, shape index: {}]   ;;  %s2033_s3 = inlined_call_operand.vmem [shape: bf16[512,128], index: 3, kind: output, shape index: {}]  }
   0x1   :  { %v1670_v0 = vld [vmem:[%s2030_s1 + $0x10] sm:$0xff]   ;;  %v1671_v1 = vld [vmem:[%s2030_s1 + $0x8] sm:$0xff]   ;;  %v1672_v2 = vld [vmem:[%s2030_s1] sm:$0xff]  }
   0x2   :  { %1594 = vmatprep.subr.bf16.mxu0 %v1670_v0  ;;  %1664 = vmatprep.subr.bf16.mxu1 %v1670_v0  ;;  %v1673_v3 = vld [vmem:[%s2031_s0] sm:$0xff]   ;;  %v1675_v5 = vld [vmem:[%s2031_s0 + $0x8] sm:$0xff]   ;;  %v1677_v7 = vld [vmem:[%s2031_s0 + $0x10] sm:$0xff]  }
   0x3   :  { %1595 = vmatpush3.bf16.msra.mxu0 %v1670_v0  ;;  %1667 = vmatpush3.bf16.msra.mxu1 %v1670_v0  ;;  %v1674_v4 = vld [vmem:[%s2031_s0 + $0x80] sm:$0xff]   ;;  %v1676_v6 = vld [vmem:[%s2031_s0 + $0x88] sm:$0xff]   ;;  %v1678_v8 = vld [vmem:[%s2031_s0 + $0x90] sm:$0xff]  }
   0x4   :  { %1596 = vmatprep.subr.bf16.mxu0 %v1671_v1  ;;  %1665 = vmatprep.subr.bf16.mxu1 %v1671_v1  ;;  %v1679_v9 = vld [vmem:[%s2031_s0 + $0x18] sm:$0xff]   ;;  %v1681_v11 = vld [vmem:[%s2031_s0 + $0x20] sm:$0xff]   ;;  %v1683_v13 = vld [vmem:[%s2031_s0 + $0x28] sm:$0xff]  }
   0x5   :  { %1600 = vmatprep.mubr.msk.bf16.mxu0 %vm270_vm0, %v1673_v3  ;;  %1632 = vmatprep.mubr.msk.bf16.mxu1 %vm270_vm0, %v1674_v4  ;;  %v1680_v10 = vld [vmem:[%s2031_s0 + $0x98] sm:$0xff]   ;;  %v1682_v12 = vld [vmem:[%s2031_s0 + $0xa0] sm:$0xff]   ;;  %v1684_v14 = vld [vmem:[%s2031_s0 + $0xa8] sm:$0xff]  }
   0x6   :  { %v1685_v15 = vld [vmem:[%s2031_s0 + $0x30] sm:$0xff]   ;;  %v1687_v17 = vld [vmem:[%s2031_s0 + $0x38] sm:$0xff]   ;;  %v1689_v19 = vld [vmem:[%s2031_s0 + $0x40] sm:$0xff]  }
   0x7   :  { %1597 = vmatpush3.bf16.msra.mxu0 %v1671_v1  ;;  %1668 = vmatpush3.bf16.msra.mxu1 %v1671_v1  ;;  %v1686_v16 = vld [vmem:[%s2031_s0 + $0xb0] sm:$0xff]   ;;  %v1688_v18 = vld [vmem:[%s2031_s0 + $0xb8] sm:$0xff]   ;;  %v1690_v20 = vld [vmem:[%s2031_s0 + $0xc0] sm:$0xff]  }
   0x8   :  { %1598 = vmatprep.subr.bf16.mxu0 %v1672_v2  ;;  %1666 = vmatprep.subr.bf16.mxu1 %v1672_v2  ;;  %v1691_v21 = vld [vmem:[%s2031_s0 + $0x48] sm:$0xff]   ;;  %v1693_v23 = vld [vmem:[%s2031_s0 + $0x50] sm:$0xff]   ;;  %v1695_v25 = vld [vmem:[%s2031_s0 + $0x58] sm:$0xff]  }
   0x9   :  { %v1692_v22 = vld [vmem:[%s2031_s0 + $0xc8] sm:$0xff]   ;;  %v1694_v24 = vld [vmem:[%s2031_s0 + $0xd0] sm:$0xff]   ;;  %v1696_v26 = vld [vmem:[%s2031_s0 + $0xd8] sm:$0xff]  }
   0xa   :  { %v1697_v27 = vld [vmem:[%s2031_s0 + $0x60] sm:$0xff]   ;;  %v1699_v29 = vld [vmem:[%s2031_s0 + $0x68] sm:$0xff]   ;;  %v1701_v31 = vld [vmem:[%s2031_s0 + $0x70] sm:$0xff]  }
   0xb   :  { %1599 = vmatpush3.bf16.msra.mxu0 %v1672_v2  ;;  %1669 = vmatpush3.bf16.msra.mxu1 %v1672_v2  ;;  %v1698_v28 = vld [vmem:[%s2031_s0 + $0xe0] sm:$0xff]   ;;  %v1700_v30 = vld [vmem:[%s2031_s0 + $0xe8] sm:$0xff]   ;;  %v1702_v32 = vld [vmem:[%s2031_s0 + $0xf0] sm:$0xff]  }
   0xc   :  { %v1703_v33 = vld [vmem:[%s2031_s0 + $0x78] sm:$0xff]   ;;  %v1865_v35 = vld [vmem:[%s2032_s2] ss:$0 sm:$0xff] }
   0xd   :  { %v1704_v34 = vld [vmem:[%s2031_s0 + $0xf8] sm:$0xff]  }
   0xe   :  { %1601 = vmatmul.mubr.msk.bf16.vlgmr.msra.gmra.mxu0 %vm270_vm0, %v1675_v5  ;;  %1633 = vmatmul.mubr.msk.bf16.vlgmr.msra.gmra.mxu1 %vm270_vm0, %v1676_v6 }
   0xf   :  { %1604 = vmatprep.mubr.msk.bf16.mxu0 %vm270_vm0, %v1677_v7  ;;  %1636 = vmatprep.mubr.msk.bf16.mxu1 %vm270_vm0, %v1678_v8 }
  0x16   :  { %1605 = vmatmul.mubr.msk.bf16.gmra.mxu0 %vm270_vm0, %v1679_v9  ;;  %1637 = vmatmul.mubr.msk.bf16.gmra.mxu1 %vm270_vm0, %v1680_v10 }
  0x17   :  { %1608 = vmatprep.mubr.msk.bf16.mxu0 %vm270_vm0, %v1681_v11  ;;  %1640 = vmatprep.mubr.msk.bf16.mxu1 %vm270_vm0, %v1682_v12 }
  0x1e   :  { %1609 = vmatmul.mubr.msk.bf16.gmra.mxu0 %vm270_vm0, %v1683_v13  ;;  %1641 = vmatmul.mubr.msk.bf16.gmra.mxu1 %vm270_vm0, %v1684_v14 }
  0x1f   :  { %1612 = vmatprep.mubr.msk.bf16.mxu0 %vm270_vm0, %v1685_v15  ;;  %1644 = vmatprep.mubr.msk.bf16.mxu1 %vm270_vm0, %v1686_v16 }
  0x26   :  { %1613 = vmatmul.mubr.msk.bf16.gmra.mxu0 %vm270_vm0, %v1687_v17  ;;  %1645 = vmatmul.mubr.msk.bf16.gmra.mxu1 %vm270_vm0, %v1688_v18 }
  0x27   :  { %1616 = vmatprep.mubr.msk.bf16.mxu0 %vm270_vm0, %v1689_v19  ;;  %1648 = vmatprep.mubr.msk.bf16.mxu1 %vm270_vm0, %v1690_v20 }
  0x2e   :  { %1617 = vmatmul.mubr.msk.bf16.gmra.mxu0 %vm270_vm0, %v1691_v21  ;;  %1649 = vmatmul.mubr.msk.bf16.gmra.mxu1 %vm270_vm0, %v1692_v22 }
  0x2f   :  { %1620 = vmatprep.mubr.msk.bf16.mxu0 %vm270_vm0, %v1693_v23  ;;  %1652 = vmatprep.mubr.msk.bf16.mxu1 %vm270_vm0, %v1694_v24 }
  0x36   :  { %1621 = vmatmul.mubr.msk.bf16.gmra.mxu0 %vm270_vm0, %v1695_v25  ;;  %1653 = vmatmul.mubr.msk.bf16.gmra.mxu1 %vm270_vm0, %v1696_v26 }
  0x37   :  { %1624 = vmatprep.mubr.msk.bf16.mxu0 %vm270_vm0, %v1697_v27  ;;  %1656 = vmatprep.mubr.msk.bf16.mxu1 %vm270_vm0, %v1698_v28 }
  0x3e   :  { %1625 = vmatmul.mubr.msk.bf16.gmra.mxu0 %vm270_vm0, %v1699_v29  ;;  %1657 = vmatmul.mubr.msk.bf16.gmra.mxu1 %vm270_vm0, %v1700_v30 }
  0x3f   :  { %1628 = vmatprep.mubr.msk.bf16.mxu0 %vm270_vm0, %v1701_v31  ;;  %1660 = vmatprep.mubr.msk.bf16.mxu1 %vm270_vm0, %v1702_v32 }
  0x46   :  { %1629 = vmatmul.mubr.msk.bf16.gmra.mxu0 %vm270_vm0, %v1703_v33  ;;  %1661 = vmatmul.mubr.msk.bf16.gmra.mxu1 %vm270_vm0, %v1704_v34 }
  0xce   :  { %v1602_v36 = vpop.f32.mrf.mxu0  ;;  %v1634_v37 = vpop.f32.mrf.mxu1 }
  0xcf   :  { %v410_v38 = vadd.f32 %v1602_v36, %v1865_v35  ;;  %v538_v39 = vadd.f32 %v1634_v37, %v1865_v35 }
  0xd0   :  { %v401_v40 = vpop.f32.mrf.mxu0  ;;  %v529_v41 = vpop.f32.mrf.mxu1 }
  0xd1   :  { %vm658_vm1 = vcmp.ge.f32.partialorder %v410_v38, 0.0  ;;  %v722_v42 = vmul.f32 0.2, %v410_v38  ;;  %vm690_vm2 = vcmp.ge.f32.partialorder %v538_v39, 0.0  ;;  %v754_v43 = vmul.f32 0.2, %v538_v39 }
  0xd2   :  { %v402_v44 = vadd.f32 %v1865_v35, %v401_v40  ;;  %v530_v45 = vadd.f32 %v1865_v35, %v529_v41  ;;  %v1603_v46 = vpop.f32.mrf.mxu0  ;;  %v1635_v47 = vpop.f32.mrf.mxu1 }
  0xd3   :  { %v786_v48 = vsel %vm658_vm1, %v410_v38, %v722_v42  ;;  %v413_v49 = vadd.f32 %v1603_v46, %v1865_v35  ;;  %v541_v50 = vadd.f32 %v1635_v47, %v1865_v35  ;;  %v818_v51 = vsel %vm690_vm2, %v538_v39, %v754_v43 }
  0xd4   :  { %vm656_vm3 = vcmp.ge.f32.partialorder %v402_v44, 0.0  ;;  %v720_v52 = vmul.f32 0.2, %v402_v44  ;;  %vm688_vm4 = vcmp.ge.f32.partialorder %v530_v45, 0.0  ;;  %v404_v53 = vpop.f32.mrf.mxu0  ;;  %v532_v54 = vpop.f32.mrf.mxu1  ;;  %v752_v58 = vmul.f32 0.2, %v530_v45 }
  0xd5   :  { %vm659_vm5 = vcmp.ge.f32.partialorder %v413_v49, 0.0  ;;  %v723_v55 = vmul.f32 0.2, %v413_v49  ;;  %vm691_vm6 = vcmp.ge.f32.partialorder %v541_v50, 0.0  ;;  %v755_v56 = vmul.f32 0.2, %v541_v50 }
  0xd6   :  { %v784_v57 = vsel %vm656_vm3, %v402_v44, %v720_v52  ;;  %v405_v59 = vadd.f32 %v1865_v35, %v404_v53  ;;  %v533_v60 = vadd.f32 %v1865_v35, %v532_v54  ;;  %v1606_v61 = vpop.f32.mrf.mxu0  ;;  %v1638_v62 = vpop.f32.mrf.mxu1  ;;  %v816_v10 = vsel %vm688_vm4, %v530_v45, %v752_v58 }
  0xd7   :  { %v787_v63 = vsel %vm659_vm5, %v413_v49, %v723_v55  ;;  %v819_v0 = vsel %vm691_vm6, %v541_v50, %v755_v56  ;;  %v426_v1 = vadd.f32 %v1606_v61, %v1865_v35  ;;  %v554_v2 = vadd.f32 %v1638_v62, %v1865_v35 }
  0xd8   :  { %v1376_v3 = vpack.c.bf16 %v787_v63, %v786_v48  ;;  %v1456_v4 = vpack.c.bf16 %v819_v0, %v818_v51  ;;  %vm657_vm7 = vcmp.ge.f32.partialorder %v405_v59, 0.0  ;;  %v721_v5 = vmul.f32 0.2, %v405_v59  ;;  %v417_v6 = vpop.f32.mrf.mxu0  ;;  %v545_v7 = vpop.f32.mrf.mxu1 }
  0xd9   :  { %vm689_vm8 = vcmp.ge.f32.partialorder %v533_v60, 0.0  ;;  %v753_v8 = vmul.f32 0.2, %v533_v60  ;;  %vm662_vm9 = vcmp.ge.f32.partialorder %v426_v1, 0.0  ;;  %v726_v9 = vmul.f32 0.2, %v426_v1 }
  0xda   :  { %1528 = vst [vmem:[%s2033_s3 + $0x8] sm:$0xff] %v1376_v3   ;;  %1544 = vst [vmem:[%s2033_s3 + $0x88] sm:$0xff] %v1456_v4   ;;  %v785_v11 = vsel %vm657_vm7, %v405_v59, %v721_v5  ;;  %v758_v12 = vmul.f32 0.2, %v554_v2  ;;  %v418_v13 = vadd.f32 %v1865_v35, %v417_v6  ;;  %v1607_v14 = vpop.f32.mrf.mxu0  ;;  %v1639_v15 = vpop.f32.mrf.mxu1  ;;  %vm694_vm10 = vcmp.ge.f32.partialorder %v554_v2, 0.0 }
  0xdb   :  { %v1371_v16 = vpack.c.bf16 %v785_v11, %v784_v57  ;;  %v817_v17 = vsel %vm689_vm8, %v533_v60, %v753_v8  ;;  %v546_v18 = vadd.f32 %v1865_v35, %v545_v7  ;;  %v790_v20 = vsel %vm662_vm9, %v426_v1, %v726_v9 }
  0xdc   :  { %v1451_v19 = vpack.c.bf16 %v817_v17, %v816_v10  ;;  %vm660_vm11 = vcmp.ge.f32.partialorder %v418_v13, 0.0  ;;  %v724_v21 = vmul.f32 0.2, %v418_v13  ;;  %v420_v22 = vpop.f32.mrf.mxu0  ;;  %v548_v23 = vpop.f32.mrf.mxu1  ;;  %v429_v25 = vadd.f32 %v1607_v14, %v1865_v35 }
  0xdd   :  { %1372 = vst [vmem:[%s2033_s3] sm:$0xff] %v1371_v16   ;;  %vm692_vm12 = vcmp.ge.f32.partialorder %v546_v18, 0.0  ;;  %v756_v24 = vmul.f32 0.2, %v546_v18  ;;  %v557_v26 = vadd.f32 %v1639_v15, %v1865_v35  ;;  %v822_v27 = vsel %vm694_vm10, %v554_v2, %v758_v12 }
  0xde   :  { %1543 = vst [vmem:[%s2033_s3 + $0x80] sm:$0xff] %v1451_v19   ;;  %v788_v28 = vsel %vm660_vm11, %v418_v13, %v724_v21  ;;  %v421_v29 = vadd.f32 %v1865_v35, %v420_v22  ;;  %v549_v30 = vadd.f32 %v1865_v35, %v548_v23  ;;  %v1610_v31 = vpop.f32.mrf.mxu0  ;;  %v1642_v32 = vpop.f32.mrf.mxu1  ;;  %vm663_vm13 = vcmp.ge.f32.partialorder %v429_v25, 0.0 }
  0xdf   :  { %v820_v33 = vsel %vm692_vm12, %v546_v18, %v756_v24  ;;  %v727_v34 = vmul.f32 0.2, %v429_v25  ;;  %vm695_vm14 = vcmp.ge.f32.partialorder %v557_v26, 0.0  ;;  %v759_v36 = vmul.f32 0.2, %v557_v26 }
  0xe0   :  { %vm661_vm15 = vcmp.ge.f32.partialorder %v421_v29, 0.0  ;;  %v725_v37 = vmul.f32 0.2, %v421_v29  ;;  %vm693_vm0 = vcmp.ge.f32.partialorder %v549_v30, 0.0  ;;  %v433_v38 = vpop.f32.mrf.mxu0  ;;  %v561_v39 = vpop.f32.mrf.mxu1  ;;  %v757_v41 = vmul.f32 0.2, %v549_v30 }
  0xe1   :  { %v791_v40 = vsel %vm663_vm13, %v429_v25, %v727_v34  ;;  %v442_v42 = vadd.f32 %v1610_v31, %v1865_v35  ;;  %v570_v43 = vadd.f32 %v1642_v32, %v1865_v35  ;;  %v823_v45 = vsel %vm695_vm14, %v557_v26, %v759_v36 }
  0xe2   :  { %v1386_v44 = vpack.c.bf16 %v791_v40, %v790_v20  ;;  %v789_v46 = vsel %vm661_vm15, %v421_v29, %v725_v37  ;;  %v434_v47 = vadd.f32 %v1865_v35, %v433_v38  ;;  %v1611_v48 = vpop.f32.mrf.mxu0  ;;  %v1643_v49 = vpop.f32.mrf.mxu1  ;;  %v1466_v50 = vpack.c.bf16 %v823_v45, %v822_v27 }
  0xe3   :  { %v1381_v51 = vpack.c.bf16 %v789_v46, %v788_v28  ;;  %v821_v52 = vsel %vm693_vm0, %v549_v30, %v757_v41  ;;  %vm666_vm1 = vcmp.ge.f32.partialorder %v442_v42, 0.0  ;;  %v730_v54 = vmul.f32 0.2, %v442_v42 }
  0xe4   :  { %1530 = vst [vmem:[%s2033_s3 + $0x18] sm:$0xff] %v1386_v44   ;;  %v1461_v53 = vpack.c.bf16 %v821_v52, %v820_v33  ;;  %vm698_vm2 = vcmp.ge.f32.partialorder %v570_v43, 0.0  ;;  %v762_v55 = vmul.f32 0.2, %v570_v43  ;;  %v436_v56 = vpop.f32.mrf.mxu0  ;;  %v564_v57 = vpop.f32.mrf.mxu1  ;;  %1546 = vst [vmem:[%s2033_s3 + $0x98] sm:$0xff] %v1466_v50   ;;  %vm664_vm3 = vcmp.ge.f32.partialorder %v434_v47, 0.0 }
  0xe5   :  { %1529 = vst [vmem:[%s2033_s3 + $0x10] sm:$0xff] %v1381_v51   ;;  %v728_v58 = vmul.f32 0.2, %v434_v47  ;;  %v562_v59 = vadd.f32 %v1865_v35, %v561_v39  ;;  %v445_v60 = vadd.f32 %v1611_v48, %v1865_v35  ;;  %v794_v61 = vsel %vm666_vm1, %v442_v42, %v730_v54 }
  0xe6   :  { %1545 = vst [vmem:[%s2033_s3 + $0x90] sm:$0xff] %v1461_v53   ;;  %v826_v62 = vsel %vm698_vm2, %v570_v43, %v762_v55  ;;  %v573_v63 = vadd.f32 %v1643_v49, %v1865_v35  ;;  %v437_v0 = vadd.f32 %v1865_v35, %v436_v56  ;;  %v1614_v1 = vpop.f32.mrf.mxu0  ;;  %v1646_v2 = vpop.f32.mrf.mxu1  ;;  %v565_v11 = vadd.f32 %v1865_v35, %v564_v57 }
  0xe7   :  { %v792_v3 = vsel %vm664_vm3, %v434_v47, %v728_v58  ;;  %vm696_vm4 = vcmp.ge.f32.partialorder %v562_v59, 0.0  ;;  %v760_v4 = vmul.f32 0.2, %v562_v59  ;;  %vm667_vm5 = vcmp.ge.f32.partialorder %v445_v60, 0.0 }
  0xe8   :  { %v731_v5 = vmul.f32 0.2, %v445_v60  ;;  %vm699_vm6 = vcmp.ge.f32.partialorder %v573_v63, 0.0  ;;  %v763_v6 = vmul.f32 0.2, %v573_v63  ;;  %vm665_vm7 = vcmp.ge.f32.partialorder %v437_v0, 0.0  ;;  %v449_v7 = vpop.f32.mrf.mxu0  ;;  %v577_v8 = vpop.f32.mrf.mxu1 }
  0xe9   :  { %v824_v9 = vsel %vm696_vm4, %v562_v59, %v760_v4  ;;  %v729_v10 = vmul.f32 0.2, %v437_v0  ;;  %v458_v12 = vadd.f32 %v1614_v1, %v1865_v35  ;;  %v586_v15 = vadd.f32 %v1646_v2, %v1865_v35 }
  0xea   :  { %v795_v13 = vsel %vm667_vm5, %v445_v60, %v731_v5  ;;  %v827_v14 = vsel %vm699_vm6, %v573_v63, %v763_v6  ;;  %v450_v16 = vadd.f32 %v1865_v35, %v449_v7  ;;  %v1615_v17 = vpop.f32.mrf.mxu0  ;;  %v1647_v18 = vpop.f32.mrf.mxu1  ;;  %vm697_vm8 = vcmp.ge.f32.partialorder %v565_v11, 0.0 }
  0xeb   :  { %v1396_v19 = vpack.c.bf16 %v795_v13, %v794_v61  ;;  %v1476_v20 = vpack.c.bf16 %v827_v14, %v826_v62  ;;  %v793_v21 = vsel %vm665_vm7, %v437_v0, %v729_v10  ;;  %v761_v23 = vmul.f32 0.2, %v565_v11 }
  0xec   :  { %v1391_v22 = vpack.c.bf16 %v793_v21, %v792_v3  ;;  %vm670_vm9 = vcmp.ge.f32.partialorder %v458_v12, 0.0  ;;  %v734_v24 = vmul.f32 0.2, %v458_v12  ;;  %v452_v25 = vpop.f32.mrf.mxu0  ;;  %v580_v26 = vpop.f32.mrf.mxu1  ;;  %vm702_vm10 = vcmp.ge.f32.partialorder %v586_v15, 0.0 }
  0xed   :  { %1532 = vst [vmem:[%s2033_s3 + $0x28] sm:$0xff] %v1396_v19   ;;  %1548 = vst [vmem:[%s2033_s3 + $0xa8] sm:$0xff] %v1476_v20   ;;  %v766_v27 = vmul.f32 0.2, %v586_v15  ;;  %vm668_vm11 = vcmp.ge.f32.partialorder %v450_v16, 0.0  ;;  %v825_v29 = vsel %vm697_vm8, %v565_v11, %v761_v23  ;;  %v578_v31 = vadd.f32 %v1865_v35, %v577_v8 }
  0xee   :  { %v732_v28 = vmul.f32 0.2, %v450_v16  ;;  %1531 = vst [vmem:[%s2033_s3 + $0x20] sm:$0xff] %v1391_v22   ;;  %v798_v30 = vsel %vm670_vm9, %v458_v12, %v734_v24  ;;  %v461_v32 = vadd.f32 %v1615_v17, %v1865_v35  ;;  %v1618_v33 = vpop.f32.mrf.mxu0  ;;  %v1650_v34 = vpop.f32.mrf.mxu1  ;;  %v1471_v36 = vpack.c.bf16 %v825_v29, %v824_v9 }
  0xef   :  { %v830_v37 = vsel %vm702_vm10, %v586_v15, %v766_v27  ;;  %v589_v39 = vadd.f32 %v1647_v18, %v1865_v35  ;;  %vm700_vm12 = vcmp.ge.f32.partialorder %v578_v31, 0.0  ;;  %v764_v40 = vmul.f32 0.2, %v578_v31 }
  0xf0   :  { %v796_v38 = vsel %vm668_vm11, %v450_v16, %v732_v28  ;;  %vm671_vm13 = vcmp.ge.f32.partialorder %v461_v32, 0.0  ;;  %v735_v41 = vmul.f32 0.2, %v461_v32  ;;  %v465_v42 = vpop.f32.mrf.mxu0  ;;  %v593_v43 = vpop.f32.mrf.mxu1  ;;  %1547 = vst [vmem:[%s2033_s3 + $0xa0] sm:$0xff] %v1471_v36   ;;  %v453_v45 = vadd.f32 %v1865_v35, %v452_v25 }
  0xf1   :  { %vm703_vm14 = vcmp.ge.f32.partialorder %v589_v39, 0.0  ;;  %v767_v44 = vmul.f32 0.2, %v589_v39  ;;  %v581_v46 = vadd.f32 %v1865_v35, %v580_v26  ;;  %v828_v47 = vsel %vm700_vm12, %v578_v31, %v764_v40 }
  0xf2   :  { %v799_v48 = vsel %vm671_vm13, %v461_v32, %v735_v41  ;;  %v474_v49 = vadd.f32 %v1618_v33, %v1865_v35  ;;  %v602_v50 = vadd.f32 %v1650_v34, %v1865_v35  ;;  %v1619_v51 = vpop.f32.mrf.mxu0  ;;  %v1651_v52 = vpop.f32.mrf.mxu1  ;;  %vm669_vm15 = vcmp.ge.f32.partialorder %v453_v45, 0.0 }
  0xf3   :  { %v1406_v53 = vpack.c.bf16 %v799_v48, %v798_v30  ;;  %v831_v54 = vsel %vm703_vm14, %v589_v39, %v767_v44  ;;  %v733_v55 = vmul.f32 0.2, %v453_v45  ;;  %vm701_vm0 = vcmp.ge.f32.partialorder %v581_v46, 0.0 }
  0xf4   :  { %v1486_v56 = vpack.c.bf16 %v831_v54, %v830_v37  ;;  %v765_v57 = vmul.f32 0.2, %v581_v46  ;;  %vm674_vm1 = vcmp.ge.f32.partialorder %v474_v49, 0.0  ;;  %v468_v58 = vpop.f32.mrf.mxu0  ;;  %v596_v59 = vpop.f32.mrf.mxu1  ;;  %v738_v61 = vmul.f32 0.2, %v474_v49 }
  0xf5   :  { %1534 = vst [vmem:[%s2033_s3 + $0x38] sm:$0xff] %v1406_v53   ;;  %v797_v60 = vsel %vm669_vm15, %v453_v45, %v733_v55  ;;  %vm706_vm2 = vcmp.ge.f32.partialorder %v602_v50, 0.0  ;;  %v770_v62 = vmul.f32 0.2, %v602_v50  ;;  %v466_v1 = vadd.f32 %v1865_v35, %v465_v42 }
  0xf6   :  { %1550 = vst [vmem:[%s2033_s3 + $0xb8] sm:$0xff] %v1486_v56   ;;  %v1401_v63 = vpack.c.bf16 %v797_v60, %v796_v38  ;;  %v829_v0 = vsel %vm701_vm0, %v581_v46, %v765_v57  ;;  %v594_v2 = vadd.f32 %v1865_v35, %v593_v43  ;;  %v1622_v3 = vpop.f32.mrf.mxu0  ;;  %v1654_v4 = vpop.f32.mrf.mxu1  ;;  %v802_v6 = vsel %vm674_vm1, %v474_v49, %v738_v61 }
  0xf7   :  { %v1481_v5 = vpack.c.bf16 %v829_v0, %v828_v47  ;;  %v834_v7 = vsel %vm706_vm2, %v602_v50, %v770_v62  ;;  %v477_v8 = vadd.f32 %v1619_v51, %v1865_v35  ;;  %vm672_vm3 = vcmp.ge.f32.partialorder %v466_v1, 0.0 }
  0xf8   :  { %1533 = vst [vmem:[%s2033_s3 + $0x30] sm:$0xff] %v1401_v63   ;;  %v736_v9 = vmul.f32 0.2, %v466_v1  ;;  %vm704_vm4 = vcmp.ge.f32.partialorder %v594_v2, 0.0  ;;  %v768_v10 = vmul.f32 0.2, %v594_v2  ;;  %v481_v11 = vpop.f32.mrf.mxu0  ;;  %v609_v12 = vpop.f32.mrf.mxu1  ;;  %v605_v14 = vadd.f32 %v1651_v52, %v1865_v35 }
  0xf9   :  { %1549 = vst [vmem:[%s2033_s3 + $0xb0] sm:$0xff] %v1481_v5   ;;  %vm675_vm5 = vcmp.ge.f32.partialorder %v477_v8, 0.0  ;;  %v739_v13 = vmul.f32 0.2, %v477_v8  ;;  %v469_v15 = vadd.f32 %v1865_v35, %v468_v58  ;;  %v597_v18 = vadd.f32 %v1865_v35, %v596_v59 }
  0xfa   :  { %v800_v16 = vsel %vm672_vm3, %v466_v1, %v736_v9  ;;  %v832_v17 = vsel %vm704_vm4, %v594_v2, %v768_v10  ;;  %v490_v19 = vadd.f32 %v1622_v3, %v1865_v35  ;;  %v1623_v20 = vpop.f32.mrf.mxu0  ;;  %v1655_v21 = vpop.f32.mrf.mxu1  ;;  %vm707_vm6 = vcmp.ge.f32.partialorder %v605_v14, 0.0 }
  0xfb   :  { %v803_v22 = vsel %vm675_vm5, %v477_v8, %v739_v13  ;;  %v771_v23 = vmul.f32 0.2, %v605_v14  ;;  %vm673_vm7 = vcmp.ge.f32.partialorder %v469_v15, 0.0  ;;  %v737_v25 = vmul.f32 0.2, %v469_v15 }
  0xfc   :  { %v1416_v24 = vpack.c.bf16 %v803_v22, %v802_v6  ;;  %vm705_vm8 = vcmp.ge.f32.partialorder %v597_v18, 0.0  ;;  %v769_v26 = vmul.f32 0.2, %v597_v18  ;;  %v484_v27 = vpop.f32.mrf.mxu0  ;;  %v612_v28 = vpop.f32.mrf.mxu1  ;;  %vm678_vm9 = vcmp.ge.f32.partialorder %v490_v19, 0.0 }
  0xfd   :  { %v835_v29 = vsel %vm707_vm6, %v605_v14, %v771_v23  ;;  %v742_v30 = vmul.f32 0.2, %v490_v19  ;;  %v618_v31 = vadd.f32 %v1654_v4, %v1865_v35  ;;  %v801_v33 = vsel %vm673_vm7, %v469_v15, %v737_v25 }
  0xfe   :  { %1536 = vst [vmem:[%s2033_s3 + $0x48] sm:$0xff] %v1416_v24   ;;  %v1496_v32 = vpack.c.bf16 %v835_v29, %v834_v7  ;;  %v833_v34 = vsel %vm705_vm8, %v597_v18, %v769_v26  ;;  %v482_v36 = vadd.f32 %v1865_v35, %v481_v11  ;;  %v1626_v37 = vpop.f32.mrf.mxu0  ;;  %v1658_v38 = vpop.f32.mrf.mxu1  ;;  %v1411_v39 = vpack.c.bf16 %v801_v33, %v800_v16 }
  0xff   :  { %v1491_v40 = vpack.c.bf16 %v833_v34, %v832_v17  ;;  %v806_v41 = vsel %vm678_vm9, %v490_v19, %v742_v30  ;;  %vm710_vm10 = vcmp.ge.f32.partialorder %v618_v31, 0.0  ;;  %v774_v42 = vmul.f32 0.2, %v618_v31 }
 0x100   :  { %1552 = vst [vmem:[%s2033_s3 + $0xc8] sm:$0xff] %v1496_v32   ;;  %vm676_vm11 = vcmp.ge.f32.partialorder %v482_v36, 0.0  ;;  %v740_v43 = vmul.f32 0.2, %v482_v36  ;;  %v610_v44 = vadd.f32 %v1865_v35, %v609_v12  ;;  %v497_v45 = vpop.f32.mrf.mxu0  ;;  %v625_v46 = vpop.f32.mrf.mxu1  ;;  %1535 = vst [vmem:[%s2033_s3 + $0x40] sm:$0xff] %v1411_v39   ;;  %v493_v47 = vadd.f32 %v1623_v20, %v1865_v35 }
 0x101   :  { %1551 = vst [vmem:[%s2033_s3 + $0xc0] sm:$0xff] %v1491_v40   ;;  %v621_v48 = vadd.f32 %v1655_v21, %v1865_v35  ;;  %v485_v49 = vadd.f32 %v1865_v35, %v484_v27  ;;  %v613_v50 = vadd.f32 %v1865_v35, %v612_v28  ;;  %v838_v51 = vsel %vm710_vm10, %v618_v31, %v774_v42 }
 0x102   :  { %v804_v52 = vsel %vm676_vm11, %v482_v36, %v740_v43  ;;  %vm708_vm12 = vcmp.ge.f32.partialorder %v610_v44, 0.0  ;;  %v772_v53 = vmul.f32 0.2, %v610_v44  ;;  %v1627_v54 = vpop.f32.mrf.mxu0  ;;  %v1659_v55 = vpop.f32.mrf.mxu1  ;;  %vm679_vm13 = vcmp.ge.f32.partialorder %v493_v47, 0.0 }
 0x103   :  { %v743_v56 = vmul.f32 0.2, %v493_v47  ;;  %vm711_vm14 = vcmp.ge.f32.partialorder %v621_v48, 0.0  ;;  %v775_v57 = vmul.f32 0.2, %v621_v48  ;;  %vm677_vm15 = vcmp.ge.f32.partialorder %v485_v49, 0.0 }
 0x104   :  { %v836_v58 = vsel %vm708_vm12, %v610_v44, %v772_v53  ;;  %v741_v59 = vmul.f32 0.2, %v485_v49  ;;  %vm709_vm0 = vcmp.ge.f32.partialorder %v613_v50, 0.0  ;;  %v500_v60 = vpop.f32.mrf.mxu0  ;;  %v628_v61 = vpop.f32.mrf.mxu1  ;;  %v773_v0 = vmul.f32 0.2, %v613_v50 }
 0x105   :  { %v807_v62 = vsel %vm679_vm13, %v493_v47, %v743_v56  ;;  %v839_v63 = vsel %vm711_vm14, %v621_v48, %v775_v57  ;;  %v506_v1 = vadd.f32 %v1626_v37, %v1865_v35  ;;  %v634_v5 = vadd.f32 %v1658_v38, %v1865_v35 }
 0x106   :  { %v1426_v2 = vpack.c.bf16 %v807_v62, %v806_v41  ;;  %v1506_v3 = vpack.c.bf16 %v839_v63, %v838_v51  ;;  %v805_v4 = vsel %vm677_vm15, %v485_v49, %v741_v59  ;;  %v1630_v6 = vpop.f32.mrf.mxu0  ;;  %v1662_v7 = vpop.f32.mrf.mxu1  ;;  %v837_v9 = vsel %vm709_vm0, %v613_v50, %v773_v0 }
 0x107   :  { %v1421_v8 = vpack.c.bf16 %v805_v4, %v804_v52  ;;  %vm682_vm1 = vcmp.ge.f32.partialorder %v506_v1, 0.0  ;;  %v746_v10 = vmul.f32 0.2, %v506_v1  ;;  %v1501_v11 = vpack.c.bf16 %v837_v9, %v836_v58 }
 0x108   :  { %1538 = vst [vmem:[%s2033_s3 + $0x58] sm:$0xff] %v1426_v2   ;;  %1554 = vst [vmem:[%s2033_s3 + $0xd8] sm:$0xff] %v1506_v3   ;;  %vm714_vm2 = vcmp.ge.f32.partialorder %v634_v5, 0.0  ;;  %v778_v12 = vmul.f32 0.2, %v634_v5  ;;  %v498_v13 = vadd.f32 %v1865_v35, %v497_v45  ;;  %v626_v14 = vadd.f32 %v1865_v35, %v625_v46  ;;  %v513_v20 = vpop.f32.mrf.mxu0  ;;  %v641_v21 = vpop.f32.mrf.mxu1 }
 0x109   :  { %1537 = vst [vmem:[%s2033_s3 + $0x50] sm:$0xff] %v1421_v8   ;;  %v509_v15 = vadd.f32 %v1627_v54, %v1865_v35  ;;  %v637_v16 = vadd.f32 %v1659_v55, %v1865_v35  ;;  %1553 = vst [vmem:[%s2033_s3 + $0xd0] sm:$0xff] %v1501_v11   ;;  %v810_v17 = vsel %vm682_vm1, %v506_v1, %v746_v10 }
 0x10a   :  { %vm680_vm3 = vcmp.ge.f32.partialorder %v498_v13, 0.0  ;;  %v744_v18 = vmul.f32 0.2, %v498_v13  ;;  %v501_v19 = vadd.f32 %v1865_v35, %v500_v60  ;;  %v842_v22 = vsel %vm714_vm2, %v634_v5, %v778_v12  ;;  %v1631_v34 = vpop.f32.mrf.mxu0  ;;  %v1663_v36 = vpop.f32.mrf.mxu1 }
 0x10b   :  { %vm712_vm4 = vcmp.ge.f32.partialorder %v626_v14, 0.0  ;;  %vm683_vm5 = vcmp.ge.f32.partialorder %v509_v15, 0.0  ;;  %v747_v23 = vmul.f32 0.2, %v509_v15  ;;  %v776_v24 = vmul.f32 0.2, %v626_v14 }
 0x10c   :  { %vm715_vm6 = vcmp.ge.f32.partialorder %v637_v16, 0.0  ;;  %v779_v25 = vmul.f32 0.2, %v637_v16  ;;  %vm681_vm7 = vcmp.ge.f32.partialorder %v501_v19, 0.0  ;;  %v808_v26 = vsel %vm680_vm3, %v498_v13, %v744_v18  ;;  %v516_v50 = vpop.f32.mrf.mxu0  ;;  %v644_v51 = vpop.f32.mrf.mxu1 }
 0x10d   :  { %v811_v27 = vsel %vm683_vm5, %v509_v15, %v747_v23  ;;  %v745_v28 = vmul.f32 0.2, %v501_v19  ;;  %v629_v29 = vadd.f32 %v1865_v35, %v628_v61  ;;  %v522_v32 = vadd.f32 %v1630_v6, %v1865_v35 }
 0x10e   :  { %v1436_v30 = vpack.c.bf16 %v811_v27, %v810_v17  ;;  %v843_v31 = vsel %vm715_vm6, %v637_v16, %v779_v25  ;;  %v650_v33 = vadd.f32 %v1662_v7, %v1865_v35  ;;  %v840_v40 = vsel %vm712_vm4, %v626_v14, %v776_v24 }
 0x10f   :  { %v1516_v37 = vpack.c.bf16 %v843_v31, %v842_v22  ;;  %v809_v38 = vsel %vm681_vm7, %v501_v19, %v745_v28  ;;  %vm713_vm8 = vcmp.ge.f32.partialorder %v629_v29, 0.0  ;;  %v777_v39 = vmul.f32 0.2, %v629_v29 }
 0x110   :  { %1540 = vst [vmem:[%s2033_s3 + $0x68] sm:$0xff] %v1436_v30   ;;  %v1431_v41 = vpack.c.bf16 %v809_v38, %v808_v26  ;;  %vm686_vm9 = vcmp.ge.f32.partialorder %v522_v32, 0.0  ;;  %v750_v42 = vmul.f32 0.2, %v522_v32  ;;  %vm718_vm10 = vcmp.ge.f32.partialorder %v650_v33, 0.0 }
 0x111   :  { %1556 = vst [vmem:[%s2033_s3 + $0xe8] sm:$0xff] %v1516_v37   ;;  %v841_v43 = vsel %vm713_vm8, %v629_v29, %v777_v39  ;;  %v782_v44 = vmul.f32 0.2, %v650_v33  ;;  %v514_v45 = vadd.f32 %v1865_v35, %v513_v20  ;;  %v642_v47 = vadd.f32 %v1865_v35, %v641_v21 }
 0x112   :  { %1539 = vst [vmem:[%s2033_s3 + $0x60] sm:$0xff] %v1431_v41   ;;  %v1511_v46 = vpack.c.bf16 %v841_v43, %v840_v40  ;;  %v525_v48 = vadd.f32 %v1631_v34, %v1865_v35  ;;  %v653_v49 = vadd.f32 %v1663_v36, %v1865_v35  ;;  %v814_v52 = vsel %vm686_vm9, %v522_v32, %v750_v42 }
 0x113   :  { %v846_v53 = vsel %vm718_vm10, %v650_v33, %v782_v44  ;;  %v748_v55 = vmul.f32 0.2, %v514_v45  ;;  %v517_v57 = vadd.f32 %v1865_v35, %v516_v50  ;;  %v645_v58 = vadd.f32 %v1865_v35, %v644_v51 }
 0x114   :  { %1555 = vst [vmem:[%s2033_s3 + $0xe0] sm:$0xff] %v1511_v46   ;;  %vm687_vm11 = vcmp.ge.f32.partialorder %v525_v48, 0.0  ;;  %v751_v54 = vmul.f32 0.2, %v525_v48  ;;  %vm719_vm12 = vcmp.ge.f32.partialorder %v653_v49, 0.0  ;;  %vm684_vm13 = vcmp.ge.f32.partialorder %v514_v45, 0.0 }
 0x115   :  { %v783_v56 = vmul.f32 0.2, %v653_v49  ;;  %vm716_vm14 = vcmp.ge.f32.partialorder %v642_v47, 0.0  ;;  %v780_v59 = vmul.f32 0.2, %v642_v47  ;;  %vm685_vm15 = vcmp.ge.f32.partialorder %v517_v57, 0.0 }
 0x116   :  { %v815_v60 = vsel %vm687_vm11, %v525_v48, %v751_v54  ;;  %v749_v63 = vmul.f32 0.2, %v517_v57  ;;  %vm717_vm0 = vcmp.ge.f32.partialorder %v645_v58, 0.0  ;;  %v781_v1 = vmul.f32 0.2, %v645_v58 }
 0x117   :  { %v1446_v61 = vpack.c.bf16 %v815_v60, %v814_v52  ;;  %v847_v62 = vsel %vm719_vm12, %v653_v49, %v783_v56  ;;  %v812_v2 = vsel %vm684_vm13, %v514_v45, %v748_v55  ;;  %v844_v4 = vsel %vm716_vm14, %v642_v47, %v780_v59 }
 0x118   :  { %v1526_v0 = vpack.c.bf16 %v847_v62, %v846_v53  ;;  %v813_v3 = vsel %vm685_vm15, %v517_v57, %v749_v63  ;;  %v845_v5 = vsel %vm717_vm0, %v645_v58, %v781_v1 }
 0x119   :  { %1542 = vst [vmem:[%s2033_s3 + $0x78] sm:$0xff] %v1446_v61   ;;  %v1441_v35 = vpack.c.bf16 %v813_v3, %v812_v2  ;;  %v1521_v6 = vpack.c.bf16 %v845_v5, %v844_v4 }
 0x11a   :  { %1558 = vst [vmem:[%s2033_s3 + $0xf8] sm:$0xff] %v1526_v0  }
 0x11b   :  { %1541 = vst [vmem:[%s2033_s3 + $0x70] sm:$0xff] %v1441_v35   ;;  %1557 = vst [vmem:[%s2033_s3 + $0xf0] sm:$0xff] %v1521_v6  }

// kernel: discriminator_forward.10
= control target key start
LH: loop header
LB: loop body
LE: loop exit
PB: predicated region body
PF: predicated region fallthrough
CT: control target
= control target key end

     0   :  { %s473_s6 = smov 0   ;;  %s475_s7 = smov 0   ;;  %s513_s0 = inlined_call_operand.vmem [shape: bf16[2,64,128], index: 0, kind: input, shape index: {}]   ;;  %s514_s1 = inlined_call_operand.vmem [shape: bf16[2,64,128], index: 1, kind: output, shape index: {}]  }
   0x1   :  { %s477_s8 = smov 0  }
   0x2 LB: > { %s23_s9 = sadd.s32 1, %s457_s7  ;;  %p346_p0 = scmp.ge.s32.totalorder %s461_s8, 1  ;;  %s461_s8 = sphi %s477_s8, %s11_s8   ;;  %s457_s7 = sphi %s475_s7, %s516_s7   ;;  %s453_s6 = sphi %s473_s6, %s515_s6  }
   0x3   : > { %p25_p1 = scmp.ge.s32.totalorder %s23_s9, 2  ;;  %p106_p2 = scmp.lt.s32.totalorder %s461_s8, 3 }
   0x5   : > { %s518_s9 = smov (%p25_p1, %s23_s9), 0  ;;  %p107_p3 = pnand %p346_p0, %p106_p2 }
   0x6   : > { %p132_p4 = scmp.lt.s32.totalorder (!%p107_p3), %s453_s6, 1 }
   0x7   : > { %110 = sbr.rel (%p107_p3) target bundleno = 100 (0x64), region = 24 }
   0xc   : > { %s520_s6 = smov (!%p132_p4, %s453_s6), 1 }
   0xd   : > { %s361_s10 = sshll.u32 %s520_s6, 5 }
   0xe   : > { %s139_s13 = scalar_lea.vmem %s513_s0, %s361_s10  ;;  %s147_s16 = scalar_lea.vmem %s514_s1, %s361_s10 }
   0xf   : > { %v372_v0 = vld [vmem:[%s139_s13] sm:$0xff]   ;;  %v407_v1 = vld [vmem:[%s139_s13 + $0x8] sm:$0xff]   ;;  %v408_v5 = vld [vmem:[%s139_s13 + $0x10] sm:$0xff]  }
  0x10   : > { %v373_v2 = vunpack.c.l.bf16 %v372_v0  ;;  %v374_v3 = vunpack.c.h.bf16 %v372_v0  ;;  %v377_v4 = vunpack.c.l.bf16 %v407_v1  ;;  %v378_v6 = vunpack.c.h.bf16 %v407_v1  ;;  %v409_v10 = vld [vmem:[%s139_s13 + $0x18] sm:$0xff]  }
  0x11   : > { %v381_v8 = vunpack.c.l.bf16 %v408_v5  ;;  %v382_v11 = vunpack.c.h.bf16 %v408_v5  ;;  %v385_v13 = vunpack.c.l.bf16 %v409_v10  ;;  %v386_v15 = vunpack.c.h.bf16 %v409_v10 }
  0x12   : > { %v164_v7 = vadd.f32 %v374_v3, %v373_v2 }
  0x14   : > { %v165_v9 = vadd.f32 %v377_v4, %v164_v7 }
  0x16   : > { %v166_v12 = vadd.f32 %v378_v6, %v165_v9 }
  0x18   : > { %v167_v14 = vadd.f32 %v381_v8, %v166_v12 }
  0x1a   : > { %v168_v16 = vadd.f32 %v382_v11, %v167_v14 }
  0x1c   : > { %v169_v17 = vadd.f32 %v385_v13, %v168_v16 }
  0x1e   : > { %v170_v18 = vadd.f32 %v386_v15, %v169_v17 }
  0x20   : > { %v171_v19 = vrot.slane %v170_v18, 4 }
  0x22   : > { %v172_v20 = vadd.f32 %v171_v19, %v170_v18 }
  0x24   : > { %v173_v21 = vrot.slane %v172_v20, 2 }
  0x26   : > { %v174_v22 = vadd.f32 %v173_v21, %v172_v20 }
  0x28   : > { %v175_v23 = vrot.slane %v174_v22, 1 }
  0x2a   : > { %v176_v24 = vadd.f32 %v175_v23, %v174_v22 }
  0x2c   : > { %v178_v25 = vmul.f32 0.015625, %v176_v24 }
  0x2e   : > { %v179_v26 = vsub.f32 %v373_v2, %v178_v25  ;;  %v180_v27 = vsub.f32 %v374_v3, %v178_v25  ;;  %v181_v28 = vsub.f32 %v377_v4, %v178_v25  ;;  %v182_v29 = vsub.f32 %v378_v6, %v178_v25 }
  0x2f   : > { %v183_v30 = vsub.f32 %v381_v8, %v178_v25  ;;  %v184_v34 = vsub.f32 %v382_v11, %v178_v25  ;;  %v185_v37 = vsub.f32 %v385_v13, %v178_v25  ;;  %v186_v40 = vsub.f32 %v386_v15, %v178_v25 }
  0x30   : > { %v187_v31 = vmul.f32 %v179_v26, %v179_v26  ;;  %v188_v32 = vmul.f32 %v180_v27, %v180_v27  ;;  %v189_v33 = vmul.f32 %v181_v28, %v181_v28  ;;  %v190_v35 = vmul.f32 %v182_v29, %v182_v29 }
  0x31   : > { %v191_v38 = vmul.f32 %v183_v30, %v183_v30  ;;  %v192_v41 = vmul.f32 %v184_v34, %v184_v34  ;;  %v193_v43 = vmul.f32 %v185_v37, %v185_v37  ;;  %v194_v45 = vmul.f32 %v186_v40, %v186_v40 }
  0x32   : > { %v195_v36 = vadd.f32 %v188_v32, %v187_v31 }
  0x34   : > { %v196_v39 = vadd.f32 %v195_v36, %v189_v33 }
  0x36   : > { %v197_v42 = vadd.f32 %v196_v39, %v190_v35 }
  0x38   : > { %v198_v44 = vadd.f32 %v197_v42, %v191_v38 }
  0x3a   : > { %v199_v46 = vadd.f32 %v198_v44, %v192_v41 }
  0x3c   : > { %v200_v47 = vadd.f32 %v199_v46, %v193_v43 }
  0x3e   : > { %v201_v48 = vadd.f32 %v200_v47, %v194_v45 }
  0x40   : > { %v202_v49 = vrot.slane %v201_v48, 4 }
  0x42   : > { %v203_v50 = vadd.f32 %v202_v49, %v201_v48 }
  0x44   : > { %v204_v51 = vrot.slane %v203_v50, 2 }
  0x46   : > { %v205_v52 = vadd.f32 %v204_v51, %v203_v50 }
  0x48   : > { %v206_v53 = vrot.slane %v205_v52, 1 }
  0x4a   : > { %v207_v54 = vadd.f32 %v206_v53, %v205_v52 }
  0x4c   : > { %v208_v55 = vmul.f32 0.015625, %v207_v54 }
  0x4e   : > { %v209_v56 = vadd.f32 1e-05, %v208_v55 }
  0x50   : > { %437 = vrsqrt.f32 %v209_v56 }
  0x5d   : > { %v438_v57 = vpop.eup %437 }
  0x5e   : > { %v211_v58 = vmul.f32 %v438_v57, %v179_v26  ;;  %v212_v59 = vmul.f32 %v438_v57, %v180_v27  ;;  %v213_v60 = vmul.f32 %v438_v57, %v181_v28  ;;  %v214_v61 = vmul.f32 %v438_v57, %v182_v29 }
  0x5f   : > { %v215_v62 = vmul.f32 %v438_v57, %v183_v30  ;;  %v216_v63 = vmul.f32 %v438_v57, %v184_v34  ;;  %v217_v0 = vmul.f32 %v438_v57, %v185_v37  ;;  %v218_v1 = vmul.f32 %v438_v57, %v186_v40 }
  0x60   : > { %v390_v2 = vpack.c.bf16 %v212_v59, %v211_v58  ;;  %v395_v3 = vpack.c.bf16 %v214_v61, %v213_v60 }
  0x61   : > { %v400_v4 = vpack.c.bf16 %v216_v63, %v215_v62  ;;  %v405_v5 = vpack.c.bf16 %v218_v1, %v217_v0 }
  0x62   : > { %391 = vst [vmem:[%s147_s16] sm:$0xff] %v390_v2   ;;  %410 = vst [vmem:[%s147_s16 + $0x8] sm:$0xff] %v395_v3  }
  0x63   : > { %411 = vst [vmem:[%s147_s16 + $0x10] sm:$0xff] %v400_v4   ;;  %412 = vst [vmem:[%s147_s16 + $0x18] sm:$0xff] %v405_v5  }
  0x64 PF: > { %s11_s8 = sadd.s32 1, %s461_s8   ;;  %s515_s6 = smov %s457_s7 }
  0x65   : > { %p8_p5 = scmp.ge.s32.totalorder %s11_s8, 4   ;;  %s516_s7 = smov %s518_s9 }
  0x67   :  { %10 = sbr.rel (!%p8_p5) target bundleno = 2 (0x2), region = 54 }

// kernel: discriminator_forward.12
= control target key start
LH: loop header
LB: loop body
LE: loop exit
PB: predicated region body
PF: predicated region fallthrough
CT: control target
= control target key end

     0   :  { %s356_s6 = smov 0   ;;  %s358_s7 = smov 0   ;;  %s396_s0 = inlined_call_operand.vmem [shape: bf16[2,16,128], index: 0, kind: input, shape index: {}]   ;;  %s397_s1 = inlined_call_operand.vmem [shape: bf16[2,16,128], index: 1, kind: output, shape index: {}]  }
   0x1   :  { %s360_s8 = smov 0  }
   0x2 LB: > { %s23_s9 = sadd.s32 1, %s340_s7  ;;  %p274_p0 = scmp.ge.s32.totalorder %s344_s8, 1  ;;  %s344_s8 = sphi %s360_s8, %s11_s8   ;;  %s340_s7 = sphi %s358_s7, %s399_s7   ;;  %s336_s6 = sphi %s356_s6, %s398_s6  }
   0x3   : > { %p25_p1 = scmp.ge.s32.totalorder %s23_s9, 2  ;;  %p106_p2 = scmp.lt.s32.totalorder %s344_s8, 3 }
   0x5   : > { %s401_s9 = smov (%p25_p1, %s23_s9), 0  ;;  %p107_p3 = pnand %p274_p0, %p106_p2 }
   0x6   : > { %p132_p4 = scmp.lt.s32.totalorder (!%p107_p3), %s336_s6, 1 }
   0x7   : > { %110 = sbr.rel (%p107_p3) target bundleno = 75 (0x4b), region = 24 }
   0xc   : > { %s403_s6 = smov (!%p132_p4, %s336_s6), 1 }
   0xd   : > { %s283_s10 = sshll.u32 %s403_s6, 3 }
   0xe   : > { %s139_s13 = scalar_lea.vmem %s396_s0, %s283_s10  ;;  %s147_s16 = scalar_lea.vmem %s397_s1, %s283_s10 }
   0xf   : > { %v288_v0 = vld [vmem:[%s139_s13] sm:$0xff]  }
  0x10   : > { %v289_v1 = vunpack.c.l.bf16 %v288_v0  ;;  %v290_v2 = vunpack.c.h.bf16 %v288_v0 }
  0x12   : > { %v152_v3 = vadd.f32 %v290_v2, %v289_v1 }
  0x14   : > { %v153_v4 = vrot.slane %v152_v3, 4 }
  0x16   : > { %v154_v5 = vadd.f32 %v153_v4, %v152_v3 }
  0x18   : > { %v155_v6 = vrot.slane %v154_v5, 2 }
  0x1a   : > { %v156_v7 = vadd.f32 %v155_v6, %v154_v5 }
  0x1c   : > { %v157_v8 = vrot.slane %v156_v7, 1 }
  0x1e   : > { %v158_v9 = vadd.f32 %v157_v8, %v156_v7 }
  0x20   : > { %v160_v10 = vmul.f32 0.0625, %v158_v9 }
  0x22   : > { %v161_v11 = vsub.f32 %v289_v1, %v160_v10  ;;  %v162_v12 = vsub.f32 %v290_v2, %v160_v10 }
  0x24   : > { %v163_v13 = vmul.f32 %v161_v11, %v161_v11  ;;  %v164_v14 = vmul.f32 %v162_v12, %v162_v12 }
  0x26   : > { %v165_v15 = vadd.f32 %v164_v14, %v163_v13 }
  0x28   : > { %v166_v16 = vrot.slane %v165_v15, 4 }
  0x2a   : > { %v167_v17 = vadd.f32 %v166_v16, %v165_v15 }
  0x2c   : > { %v168_v18 = vrot.slane %v167_v17, 2 }
  0x2e   : > { %v169_v19 = vadd.f32 %v168_v18, %v167_v17 }
  0x30   : > { %v170_v20 = vrot.slane %v169_v19, 1 }
  0x32   : > { %v171_v21 = vadd.f32 %v170_v20, %v169_v19 }
  0x34   : > { %v172_v22 = vmul.f32 0.0625, %v171_v21 }
  0x36   : > { %v173_v23 = vadd.f32 1e-05, %v172_v22 }
  0x38   : > { %320 = vrsqrt.f32 %v173_v23 }
  0x45   : > { %v321_v24 = vpop.eup %320 }
  0x46   : > { %v175_v25 = vmul.f32 %v321_v24, %v161_v11  ;;  %v176_v26 = vmul.f32 %v321_v24, %v162_v12 }
  0x48   : > { %v294_v27 = vpack.c.bf16 %v176_v26, %v175_v25 }
  0x4a   : > { %295 = vst [vmem:[%s147_s16] sm:$0xff] %v294_v27  }
  0x4b PF: > { %s11_s8 = sadd.s32 1, %s344_s8   ;;  %s398_s6 = smov %s340_s7 }
  0x4c   : > { %p8_p5 = scmp.ge.s32.totalorder %s11_s8, 4   ;;  %s399_s7 = smov %s401_s9 }
  0x4e   :  { %10 = sbr.rel (!%p8_p5) target bundleno = 2 (0x2), region = 54 }

// kernel: discriminator_forward.9
= control target key start
LH: loop header
LB: loop body
LE: loop exit
PB: predicated region body
PF: predicated region fallthrough
CT: control target
= control target key end

     0   :  { %s4747_s1 = inlined_call_operand.vmem [shape: bf16[2048,128], index: 1, kind: input, shape index: {}]   ;;  %s4748_s0 = inlined_call_operand.vmem [shape: bf16[128,2048], index: 0, kind: input, shape index: {}]   ;;  %s4749_s2 = inlined_call_operand.vmem [shape: f32[1,128], index: 2, kind: input, shape index: {}]   ;;  %s4750_s3 = inlined_call_operand.vmem [shape: bf16[128,128], index: 3, kind: output, shape index: {}]  }
   0x1   :  { %v3570_v0 = vld [vmem:[%s4747_s1 + $0x78] sm:$0xff]   ;;  %v3574_v4 = vld [vmem:[%s4747_s1 + $0x70] sm:$0xff]   ;;  %v3578_v8 = vld [vmem:[%s4747_s1 + $0x68] sm:$0xff]  }
   0x2   :  { %v3571_v1 = vld [vmem:[%s4747_s1 + $0xf8] sm:$0xff]   ;;  %3058 = vmatprep.subr.bf16.mxu0 %v3570_v0  ;;  %v3575_v5 = vld [vmem:[%s4747_s1 + $0xf0] sm:$0xff]   ;;  %v3579_v9 = vld [vmem:[%s4747_s1 + $0xe8] sm:$0xff]  }
   0x3   :  { %v3572_v2 = vld [vmem:[%s4747_s1 + $0x38] sm:$0xff]   ;;  %3122 = vmatprep.subr.bf16.mxu1 %v3571_v1  ;;  %v3576_v6 = vld [vmem:[%s4747_s1 + $0x30] sm:$0xff]   ;;  %v3580_v10 = vld [vmem:[%s4747_s1 + $0x28] sm:$0xff]  }
   0x4   :  { %v3573_v3 = vld [vmem:[%s4747_s1 + $0xb8] sm:$0xff]   ;;  %3059 = vmatpush3.bf16.msra.mxu0 %v3572_v2  ;;  %v3577_v7 = vld [vmem:[%s4747_s1 + $0xb0] sm:$0xff]   ;;  %v3581_v11 = vld [vmem:[%s4747_s1 + $0xa8] sm:$0xff]  }
   0x5   :  { %3123 = vmatpush3.bf16.msra.mxu1 %v3573_v3  ;;  %3060 = vmatprep.subr.bf16.mxu0 %v3574_v4  ;;  %v3582_v12 = vld [vmem:[%s4747_s1 + $0x60] sm:$0xff]   ;;  %v3586_v16 = vld [vmem:[%s4747_s1 + $0x58] sm:$0xff]   ;;  %v3590_v20 = vld [vmem:[%s4747_s1 + $0x50] sm:$0xff]  }
   0x6   :  { %3124 = vmatprep.subr.bf16.mxu1 %v3575_v5  ;;  %v3583_v13 = vld [vmem:[%s4747_s1 + $0xe0] sm:$0xff]   ;;  %v3587_v17 = vld [vmem:[%s4747_s1 + $0xd8] sm:$0xff]   ;;  %v3591_v21 = vld [vmem:[%s4747_s1 + $0xd0] sm:$0xff]  }
   0x7   :  { %v3584_v14 = vld [vmem:[%s4747_s1 + $0x20] sm:$0xff]   ;;  %v3588_v18 = vld [vmem:[%s4747_s1 + $0x18] sm:$0xff]   ;;  %v3592_v22 = vld [vmem:[%s4747_s1 + $0x10] sm:$0xff]  }
   0x8   :  { %3061 = vmatpush3.bf16.msra.mxu0 %v3576_v6  ;;  %v3585_v15 = vld [vmem:[%s4747_s1 + $0xa0] sm:$0xff]   ;;  %v3589_v19 = vld [vmem:[%s4747_s1 + $0x98] sm:$0xff]   ;;  %v3593_v23 = vld [vmem:[%s4747_s1 + $0x90] sm:$0xff]  }
   0x9   :  { %3125 = vmatpush3.bf16.msra.mxu1 %v3577_v7  ;;  %3062 = vmatprep.subr.bf16.mxu0 %v3578_v8  ;;  %v3594_v24 = vld [vmem:[%s4747_s1 + $0x48] sm:$0xff]   ;;  %v3598_v28 = vld [vmem:[%s4747_s1 + $0x40] sm:$0xff]   ;;  %v3602_v40 = vld [vmem:[%s4747_s1 + $0x178] sm:$0xff]  }
   0xa   :  { %3126 = vmatprep.subr.bf16.mxu1 %v3579_v9  ;;  %v3595_v25 = vld [vmem:[%s4747_s1 + $0xc8] sm:$0xff]   ;;  %v3599_v29 = vld [vmem:[%s4747_s1 + $0xc0] sm:$0xff]   ;;  %v3603_v41 = vld [vmem:[%s4747_s1 + $0x138] sm:$0xff]  }
   0xb   :  { %v3596_v26 = vld [vmem:[%s4747_s1 + $0x8] sm:$0xff]   ;;  %v3600_v30 = vld [vmem:[%s4747_s1] sm:$0xff]   ;;  %v3604_v42 = vld [vmem:[%s4747_s1 + $0x1f8] sm:$0xff]  }
   0xc   :  { %3063 = vmatpush3.bf16.msra.mxu0 %v3580_v10  ;;  %v3597_v27 = vld [vmem:[%s4747_s1 + $0x88] sm:$0xff]   ;;  %v3601_v31 = vld [vmem:[%s4747_s1 + $0x80] sm:$0xff]   ;;  %v3605_v43 = vld [vmem:[%s4747_s1 + $0x1b8] sm:$0xff]  }
   0xd   :  { %3127 = vmatpush3.bf16.msra.mxu1 %v3581_v11  ;;  %3064 = vmatprep.subr.bf16.mxu0 %v3582_v12  ;;  %v15_v32 = vld [vmem:[%s4748_s0] sm:$0xff]  ;;  %v16_v34 = vld [vmem:[%s4748_s0 + $0x8] sm:$0xff]  ;;  %v3606_v50 = vld [vmem:[%s4747_s1 + $0x170] sm:$0xff]  }
   0xe   :  { %3128 = vmatprep.subr.bf16.mxu1 %v3583_v13  ;;  %v23_v33 = vld [vmem:[%s4748_s0 + $0x40] sm:$0xff]  ;;  %v24_v37 = vld [vmem:[%s4748_s0 + $0x48] sm:$0xff]  ;;  %v3607_v52 = vld [vmem:[%s4747_s1 + $0x130] sm:$0xff]  }
   0xf   :  { %v2723_v35 = vcombine.low %v15_v32, %v23_v33  ;;  %v2724_v36 = vcombine.high %v15_v32, %v23_v33  ;;  %v2725_v38 = vcombine.low %v16_v34, %v24_v37  ;;  %v2726_v39 = vcombine.high %v16_v34, %v24_v37  ;;  %v31_v44 = vld [vmem:[%s4748_s0 + $0x80] sm:$0xff]  ;;  %v32_v47 = vld [vmem:[%s4748_s0 + $0x88] sm:$0xff]  ;;  %v3608_v54 = vld [vmem:[%s4747_s1 + $0x1f0] sm:$0xff]  }
  0x10   :  { %3065 = vmatpush3.bf16.msra.mxu0 %v3584_v14  ;;  %v39_v45 = vld [vmem:[%s4748_s0 + $0xc0] sm:$0xff]  ;;  %v40_v48 = vld [vmem:[%s4748_s0 + $0xc8] sm:$0xff]  ;;  %v3609_v55 = vld [vmem:[%s4747_s1 + $0x1b0] sm:$0xff]  }
  0x11   :  { %3129 = vmatpush3.bf16.msra.mxu1 %v3585_v15  ;;  %3066 = vmatprep.subr.bf16.mxu0 %v3586_v16  ;;  %v2740_v46 = vcombine.high %v31_v44, %v39_v45  ;;  %v2742_v49 = vcombine.high %v32_v47, %v40_v48  ;;  %v2739_v51 = vcombine.low %v31_v44, %v39_v45  ;;  %v47_v56 = vld [vmem:[%s4748_s0 + $0x100] sm:$0xff]  ;;  %v48_v58 = vld [vmem:[%s4748_s0 + $0x108] sm:$0xff]  ;;  %v3624_v32 = vld [vmem:[%s4747_s1 + $0x1d0] sm:$0xff]  }
  0x12   :  { %3130 = vmatprep.subr.bf16.mxu1 %v3587_v17  ;;  %1846 = vmatprep.mubr.bf16.mxu0 %v2724_v36  ;;  %v2741_v53 = vcombine.low %v32_v47, %v40_v48  ;;  %v55_v57 = vld [vmem:[%s4748_s0 + $0x140] sm:$0xff]  ;;  %v56_v59 = vld [vmem:[%s4748_s0 + $0x148] sm:$0xff]  ;;  %v3625_v33 = vld [vmem:[%s4747_s1 + $0x190] sm:$0xff]  }
  0x13   :  { %1943 = vmatprep.mubr.bf16.mxu1 %v2726_v39  ;;  %v2756_v60 = vcombine.high %v47_v56, %v55_v57  ;;  %v2758_v61 = vcombine.high %v48_v58, %v56_v59  ;;  %v3610_v62 = vld [vmem:[%s4747_s1 + $0x168] sm:$0xff]   ;;  %v2755_v2 = vcombine.low %v47_v56, %v55_v57  ;;  %v63_v3 = vld [vmem:[%s4748_s0 + $0x180] sm:$0xff]  ;;  %v2757_v6 = vcombine.low %v48_v58, %v56_v59  ;;  %v3634_v56 = vld [vmem:[%s4747_s1 + $0x278] sm:$0xff]  }
  0x14   :  { %3067 = vmatpush3.bf16.msra.mxu0 %v3588_v18  ;;  %v3611_v63 = vld [vmem:[%s4747_s1 + $0x128] sm:$0xff]   ;;  %v71_v4 = vld [vmem:[%s4748_s0 + $0x1c0] sm:$0xff]  ;;  %v3618_v18 = vld [vmem:[%s4747_s1 + $0x158] sm:$0xff]  }
  0x15   :  { %3131 = vmatpush3.bf16.msra.mxu1 %v3589_v19  ;;  %3068 = vmatprep.subr.bf16.mxu0 %v3590_v20  ;;  %v3612_v0 = vld [vmem:[%s4747_s1 + $0x1e8] sm:$0xff]   ;;  %v2772_v7 = vcombine.high %v63_v3, %v71_v4  ;;  %v3614_v10 = vld [vmem:[%s4747_s1 + $0x160] sm:$0xff]   ;;  %v2771_v19 = vcombine.low %v63_v3, %v71_v4  ;;  %v3619_v20 = vld [vmem:[%s4747_s1 + $0x118] sm:$0xff]  }
  0x16   :  { %3132 = vmatprep.subr.bf16.mxu1 %v3591_v21  ;;  %v3613_v1 = vld [vmem:[%s4747_s1 + $0x1a8] sm:$0xff]   ;;  %v3615_v11 = vld [vmem:[%s4747_s1 + $0x120] sm:$0xff]   ;;  %v3636_v58 = vld [vmem:[%s4747_s1 + $0x2f8] sm:$0xff]  }
  0x17   :  { %v64_v5 = vld [vmem:[%s4748_s0 + $0x188] sm:$0xff]  ;;  %v3616_v12 = vld [vmem:[%s4747_s1 + $0x1e0] sm:$0xff]   ;;  %v26_v3 = vld [vmem:[%s4748_s0 + $0x58] sm:$0xff] }
  0x18   :  { %3069 = vmatpush3.bf16.msra.mxu0 %v3592_v22  ;;  %v72_v8 = vld [vmem:[%s4748_s0 + $0x1c8] sm:$0xff]  ;;  %v3617_v13 = vld [vmem:[%s4747_s1 + $0x1a0] sm:$0xff]  }
  0x19   :  { %3133 = vmatpush3.bf16.msra.mxu1 %v3593_v23  ;;  %3070 = vmatprep.subr.bf16.mxu0 %v3594_v24  ;;  %v2774_v9 = vcombine.high %v64_v5, %v72_v8  ;;  %v79_v14 = vld [vmem:[%s4748_s0 + $0x200] sm:$0xff]  ;;  %v80_v16 = vld [vmem:[%s4748_s0 + $0x208] sm:$0xff]  ;;  %v2773_v21 = vcombine.low %v64_v5, %v72_v8  ;;  %v3620_v23 = vld [vmem:[%s4747_s1 + $0x1d8] sm:$0xff]  }
  0x1a   :  { %3134 = vmatprep.subr.bf16.mxu1 %v3595_v25  ;;  %v87_v15 = vld [vmem:[%s4748_s0 + $0x240] sm:$0xff]  ;;  %v88_v17 = vld [vmem:[%s4748_s0 + $0x248] sm:$0xff]  ;;  %v3621_v25 = vld [vmem:[%s4747_s1 + $0x198] sm:$0xff]  }
  0x1b   :  { %v2788_v22 = vcombine.high %v79_v14, %v87_v15  ;;  %v2790_v24 = vcombine.high %v80_v16, %v88_v17  ;;  %v2787_v34 = vcombine.low %v79_v14, %v87_v15  ;;  %v3627_v39 = vld [vmem:[%s4747_s1 + $0x108] sm:$0xff]   ;;  %v3631_v48 = vld [vmem:[%s4747_s1 + $0x100] sm:$0xff]   ;;  %v33_v8 = vld [vmem:[%s4748_s0 + $0x90] sm:$0xff] }
  0x1c   :  { %3071 = vmatpush3.bf16.msra.mxu0 %v3596_v26  ;;  %v95_v26 = vld [vmem:[%s4748_s0 + $0x280] sm:$0xff]  ;;  %v112_v44 = vld [vmem:[%s4748_s0 + $0x308] sm:$0xff]  ;;  %v3637_v15 = vld [vmem:[%s4747_s1 + $0x2b8] sm:$0xff]  }
  0x1d   :  { %3135 = vmatpush3.bf16.msra.mxu1 %v3597_v27  ;;  %3072 = vmatprep.subr.bf16.mxu0 %v3598_v28  ;;  %v103_v27 = vld [vmem:[%s4748_s0 + $0x2c0] sm:$0xff]  ;;  %v3622_v28 = vld [vmem:[%s4747_s1 + $0x150] sm:$0xff]   ;;  %v120_v45 = vld [vmem:[%s4748_s0 + $0x348] sm:$0xff] }
  0x1e   :  { %3136 = vmatprep.subr.bf16.mxu1 %v3599_v29  ;;  %v96_v29 = vld [vmem:[%s4748_s0 + $0x288] sm:$0xff]  ;;  %v2804_v36 = vcombine.high %v95_v26, %v103_v27  ;;  %v2803_v47 = vcombine.low %v95_v26, %v103_v27 }
  0x1f   :  { %v128_v57 = vld [vmem:[%s4748_s0 + $0x388] sm:$0xff] }
  0x20   :  { %3073 = vmatpush3.bf16.msra.mxu0 %v3600_v30  ;;  %v104_v30 = vld [vmem:[%s4748_s0 + $0x2c8] sm:$0xff] }
  0x21   :  { %3137 = vmatpush3.bf16.msra.mxu1 %v3601_v31  ;;  %3186 = vmatprep.subr.bf16.mxu0 %v3602_v40  ;;  %v3623_v31 = vld [vmem:[%s4747_s1 + $0x110] sm:$0xff]   ;;  %v2806_v37 = vcombine.high %v96_v29, %v104_v30  ;;  %v3628_v40 = vld [vmem:[%s4747_s1 + $0x1c8] sm:$0xff]  }
  0x22   :  { %3250 = vmatprep.subr.bf16.mxu1 %v3604_v42  ;;  %v119_v42 = vld [vmem:[%s4748_s0 + $0x340] sm:$0xff]  ;;  %v136_v59 = vld [vmem:[%s4748_s0 + $0x3c8] sm:$0xff] }
  0x23   :  { %1847 = vmatmul.mubr.bf16.vlgmr.msra.gmra.mxu0 %v2723_v35  ;;  %v2789_v35 = vcombine.low %v80_v16, %v88_v17  ;;  %v2837_v5 = vcombine.low %v128_v57, %v136_v59  ;;  %v3638_v17 = vld [vmem:[%s4747_s1 + $0x270] sm:$0xff]   ;;  %v3642_v26 = vld [vmem:[%s4747_s1 + $0x268] sm:$0xff]  }
  0x24   :  { %1944 = vmatmul.mubr.bf16.vlgmr.msra.gmra.mxu1 %v2725_v38  ;;  %3187 = vmatpush3.bf16.msra.mxu0 %v3603_v41  ;;  %v3626_v38 = vld [vmem:[%s4747_s1 + $0x148] sm:$0xff]   ;;  %v111_v41 = vld [vmem:[%s4748_s0 + $0x300] sm:$0xff] }
  0x25   :  { %3251 = vmatpush3.bf16.msra.mxu1 %v3605_v43  ;;  %1854 = vmatprep.mubr.bf16.mxu0 %v2740_v46  ;;  %v3629_v43 = vld [vmem:[%s4747_s1 + $0x188] sm:$0xff]   ;;  %v3630_v46 = vld [vmem:[%s4747_s1 + $0x140] sm:$0xff]  }
  0x26   :  { %1951 = vmatprep.mubr.bf16.mxu1 %v2742_v49  ;;  %3188 = vmatprep.subr.bf16.mxu0 %v3606_v50  ;;  %v2805_v49 = vcombine.low %v96_v29, %v104_v30  ;;  %v2820_v50 = vcombine.high %v111_v41, %v119_v42  ;;  %v3644_v27 = vld [vmem:[%s4747_s1 + $0x2e8] sm:$0xff]  }
  0x27   :  { %3252 = vmatprep.subr.bf16.mxu1 %v3608_v54  ;;  %v127_v54 = vld [vmem:[%s4748_s0 + $0x380] sm:$0xff] }
  0x28   :  { %3189 = vmatpush3.bf16.msra.mxu0 %v3607_v52  ;;  %v2822_v52 = vcombine.high %v112_v44, %v120_v45 }
  0x29   :  { %3253 = vmatpush3.bf16.msra.mxu1 %v3609_v55  ;;  %3190 = vmatprep.subr.bf16.mxu0 %v3610_v62  ;;  %v135_v55 = vld [vmem:[%s4748_s0 + $0x3c0] sm:$0xff] }
  0x2a   :  { %3254 = vmatprep.subr.bf16.mxu1 %v3612_v0  ;;  %v2836_v62 = vcombine.high %v127_v54, %v135_v55  ;;  %v17_v0 = vld [vmem:[%s4748_s0 + $0x10] sm:$0xff]  ;;  %v2835_v4 = vcombine.low %v127_v54, %v135_v55  ;;  %v82_v54 = vld [vmem:[%s4748_s0 + $0x218] sm:$0xff] }
  0x2b   :  { %1855 = vmatmul.mubr.bf16.gmra.mxu0 %v2739_v51  ;;  %v3632_v51 = vld [vmem:[%s4747_s1 + $0x1c0] sm:$0xff]   ;;  %v90_v55 = vld [vmem:[%s4748_s0 + $0x258] sm:$0xff] }
  0x2c   :  { %1952 = vmatmul.mubr.bf16.gmra.mxu1 %v2741_v53  ;;  %1862 = vmatprep.mubr.bf16.mxu0 %v2756_v60  ;;  %v3633_v53 = vld [vmem:[%s4747_s1 + $0x180] sm:$0xff]   ;;  %v2819_v60 = vcombine.low %v111_v41, %v119_v42  ;;  %v3650_v42 = vld [vmem:[%s4747_s1 + $0x258] sm:$0xff]  }
  0x2d   :  { %1959 = vmatprep.mubr.bf16.mxu1 %v2758_v61  ;;  %3191 = vmatpush3.bf16.msra.mxu0 %v3611_v63  ;;  %v2821_v61 = vcombine.low %v112_v44, %v120_v45  ;;  %v2838_v63 = vcombine.high %v128_v57, %v136_v59  ;;  %v3649_v41 = vld [vmem:[%s4747_s1 + $0x2a0] sm:$0xff]   ;;  %v3652_v44 = vld [vmem:[%s4747_s1 + $0x2d8] sm:$0xff]   ;;  %v3657_v57 = vld [vmem:[%s4747_s1 + $0x290] sm:$0xff]  }
  0x2e   :  { %3255 = vmatpush3.bf16.msra.mxu1 %v3613_v1  ;;  %3192 = vmatprep.subr.bf16.mxu0 %v3614_v10  ;;  %v25_v1 = vld [vmem:[%s4748_s0 + $0x50] sm:$0xff] }
  0x2f   :  { %3256 = vmatprep.subr.bf16.mxu1 %v3616_v12  ;;  %v2727_v10 = vcombine.low %v17_v0, %v25_v1  ;;  %v34_v12 = vld [vmem:[%s4748_s0 + $0x98] sm:$0xff] }
  0x31   :  { %3193 = vmatpush3.bf16.msra.mxu0 %v3615_v11  ;;  %v3635_v11 = vld [vmem:[%s4747_s1 + $0x238] sm:$0xff]  }
  0x32   :  { %3257 = vmatpush3.bf16.msra.mxu1 %v3617_v13  ;;  %3194 = vmatprep.subr.bf16.mxu0 %v3618_v18  ;;  %v42_v13 = vld [vmem:[%s4748_s0 + $0xd8] sm:$0xff] }
  0x33   :  { %1863 = vmatmul.mubr.bf16.gmra.mxu0 %v2755_v2  ;;  %3258 = vmatprep.subr.bf16.mxu1 %v3620_v23  ;;  %v18_v2 = vld [vmem:[%s4748_s0 + $0x18] sm:$0xff]  ;;  %v2746_v18 = vcombine.high %v34_v12, %v42_v13  ;;  %v57_v23 = vld [vmem:[%s4748_s0 + $0x150] sm:$0xff]  ;;  %v2745_v29 = vcombine.low %v34_v12, %v42_v13  ;;  %v2793_v13 = vcombine.low %v82_v54, %v90_v55 }
  0x34   :  { %1960 = vmatmul.mubr.bf16.gmra.mxu1 %v2757_v6  ;;  %1870 = vmatprep.mubr.bf16.mxu0 %v2772_v7  ;;  %v2728_v6 = vcombine.high %v17_v0, %v25_v1  ;;  %v2730_v7 = vcombine.high %v18_v2, %v26_v3  ;;  %v2729_v14 = vcombine.low %v18_v2, %v26_v3  ;;  %v3659_v0 = vld [vmem:[%s4747_s1 + $0x208] sm:$0xff]   ;;  %v3662_v2 = vld [vmem:[%s4747_s1 + $0x240] sm:$0xff]   ;;  %v97_v3 = vld [vmem:[%s4748_s0 + $0x290] sm:$0xff] }
  0x35   :  { %1967 = vmatprep.mubr.bf16.mxu1 %v2774_v9  ;;  %3195 = vmatpush3.bf16.msra.mxu0 %v3619_v20  ;;  %v41_v9 = vld [vmem:[%s4748_s0 + $0xd0] sm:$0xff]  ;;  %v3661_v1 = vld [vmem:[%s4747_s1 + $0x288] sm:$0xff]   ;;  %v3668_v12 = vld [vmem:[%s4747_s1 + $0x3f8] sm:$0xff]  }
  0x36   :  { %3259 = vmatpush3.bf16.msra.mxu1 %v3621_v25  ;;  %3196 = vmatprep.subr.bf16.mxu0 %v3622_v28  ;;  %v2744_v16 = vcombine.high %v33_v8, %v41_v9  ;;  %v3640_v20 = vld [vmem:[%s4747_s1 + $0x2f0] sm:$0xff]   ;;  %v58_v25 = vld [vmem:[%s4748_s0 + $0x158] sm:$0xff]  ;;  %v2743_v28 = vcombine.low %v33_v8, %v41_v9  ;;  %v3663_v8 = vld [vmem:[%s4747_s1 + $0x200] sm:$0xff]  }
  0x37   :  { %3260 = vmatprep.subr.bf16.mxu1 %v3624_v32  ;;  %v3643_v32 = vld [vmem:[%s4747_s1 + $0x228] sm:$0xff]   ;;  %v3665_v9 = vld [vmem:[%s4747_s1 + $0x280] sm:$0xff]  }
  0x39   :  { %3197 = vmatpush3.bf16.msra.mxu0 %v3623_v31 }
  0x3a   :  { %3261 = vmatpush3.bf16.msra.mxu1 %v3625_v33  ;;  %3198 = vmatprep.subr.bf16.mxu0 %v3626_v38  ;;  %v3645_v33 = vld [vmem:[%s4747_s1 + $0x2a8] sm:$0xff]   ;;  %v66_v38 = vld [vmem:[%s4748_s0 + $0x198] sm:$0xff] }
  0x3b   :  { %1871 = vmatmul.mubr.bf16.gmra.mxu0 %v2771_v19  ;;  %3262 = vmatprep.subr.bf16.mxu1 %v3628_v40  ;;  %v3639_v19 = vld [vmem:[%s4747_s1 + $0x230] sm:$0xff]   ;;  %v3647_v40 = vld [vmem:[%s4747_s1 + $0x220] sm:$0xff]  }
  0x3c   :  { %1968 = vmatmul.mubr.bf16.gmra.mxu1 %v2773_v21  ;;  %1878 = vmatprep.mubr.bf16.mxu0 %v2788_v22  ;;  %v3641_v21 = vld [vmem:[%s4747_s1 + $0x2b0] sm:$0xff]  }
  0x3d   :  { %1975 = vmatprep.mubr.bf16.mxu1 %v2790_v24  ;;  %3199 = vmatpush3.bf16.msra.mxu0 %v3627_v39  ;;  %v49_v22 = vld [vmem:[%s4748_s0 + $0x110] sm:$0xff]  ;;  %v50_v24 = vld [vmem:[%s4748_s0 + $0x118] sm:$0xff] }
  0x3e   :  { %3263 = vmatpush3.bf16.msra.mxu1 %v3629_v43  ;;  %3200 = vmatprep.subr.bf16.mxu0 %v3630_v46  ;;  %v2760_v30 = vcombine.high %v49_v22, %v57_v23  ;;  %v2762_v31 = vcombine.high %v50_v24, %v58_v25  ;;  %v74_v39 = vld [vmem:[%s4748_s0 + $0x1d8] sm:$0xff]  ;;  %v2759_v43 = vcombine.low %v49_v22, %v57_v23 }
  0x3f   :  { %3264 = vmatprep.subr.bf16.mxu1 %v3632_v51  ;;  %v2761_v45 = vcombine.low %v50_v24, %v58_v25  ;;  %v81_v51 = vld [vmem:[%s4748_s0 + $0x210] sm:$0xff] }
  0x40   :  { %v129_v24 = vld [vmem:[%s4748_s0 + $0x390] sm:$0xff] }
  0x41   :  { %3201 = vmatpush3.bf16.msra.mxu0 %v3631_v48  ;;  %v2778_v48 = vcombine.high %v66_v38, %v74_v39  ;;  %v137_v25 = vld [vmem:[%s4748_s0 + $0x3d0] sm:$0xff] }
  0x42   :  { %3265 = vmatpush3.bf16.msra.mxu1 %v3633_v53  ;;  %3314 = vmatprep.subr.bf16.mxu0 %v3634_v56  ;;  %v89_v53 = vld [vmem:[%s4748_s0 + $0x250] sm:$0xff] }
  0x43   :  { %1879 = vmatmul.mubr.bf16.gmra.mxu0 %v2787_v34  ;;  %3378 = vmatprep.subr.bf16.mxu1 %v3636_v58  ;;  %v3646_v34 = vld [vmem:[%s4747_s1 + $0x260] sm:$0xff]   ;;  %v3655_v56 = vld [vmem:[%s4747_s1 + $0x210] sm:$0xff]   ;;  %v3658_v58 = vld [vmem:[%s4747_s1 + $0x248] sm:$0xff]  }
  0x44   :  { %1976 = vmatmul.mubr.bf16.gmra.mxu1 %v2789_v35  ;;  %1886 = vmatprep.mubr.bf16.mxu0 %v2804_v36  ;;  %v65_v35 = vld [vmem:[%s4748_s0 + $0x190] sm:$0xff] }
  0x45   :  { %1983 = vmatprep.mubr.bf16.mxu1 %v2806_v37  ;;  %v73_v36 = vld [vmem:[%s4748_s0 + $0x1d0] sm:$0xff]  ;;  %v3648_v37 = vld [vmem:[%s4747_s1 + $0x2e0] sm:$0xff]  }
  0x46   :  { %v2776_v46 = vcombine.high %v65_v35, %v73_v36  ;;  %v2775_v59 = vcombine.low %v65_v35, %v73_v36  ;;  %v28_v35 = vld [vmem:[%s4748_s0 + $0x68] sm:$0xff]  ;;  %v2839_v36 = vcombine.low %v129_v24, %v137_v25 }
  0x4b   :  { %1887 = vmatmul.mubr.bf16.gmra.mxu0 %v2803_v47  ;;  %v3651_v47 = vld [vmem:[%s4747_s1 + $0x218] sm:$0xff]  }
  0x4c   :  { %1984 = vmatmul.mubr.bf16.gmra.mxu1 %v2805_v49  ;;  %1894 = vmatprep.mubr.bf16.mxu0 %v2820_v50  ;;  %v3653_v49 = vld [vmem:[%s4747_s1 + $0x298] sm:$0xff]   ;;  %v3654_v50 = vld [vmem:[%s4747_s1 + $0x250] sm:$0xff]  }
  0x4d   :  { %1991 = vmatprep.mubr.bf16.mxu1 %v2822_v52  ;;  %v3656_v52 = vld [vmem:[%s4747_s1 + $0x2d0] sm:$0xff]  }
  0x53   :  { %1895 = vmatmul.mubr.bf16.gmra.mxu0 %v2819_v60  ;;  %v3660_v60 = vld [vmem:[%s4747_s1 + $0x2c8] sm:$0xff]  }
  0x54   :  { %1992 = vmatmul.mubr.bf16.gmra.mxu1 %v2821_v61  ;;  %1902 = vmatprep.mubr.bf16.mxu0 %v2836_v62  ;;  %v2777_v61 = vcombine.low %v66_v38, %v74_v39  ;;  %v2792_v62 = vcombine.high %v81_v51, %v89_v53 }
  0x55   :  { %1999 = vmatprep.mubr.bf16.mxu1 %v2838_v63  ;;  %v2794_v63 = vcombine.high %v82_v54, %v90_v55  ;;  %v51_v54 = vld [vmem:[%s4748_s0 + $0x120] sm:$0xff] }
  0x56   :  { %v59_v55 = vld [vmem:[%s4748_s0 + $0x160] sm:$0xff] }
  0x5b   :  { %1903 = vmatmul.mubr.bf16.gmra.mxu0 %v2835_v4  ;;  %v105_v4 = vld [vmem:[%s4748_s0 + $0x2d0] sm:$0xff] }
  0x5c   :  { %2000 = vmatmul.mubr.bf16.gmra.mxu1 %v2837_v5  ;;  %2040 = vmatprep.mubr.bf16.mxu0 %v2728_v6  ;;  %v3664_v5 = vld [vmem:[%s4747_s1 + $0x2c0] sm:$0xff]   ;;  %v98_v6 = vld [vmem:[%s4748_s0 + $0x298] sm:$0xff] }
  0x5d   :  { %2137 = vmatprep.mubr.bf16.mxu1 %v2730_v7  ;;  %v106_v7 = vld [vmem:[%s4748_s0 + $0x2d8] sm:$0xff] }
  0x63   :  { %2041 = vmatmul.mubr.bf16.vlgmr.msra.gmra.mxu0 %v2727_v10  ;;  %v3666_v10 = vld [vmem:[%s4747_s1 + $0x378] sm:$0xff]  }
  0x64   :  { %2138 = vmatmul.mubr.bf16.vlgmr.msra.gmra.mxu1 %v2729_v14  ;;  %3315 = vmatpush3.bf16.msra.mxu0 %v3635_v11  ;;  %v2791_v11 = vcombine.low %v81_v51, %v89_v53  ;;  %v2808_v14 = vcombine.high %v97_v3, %v105_v4  ;;  %v3672_v51 = vld [vmem:[%s4747_s1 + $0x3f0] sm:$0xff]  }
  0x65   :  { %3379 = vmatpush3.bf16.msra.mxu1 %v3637_v15  ;;  %2048 = vmatprep.mubr.bf16.mxu0 %v2744_v16  ;;  %v2810_v15 = vcombine.high %v98_v6, %v106_v7  ;;  %v113_v16 = vld [vmem:[%s4748_s0 + $0x310] sm:$0xff] }
  0x66   :  { %2145 = vmatprep.mubr.bf16.mxu1 %v2746_v18  ;;  %3316 = vmatprep.subr.bf16.mxu0 %v3638_v17  ;;  %v121_v17 = vld [vmem:[%s4748_s0 + $0x350] sm:$0xff]  ;;  %v114_v18 = vld [vmem:[%s4748_s0 + $0x318] sm:$0xff] }
  0x67   :  { %3380 = vmatprep.subr.bf16.mxu1 %v3640_v20  ;;  %v2807_v20 = vcombine.low %v97_v3, %v105_v4  ;;  %v2824_v22 = vcombine.high %v113_v16, %v121_v17  ;;  %v3673_v53 = vld [vmem:[%s4747_s1 + $0x3b0] sm:$0xff]   ;;  %v3680_v3 = vld [vmem:[%s4747_s1 + $0x3e0] sm:$0xff]  }
  0x68   :  { %3317 = vmatpush3.bf16.msra.mxu0 %v3639_v19  ;;  %v122_v19 = vld [vmem:[%s4748_s0 + $0x358] sm:$0xff]  ;;  %v67_v4 = vld [vmem:[%s4748_s0 + $0x1a0] sm:$0xff] }
  0x69   :  { %3381 = vmatpush3.bf16.msra.mxu1 %v3641_v21  ;;  %3318 = vmatprep.subr.bf16.mxu0 %v3642_v26  ;;  %v2809_v21 = vcombine.low %v98_v6, %v106_v7  ;;  %v2826_v23 = vcombine.high %v114_v18, %v122_v19  ;;  %v130_v26 = vld [vmem:[%s4748_s0 + $0x398] sm:$0xff]  ;;  %v68_v6 = vld [vmem:[%s4748_s0 + $0x1a8] sm:$0xff]  ;;  %v3679_v7 = vld [vmem:[%s4747_s1 + $0x320] sm:$0xff]  }
  0x6a   :  { %3382 = vmatprep.subr.bf16.mxu1 %v3644_v27  ;;  %v138_v27 = vld [vmem:[%s4748_s0 + $0x3d8] sm:$0xff] }
  0x6b   :  { %2049 = vmatmul.mubr.bf16.gmra.mxu0 %v2743_v28  ;;  %v2823_v28 = vcombine.low %v113_v16, %v121_v17  ;;  %v3683_v16 = vld [vmem:[%s4747_s1 + $0x318] sm:$0xff]  }
  0x6c   :  { %2146 = vmatmul.mubr.bf16.gmra.mxu1 %v2745_v29  ;;  %2056 = vmatprep.mubr.bf16.mxu0 %v2760_v30  ;;  %v2825_v29 = vcombine.low %v114_v18, %v122_v19  ;;  %v2840_v30 = vcombine.high %v129_v24, %v137_v25  ;;  %v3685_v17 = vld [vmem:[%s4747_s1 + $0x398] sm:$0xff]   ;;  %v3686_v18 = vld [vmem:[%s4747_s1 + $0x350] sm:$0xff]   ;;  %v92_v24 = vld [vmem:[%s4748_s0 + $0x268] sm:$0xff] }
  0x6d   :  { %2153 = vmatprep.mubr.bf16.mxu1 %v2762_v31  ;;  %3319 = vmatpush3.bf16.msra.mxu0 %v3643_v32  ;;  %v2842_v31 = vcombine.high %v130_v26, %v138_v27  ;;  %v19_v32 = vld [vmem:[%s4748_s0 + $0x20] sm:$0xff]  ;;  %v3688_v19 = vld [vmem:[%s4747_s1 + $0x3d0] sm:$0xff]  }
  0x6e   :  { %3383 = vmatpush3.bf16.msra.mxu1 %v3645_v33  ;;  %3320 = vmatprep.subr.bf16.mxu0 %v3646_v34  ;;  %v27_v33 = vld [vmem:[%s4748_s0 + $0x60] sm:$0xff]  ;;  %v20_v34 = vld [vmem:[%s4748_s0 + $0x28] sm:$0xff]  ;;  %v3689_v25 = vld [vmem:[%s4747_s1 + $0x390] sm:$0xff]  }
  0x6f   :  { %3384 = vmatprep.subr.bf16.mxu1 %v3648_v37  ;;  %v2841_v37 = vcombine.low %v130_v26, %v138_v27  ;;  %v2732_v38 = vcombine.high %v19_v32, %v27_v33  ;;  %v2734_v39 = vcombine.high %v20_v34, %v28_v35  ;;  %v3690_v26 = vld [vmem:[%s4747_s1 + $0x348] sm:$0xff]  }
  0x71   :  { %3321 = vmatpush3.bf16.msra.mxu0 %v3647_v40  ;;  %v35_v40 = vld [vmem:[%s4748_s0 + $0xa0] sm:$0xff] }
  0x72   :  { %3385 = vmatpush3.bf16.msra.mxu1 %v3649_v41  ;;  %3322 = vmatprep.subr.bf16.mxu0 %v3650_v42  ;;  %v43_v41 = vld [vmem:[%s4748_s0 + $0xe0] sm:$0xff]  ;;  %v2731_v42 = vcombine.low %v19_v32, %v27_v33  ;;  %v3691_v32 = vld [vmem:[%s4747_s1 + $0x308] sm:$0xff]  }
  0x73   :  { %2057 = vmatmul.mubr.bf16.gmra.mxu0 %v2759_v43  ;;  %3386 = vmatprep.subr.bf16.mxu1 %v3652_v44  ;;  %v36_v43 = vld [vmem:[%s4748_s0 + $0xa8] sm:$0xff] }
  0x74   :  { %2154 = vmatmul.mubr.bf16.gmra.mxu1 %v2761_v45  ;;  %2064 = vmatprep.mubr.bf16.mxu0 %v2776_v46  ;;  %v44_v44 = vld [vmem:[%s4748_s0 + $0xe8] sm:$0xff]  ;;  %v2733_v45 = vcombine.low %v20_v34, %v28_v35  ;;  %v3667_v46 = vld [vmem:[%s4747_s1 + $0x338] sm:$0xff]   ;;  %v3694_v34 = vld [vmem:[%s4747_s1 + $0x340] sm:$0xff]  }
  0x75   :  { %2161 = vmatprep.mubr.bf16.mxu1 %v2778_v48  ;;  %3323 = vmatpush3.bf16.msra.mxu0 %v3651_v47  ;;  %v3669_v47 = vld [vmem:[%s4747_s1 + $0x3b8] sm:$0xff]   ;;  %v2748_v48 = vcombine.high %v35_v40, %v43_v41  ;;  %v3693_v33 = vld [vmem:[%s4747_s1 + $0x388] sm:$0xff]   ;;  %v3696_v35 = vld [vmem:[%s4747_s1 + $0x3c0] sm:$0xff]  }
  0x76   :  { %3387 = vmatpush3.bf16.msra.mxu1 %v3653_v49  ;;  %3324 = vmatprep.subr.bf16.mxu0 %v3654_v50  ;;  %v2750_v49 = vcombine.high %v36_v43, %v44_v44  ;;  %v3670_v50 = vld [vmem:[%s4747_s1 + $0x370] sm:$0xff]  }
  0x77   :  { %3388 = vmatprep.subr.bf16.mxu1 %v3656_v52  ;;  %v3671_v52 = vld [vmem:[%s4747_s1 + $0x330] sm:$0xff]  }
  0x79   :  { %3325 = vmatpush3.bf16.msra.mxu0 %v3655_v56  ;;  %v3674_v56 = vld [vmem:[%s4747_s1 + $0x368] sm:$0xff]  }
  0x7a   :  { %3389 = vmatpush3.bf16.msra.mxu1 %v3657_v57  ;;  %3326 = vmatprep.subr.bf16.mxu0 %v3658_v58  ;;  %v52_v57 = vld [vmem:[%s4748_s0 + $0x128] sm:$0xff] }
  0x7b   :  { %2065 = vmatmul.mubr.bf16.gmra.mxu0 %v2775_v59  ;;  %3390 = vmatprep.subr.bf16.mxu1 %v3660_v60  ;;  %v60_v58 = vld [vmem:[%s4748_s0 + $0x168] sm:$0xff]  ;;  %v2747_v60 = vcombine.low %v35_v40, %v43_v41  ;;  %v3697_v41 = vld [vmem:[%s4747_s1 + $0x380] sm:$0xff]  }
  0x7c   :  { %2162 = vmatmul.mubr.bf16.gmra.mxu1 %v2777_v61  ;;  %2072 = vmatprep.mubr.bf16.mxu0 %v2792_v62  ;;  %v3676_v59 = vld [vmem:[%s4747_s1 + $0x3e8] sm:$0xff]   ;;  %v2749_v61 = vcombine.low %v36_v43, %v44_v44  ;;  %v2764_v62 = vcombine.high %v51_v54, %v59_v55 }
  0x7d   :  { %2169 = vmatprep.mubr.bf16.mxu1 %v2794_v63  ;;  %3327 = vmatpush3.bf16.msra.mxu0 %v3659_v0  ;;  %v2766_v63 = vcombine.high %v52_v57, %v60_v58  ;;  %v3675_v0 = vld [vmem:[%s4747_s1 + $0x328] sm:$0xff]  }
  0x7e   :  { %3391 = vmatpush3.bf16.msra.mxu1 %v3661_v1  ;;  %3328 = vmatprep.subr.bf16.mxu0 %v3662_v2  ;;  %v3677_v1 = vld [vmem:[%s4747_s1 + $0x3a8] sm:$0xff]   ;;  %v3678_v2 = vld [vmem:[%s4747_s1 + $0x360] sm:$0xff]  }
  0x7f   :  { %3392 = vmatprep.subr.bf16.mxu1 %v3664_v5  ;;  %v75_v5 = vld [vmem:[%s4748_s0 + $0x1e0] sm:$0xff]  ;;  %v108_v40 = vld [vmem:[%s4748_s0 + $0x2e8] sm:$0xff] }
  0x80   :  { %v2779_v27 = vcombine.low %v67_v4, %v75_v5 }
  0x81   :  { %3329 = vmatpush3.bf16.msra.mxu0 %v3663_v8  ;;  %v76_v8 = vld [vmem:[%s4748_s0 + $0x1e8] sm:$0xff] }
  0x82   :  { %3393 = vmatpush3.bf16.msra.mxu1 %v3665_v9  ;;  %3442 = vmatprep.subr.bf16.mxu0 %v3666_v10  ;;  %v3681_v9 = vld [vmem:[%s4747_s1 + $0x3a0] sm:$0xff]   ;;  %v3682_v10 = vld [vmem:[%s4747_s1 + $0x358] sm:$0xff]  }
  0x83   :  { %2073 = vmatmul.mubr.bf16.gmra.mxu0 %v2791_v11  ;;  %3506 = vmatprep.subr.bf16.mxu1 %v3668_v12  ;;  %v2763_v11 = vcombine.low %v51_v54, %v59_v55  ;;  %v3684_v12 = vld [vmem:[%s4747_s1 + $0x3d8] sm:$0xff]   ;;  %v131_v54 = vld [vmem:[%s4748_s0 + $0x3a0] sm:$0xff] }
  0x84   :  { %2170 = vmatmul.mubr.bf16.gmra.mxu1 %v2793_v13  ;;  %2080 = vmatprep.mubr.bf16.mxu0 %v2808_v14  ;;  %v2765_v13 = vcombine.low %v52_v57, %v60_v58  ;;  %v2780_v14 = vcombine.high %v67_v4, %v75_v5  ;;  %v139_v55 = vld [vmem:[%s4748_s0 + $0x3e0] sm:$0xff]  ;;  %v140_v57 = vld [vmem:[%s4748_s0 + $0x3e8] sm:$0xff] }
  0x85   :  { %2177 = vmatprep.mubr.bf16.mxu1 %v2810_v15  ;;  %v2782_v15 = vcombine.high %v68_v6, %v76_v8 }
  0x8b   :  { %2081 = vmatmul.mubr.bf16.gmra.mxu0 %v2807_v20  ;;  %v83_v20 = vld [vmem:[%s4748_s0 + $0x220] sm:$0xff] }
  0x8c   :  { %2178 = vmatmul.mubr.bf16.gmra.mxu1 %v2809_v21  ;;  %2088 = vmatprep.mubr.bf16.mxu0 %v2824_v22  ;;  %v91_v21 = vld [vmem:[%s4748_s0 + $0x260] sm:$0xff]  ;;  %v84_v22 = vld [vmem:[%s4748_s0 + $0x228] sm:$0xff] }
  0x8d   :  { %2185 = vmatprep.mubr.bf16.mxu1 %v2826_v23  ;;  %v3687_v23 = vld [vmem:[%s4747_s1 + $0x310] sm:$0xff]   ;;  %v2797_v43 = vcombine.low %v84_v22, %v92_v24 }
  0x93   :  { %2089 = vmatmul.mubr.bf16.gmra.mxu0 %v2823_v28  ;;  %v3692_v28 = vld [vmem:[%s4747_s1 + $0x3c8] sm:$0xff]  }
  0x94   :  { %2186 = vmatmul.mubr.bf16.gmra.mxu1 %v2825_v29  ;;  %2096 = vmatprep.mubr.bf16.mxu0 %v2840_v30  ;;  %v2781_v29 = vcombine.low %v68_v6, %v76_v8  ;;  %v2796_v30 = vcombine.high %v83_v20, %v91_v21  ;;  %v37_v6 = vld [vmem:[%s4748_s0 + $0xb0] sm:$0xff]  ;;  %v38_v8 = vld [vmem:[%s4748_s0 + $0xb8] sm:$0xff] }
  0x95   :  { %2193 = vmatprep.mubr.bf16.mxu1 %v2842_v31  ;;  %v2798_v31 = vcombine.high %v84_v22, %v92_v24  ;;  %v54_v22 = vld [vmem:[%s4748_s0 + $0x138] sm:$0xff] }
  0x9b   :  { %2097 = vmatmul.mubr.bf16.gmra.mxu0 %v2839_v36  ;;  %v99_v36 = vld [vmem:[%s4748_s0 + $0x2a0] sm:$0xff] }
  0x9c   :  { %2194 = vmatmul.mubr.bf16.gmra.mxu1 %v2841_v37  ;;  %2234 = vmatprep.mubr.bf16.mxu0 %v2732_v38  ;;  %v107_v37 = vld [vmem:[%s4748_s0 + $0x2e0] sm:$0xff] }
  0x9d   :  { %2331 = vmatprep.mubr.bf16.mxu1 %v2734_v39  ;;  %v3695_v38 = vld [vmem:[%s4747_s1 + $0x300] sm:$0xff]   ;;  %v100_v39 = vld [vmem:[%s4748_s0 + $0x2a8] sm:$0xff]  ;;  %v2812_v44 = vcombine.high %v99_v36, %v107_v37 }
  0xa3   :  { %2235 = vmatmul.mubr.bf16.vlgmr.msra.gmra.mxu0 %v2731_v42  ;;  %v2795_v42 = vcombine.low %v83_v20, %v91_v21 }
  0xa4   :  { %2332 = vmatmul.mubr.bf16.vlgmr.msra.gmra.mxu1 %v2733_v45  ;;  %3443 = vmatpush3.bf16.msra.mxu0 %v3667_v46  ;;  %v2814_v45 = vcombine.high %v100_v39, %v108_v40  ;;  %v115_v46 = vld [vmem:[%s4748_s0 + $0x320] sm:$0xff] }
  0xa5   :  { %3507 = vmatpush3.bf16.msra.mxu1 %v3669_v47  ;;  %2242 = vmatprep.mubr.bf16.mxu0 %v2748_v48  ;;  %v123_v47 = vld [vmem:[%s4748_s0 + $0x360] sm:$0xff]  ;;  %v116_v48 = vld [vmem:[%s4748_s0 + $0x328] sm:$0xff] }
  0xa6   :  { %2339 = vmatprep.mubr.bf16.mxu1 %v2750_v49  ;;  %3444 = vmatprep.subr.bf16.mxu0 %v3670_v50  ;;  %v124_v49 = vld [vmem:[%s4748_s0 + $0x368] sm:$0xff]  ;;  %v2811_v50 = vcombine.low %v99_v36, %v107_v37  ;;  %v2827_v58 = vcombine.low %v115_v46, %v123_v47 }
  0xa7   :  { %3508 = vmatprep.subr.bf16.mxu1 %v3672_v51  ;;  %v2813_v51 = vcombine.low %v100_v39, %v108_v40 }
  0xa8   :  { %3445 = vmatpush3.bf16.msra.mxu0 %v3671_v52  ;;  %v2828_v52 = vcombine.high %v115_v46, %v123_v47  ;;  %v70_v46 = vld [vmem:[%s4748_s0 + $0x1b8] sm:$0xff] }
  0xa9   :  { %3509 = vmatpush3.bf16.msra.mxu1 %v3673_v53  ;;  %3446 = vmatprep.subr.bf16.mxu0 %v3674_v56  ;;  %v2830_v53 = vcombine.high %v116_v48, %v124_v49  ;;  %v132_v56 = vld [vmem:[%s4748_s0 + $0x3a8] sm:$0xff]  ;;  %v78_v47 = vld [vmem:[%s4748_s0 + $0x1f8] sm:$0xff] }
  0xaa   :  { %3510 = vmatprep.subr.bf16.mxu1 %v3676_v59  ;;  %v2829_v59 = vcombine.low %v116_v48, %v124_v49 }
  0xab   :  { %2243 = vmatmul.mubr.bf16.gmra.mxu0 %v2747_v60  ;;  %v2844_v60 = vcombine.high %v131_v54, %v139_v55 }
  0xac   :  { %2340 = vmatmul.mubr.bf16.gmra.mxu1 %v2749_v61  ;;  %2250 = vmatprep.mubr.bf16.mxu0 %v2764_v62  ;;  %v2846_v61 = vcombine.high %v132_v56, %v140_v57  ;;  %v21_v62 = vld [vmem:[%s4748_s0 + $0x30] sm:$0xff] }
  0xad   :  { %2347 = vmatprep.mubr.bf16.mxu1 %v2766_v63  ;;  %3447 = vmatpush3.bf16.msra.mxu0 %v3675_v0  ;;  %v29_v63 = vld [vmem:[%s4748_s0 + $0x70] sm:$0xff]  ;;  %v22_v0 = vld [vmem:[%s4748_s0 + $0x38] sm:$0xff] }
  0xae   :  { %3511 = vmatpush3.bf16.msra.mxu1 %v3677_v1  ;;  %3448 = vmatprep.subr.bf16.mxu0 %v3678_v2  ;;  %v30_v1 = vld [vmem:[%s4748_s0 + $0x78] sm:$0xff]  ;;  %v2843_v2 = vcombine.low %v131_v54, %v139_v55  ;;  %v2736_v4 = vcombine.high %v21_v62, %v29_v63 }
  0xaf   :  { %3512 = vmatprep.subr.bf16.mxu1 %v3680_v3  ;;  %v2845_v3 = vcombine.low %v132_v56, %v140_v57  ;;  %v2738_v5 = vcombine.high %v22_v0, %v30_v1  ;;  %v2786_v56 = vcombine.high %v70_v46, %v78_v47 }
  0xb1   :  { %3449 = vmatpush3.bf16.msra.mxu0 %v3679_v7  ;;  %v45_v7 = vld [vmem:[%s4748_s0 + $0xf0] sm:$0xff] }
  0xb2   :  { %3513 = vmatpush3.bf16.msra.mxu1 %v3681_v9  ;;  %3450 = vmatprep.subr.bf16.mxu0 %v3682_v10  ;;  %v46_v9 = vld [vmem:[%s4748_s0 + $0xf8] sm:$0xff]  ;;  %v2735_v10 = vcombine.low %v21_v62, %v29_v63 }
  0xb3   :  { %2251 = vmatmul.mubr.bf16.gmra.mxu0 %v2763_v11  ;;  %3514 = vmatprep.subr.bf16.mxu1 %v3684_v12  ;;  %v2737_v11 = vcombine.low %v22_v0, %v30_v1  ;;  %v2752_v12 = vcombine.high %v37_v6, %v45_v7  ;;  %v85_v1 = vld [vmem:[%s4748_s0 + $0x230] sm:$0xff] }
  0xb4   :  { %2348 = vmatmul.mubr.bf16.gmra.mxu1 %v2765_v13  ;;  %2258 = vmatprep.mubr.bf16.mxu0 %v2780_v14  ;;  %v2754_v13 = vcombine.high %v38_v8, %v46_v9 }
  0xb5   :  { %2355 = vmatprep.mubr.bf16.mxu1 %v2782_v15  ;;  %3451 = vmatpush3.bf16.msra.mxu0 %v3683_v16  ;;  %v4417_v16 = vld [vmem:[%s4749_s2] ss:$0 sm:$0xff] }
  0xb6   :  { %3515 = vmatpush3.bf16.msra.mxu1 %v3685_v17  ;;  %3452 = vmatprep.subr.bf16.mxu0 %v3686_v18  ;;  %v53_v18 = vld [vmem:[%s4748_s0 + $0x130] sm:$0xff] }
  0xb7   :  { %3516 = vmatprep.subr.bf16.mxu1 %v3688_v19  ;;  %v61_v19 = vld [vmem:[%s4748_s0 + $0x170] sm:$0xff] }
  0xb9   :  { %3453 = vmatpush3.bf16.msra.mxu0 %v3687_v23  ;;  %v62_v23 = vld [vmem:[%s4748_s0 + $0x178] sm:$0xff] }
  0xba   :  { %3517 = vmatpush3.bf16.msra.mxu1 %v3689_v25  ;;  %3454 = vmatprep.subr.bf16.mxu0 %v3690_v26  ;;  %v2751_v26 = vcombine.low %v37_v6, %v45_v7  ;;  %v86_v6 = vld [vmem:[%s4748_s0 + $0x238] sm:$0xff] }
  0xbb   :  { %2259 = vmatmul.mubr.bf16.gmra.mxu0 %v2779_v27  ;;  %3518 = vmatprep.subr.bf16.mxu1 %v3692_v28  ;;  %v94_v7 = vld [vmem:[%s4748_s0 + $0x278] sm:$0xff] }
  0xbc   :  { %2356 = vmatmul.mubr.bf16.gmra.mxu1 %v2781_v29  ;;  %2266 = vmatprep.mubr.bf16.mxu0 %v2796_v30  ;;  %v2753_v29 = vcombine.low %v38_v8, %v46_v9  ;;  %v2768_v30 = vcombine.high %v53_v18, %v61_v19 }
  0xbd   :  { %2363 = vmatprep.mubr.bf16.mxu1 %v2798_v31  ;;  %3455 = vmatpush3.bf16.msra.mxu0 %v3691_v32  ;;  %v2770_v32 = vcombine.high %v54_v22, %v62_v23 }
  0xbe   :  { %3519 = vmatpush3.bf16.msra.mxu1 %v3693_v33  ;;  %3456 = vmatprep.subr.bf16.mxu0 %v3694_v34 }
  0xbf   :  { %3520 = vmatprep.subr.bf16.mxu1 %v3696_v35 }
  0xc1   :  { %3457 = vmatpush3.bf16.msra.mxu0 %v3695_v38 }
  0xc2   :  { %3521 = vmatpush3.bf16.msra.mxu1 %v3697_v41  ;;  %v69_v41 = vld [vmem:[%s4748_s0 + $0x1b0] sm:$0xff] }
  0xc3   :  { %2267 = vmatmul.mubr.bf16.gmra.mxu0 %v2795_v42  ;;  %v77_v42 = vld [vmem:[%s4748_s0 + $0x1f0] sm:$0xff] }
  0xc4   :  { %2364 = vmatmul.mubr.bf16.gmra.mxu1 %v2797_v43  ;;  %2274 = vmatprep.mubr.bf16.mxu0 %v2812_v44  ;;  %v2784_v54 = vcombine.high %v69_v41, %v77_v42 }
  0xc5   :  { %2371 = vmatprep.mubr.bf16.mxu1 %v2814_v45 }
  0xcb   :  { %2275 = vmatmul.mubr.bf16.gmra.mxu0 %v2811_v50  ;;  %v2767_v50 = vcombine.low %v53_v18, %v61_v19 }
  0xcc   :  { %2372 = vmatmul.mubr.bf16.gmra.mxu1 %v2813_v51  ;;  %2282 = vmatprep.mubr.bf16.mxu0 %v2828_v52 }
  0xcd   :  { %2379 = vmatprep.mubr.bf16.mxu1 %v2830_v53  ;;  %v2769_v53 = vcombine.low %v54_v22, %v62_v23 }
  0xd3   :  { %2283 = vmatmul.mubr.bf16.gmra.mxu0 %v2827_v58 }
  0xd4   :  { %2380 = vmatmul.mubr.bf16.gmra.mxu1 %v2829_v59  ;;  %2290 = vmatprep.mubr.bf16.mxu0 %v2844_v60 }
  0xd5   :  { %2387 = vmatprep.mubr.bf16.mxu1 %v2846_v61 }
  0xdb   :  { %2291 = vmatmul.mubr.bf16.gmra.mxu0 %v2843_v2  ;;  %v93_v2 = vld [vmem:[%s4748_s0 + $0x270] sm:$0xff] }
  0xdc   :  { %2388 = vmatmul.mubr.bf16.gmra.mxu1 %v2845_v3  ;;  %2428 = vmatprep.mubr.bf16.mxu0 %v2736_v4 }
  0xdd   :  { %2525 = vmatprep.mubr.bf16.mxu1 %v2738_v5 }
  0xe3   :  { %v3074_v14 = vpop.f32.mrf.mxu0  ;;  %2429 = vmatmul.mubr.bf16.vlgmr.msra.gmra.mxu0 %v2735_v10  ;;  %v2783_v10 = vcombine.low %v69_v41, %v77_v42 }
  0xe4   :  { %v3138_v15 = vpop.f32.mrf.mxu1  ;;  %2526 = vmatmul.mubr.bf16.vlgmr.msra.gmra.mxu1 %v2737_v11  ;;  %2436 = vmatprep.mubr.bf16.mxu0 %v2752_v12 }
  0xe5   :  { %v3075_v17 = vpop.f32.mrf.mxu0  ;;  %2533 = vmatprep.mubr.bf16.mxu1 %v2754_v13  ;;  %v2785_v13 = vcombine.low %v70_v46, %v78_v47 }
  0xe6   :  { %v3076_v20 = vadd.f32 %v3075_v17, %v3074_v14  ;;  %v3139_v21 = vpop.f32.mrf.mxu1  ;;  %v2800_v14 = vcombine.high %v85_v1, %v93_v2  ;;  %v2802_v17 = vcombine.high %v86_v6, %v94_v7 }
  0xe7   :  { %v3140_v24 = vadd.f32 %v3139_v21, %v3138_v15  ;;  %v3077_v25 = vpop.f32.mrf.mxu0 }
  0xe8   :  { %v1849_v27 = vadd.f32 %v3076_v20, %v4417_v16  ;;  %v3141_v28 = vpop.f32.mrf.mxu1 }
  0xe9   :  { %v3078_v31 = vpop.f32.mrf.mxu0 }
  0xea   :  { %v4432_v33 = vadd.f32 %v3140_v24, %v1849_v27  ;;  %v3079_v34 = vadd.f32 %v3078_v31, %v3077_v25  ;;  %v3142_v35 = vpop.f32.mrf.mxu1  ;;  %v109_v27 = vld [vmem:[%s4748_s0 + $0x2f0] sm:$0xff]  ;;  %v102_v31 = vld [vmem:[%s4748_s0 + $0x2b8] sm:$0xff] }
  0xeb   :  { %v3143_v36 = vadd.f32 %v3142_v35, %v3141_v28  ;;  %v3080_v37 = vpop.f32.mrf.mxu0  ;;  %2437 = vmatmul.mubr.bf16.gmra.mxu0 %v2751_v26  ;;  %v101_v26 = vld [vmem:[%s4748_s0 + $0x2b0] sm:$0xff] }
  0xec   :  { %v1852_v38 = vadd.f32 %v3079_v34, %v4417_v16  ;;  %v3144_v39 = vpop.f32.mrf.mxu1  ;;  %2534 = vmatmul.mubr.bf16.gmra.mxu1 %v2753_v29  ;;  %2444 = vmatprep.mubr.bf16.mxu0 %v2768_v30 }
  0xed   :  { %v3081_v40 = vpop.f32.mrf.mxu0  ;;  %2541 = vmatprep.mubr.bf16.mxu1 %v2770_v32  ;;  %v110_v32 = vld [vmem:[%s4748_s0 + $0x2f8] sm:$0xff] }
  0xee   :  { %v4441_v43 = vadd.f32 %v3143_v36, %v1852_v38  ;;  %v3082_v44 = vadd.f32 %v3081_v40, %v3080_v37  ;;  %v3145_v45 = vpop.f32.mrf.mxu1  ;;  %v2799_v36 = vcombine.low %v85_v1, %v93_v2  ;;  %v2816_v40 = vcombine.high %v101_v26, %v109_v27 }
  0xef   :  { %v3146_v48 = vadd.f32 %v3145_v45, %v3144_v39  ;;  %v3083_v49 = vpop.f32.mrf.mxu0  ;;  %v2801_v39 = vcombine.low %v86_v6, %v94_v7  ;;  %v2818_v42 = vcombine.high %v102_v31, %v110_v32  ;;  %v2817_v1 = vcombine.low %v102_v31, %v110_v32 }
  0xf0   :  { %v1857_v51 = vadd.f32 %v3082_v44, %v4417_v16  ;;  %v3147_v52 = vpop.f32.mrf.mxu1 }
  0xf1   :  { %v3084_v55 = vpop.f32.mrf.mxu0 }
  0xf2   :  { %v4450_v57 = vadd.f32 %v3146_v48, %v1857_v51  ;;  %v3085_v58 = vadd.f32 %v3084_v55, %v3083_v49  ;;  %v3148_v59 = vpop.f32.mrf.mxu1 }
  0xf3   :  { %v3149_v60 = vadd.f32 %v3148_v59, %v3147_v52  ;;  %v3086_v61 = vpop.f32.mrf.mxu0  ;;  %2445 = vmatmul.mubr.bf16.gmra.mxu0 %v2767_v50  ;;  %v117_v52 = vld [vmem:[%s4748_s0 + $0x330] sm:$0xff]  ;;  %v126_v59 = vld [vmem:[%s4748_s0 + $0x378] sm:$0xff] }
  0xf4   :  { %v1860_v62 = vadd.f32 %v3085_v58, %v4417_v16  ;;  %v3150_v63 = vpop.f32.mrf.mxu1  ;;  %2542 = vmatmul.mubr.bf16.gmra.mxu1 %v2769_v53  ;;  %2452 = vmatprep.mubr.bf16.mxu0 %v2784_v54  ;;  %v125_v53 = vld [vmem:[%s4748_s0 + $0x370] sm:$0xff]  ;;  %v118_v58 = vld [vmem:[%s4748_s0 + $0x338] sm:$0xff] }
  0xf5   :  { %v3087_v0 = vpop.f32.mrf.mxu0  ;;  %2549 = vmatprep.mubr.bf16.mxu1 %v2786_v56  ;;  %v2832_v2 = vcombine.high %v117_v52, %v125_v53 }
  0xf6   :  { %v4459_v3 = vadd.f32 %v3149_v60, %v1860_v62  ;;  %v3088_v4 = vadd.f32 %v3087_v0, %v3086_v61  ;;  %v3151_v5 = vpop.f32.mrf.mxu1  ;;  %v2815_v62 = vcombine.low %v101_v26, %v109_v27 }
  0xf7   :  { %v3152_v8 = vadd.f32 %v3151_v5, %v3150_v63  ;;  %v3089_v9 = vpop.f32.mrf.mxu0  ;;  %v2834_v5 = vcombine.high %v118_v58, %v126_v59 }
  0xf8   :  { %v1865_v11 = vadd.f32 %v3088_v4, %v4417_v16  ;;  %v3153_v12 = vpop.f32.mrf.mxu1 }
  0xf9   :  { %v3090_v15 = vpop.f32.mrf.mxu0 }
  0xfa   :  { %v4468_v18 = vadd.f32 %v3152_v8, %v1865_v11  ;;  %v3091_v19 = vadd.f32 %v3090_v15, %v3089_v9  ;;  %v3154_v20 = vpop.f32.mrf.mxu1  ;;  %v141_v15 = vld [vmem:[%s4748_s0 + $0x3f0] sm:$0xff] }
  0xfb   :  { %v3155_v21 = vadd.f32 %v3154_v20, %v3153_v12  ;;  %v3092_v22 = vpop.f32.mrf.mxu0  ;;  %2453 = vmatmul.mubr.bf16.gmra.mxu0 %v2783_v10 }
  0xfc   :  { %v1868_v23 = vadd.f32 %v3091_v19, %v4417_v16  ;;  %v3156_v24 = vpop.f32.mrf.mxu1  ;;  %2550 = vmatmul.mubr.bf16.gmra.mxu1 %v2785_v13  ;;  %2460 = vmatprep.mubr.bf16.mxu0 %v2800_v14  ;;  %v133_v14 = vld [vmem:[%s4748_s0 + $0x3b0] sm:$0xff] }
  0xfd   :  { %v3093_v25 = vpop.f32.mrf.mxu0  ;;  %2557 = vmatprep.mubr.bf16.mxu1 %v2802_v17 }
  0xfe   :  { %v4477_v28 = vadd.f32 %v3155_v21, %v1868_v23  ;;  %v3094_v29 = vadd.f32 %v3093_v25, %v3092_v22  ;;  %v3157_v30 = vpop.f32.mrf.mxu1  ;;  %v134_v21 = vld [vmem:[%s4748_s0 + $0x3b8] sm:$0xff]  ;;  %v2831_v25 = vcombine.low %v117_v52, %v125_v53 }
  0xff   :  { %v3158_v34 = vadd.f32 %v3157_v30, %v3156_v24  ;;  %v3095_v35 = vpop.f32.mrf.mxu0  ;;  %v142_v22 = vld [vmem:[%s4748_s0 + $0x3f8] sm:$0xff]  ;;  %v2848_v30 = vcombine.high %v133_v14, %v141_v15 }
 0x100   :  { %v1873_v37 = vadd.f32 %v3094_v29, %v4417_v16  ;;  %v3159_v38 = vpop.f32.mrf.mxu1  ;;  %v2833_v29 = vcombine.low %v118_v58, %v126_v59  ;;  %v2850_v32 = vcombine.high %v134_v21, %v142_v22  ;;  %v2849_v52 = vcombine.low %v134_v21, %v142_v22 }
 0x101   :  { %v3096_v41 = vpop.f32.mrf.mxu0 }
 0x102   :  { %v4486_v44 = vadd.f32 %v3158_v34, %v1873_v37  ;;  %v3097_v45 = vadd.f32 %v3096_v41, %v3095_v35  ;;  %v3160_v46 = vpop.f32.mrf.mxu1 }
 0x103   :  { %v3161_v47 = vadd.f32 %v3160_v46, %v3159_v38  ;;  %v3098_v48 = vpop.f32.mrf.mxu0  ;;  %2461 = vmatmul.mubr.bf16.gmra.mxu0 %v2799_v36 }
 0x104   :  { %v1876_v49 = vadd.f32 %v3097_v45, %v4417_v16  ;;  %v3162_v50 = vpop.f32.mrf.mxu1  ;;  %2558 = vmatmul.mubr.bf16.gmra.mxu1 %v2801_v39  ;;  %2468 = vmatprep.mubr.bf16.mxu0 %v2816_v40 }
 0x105   :  { %v3099_v51 = vpop.f32.mrf.mxu0  ;;  %2565 = vmatprep.mubr.bf16.mxu1 %v2818_v42 }
 0x106   :  { %v4495_v54 = vadd.f32 %v3161_v47, %v1876_v49  ;;  %v3100_v55 = vadd.f32 %v3099_v51, %v3098_v48  ;;  %v3163_v56 = vpop.f32.mrf.mxu1  ;;  %v2847_v49 = vcombine.low %v133_v14, %v141_v15 }
 0x107   :  { %v3164_v60 = vadd.f32 %v3163_v56, %v3162_v50  ;;  %v3101_v61 = vpop.f32.mrf.mxu0 }
 0x108   :  { %v1881_v63 = vadd.f32 %v3100_v55, %v4417_v16  ;;  %v3165_v0 = vpop.f32.mrf.mxu1 }
 0x109   :  { %v3102_v4 = vpop.f32.mrf.mxu0 }
 0x10a   :  { %v4504_v6 = vadd.f32 %v3164_v60, %v1881_v63  ;;  %v3103_v7 = vadd.f32 %v3102_v4, %v3101_v61  ;;  %v3166_v8 = vpop.f32.mrf.mxu1 }
 0x10b   :  { %v3167_v9 = vadd.f32 %v3166_v8, %v3165_v0  ;;  %v3104_v10 = vpop.f32.mrf.mxu0  ;;  %2469 = vmatmul.mubr.bf16.gmra.mxu0 %v2815_v62 }
 0x10c   :  { %v1884_v11 = vadd.f32 %v3103_v7, %v4417_v16  ;;  %v3168_v12 = vpop.f32.mrf.mxu1  ;;  %2566 = vmatmul.mubr.bf16.gmra.mxu1 %v2817_v1  ;;  %2476 = vmatprep.mubr.bf16.mxu0 %v2832_v2 }
 0x10d   :  { %v3105_v13 = vpop.f32.mrf.mxu0  ;;  %2573 = vmatprep.mubr.bf16.mxu1 %v2834_v5 }
 0x10e   :  { %v4513_v17 = vadd.f32 %v3167_v9, %v1884_v11  ;;  %v3106_v19 = vadd.f32 %v3105_v13, %v3104_v10  ;;  %v3169_v20 = vpop.f32.mrf.mxu1 }
 0x10f   :  { %v3170_v23 = vadd.f32 %v3169_v20, %v3168_v12  ;;  %v3107_v24 = vpop.f32.mrf.mxu0 }
 0x110   :  { %v1889_v26 = vadd.f32 %v3106_v19, %v4417_v16  ;;  %v3171_v27 = vpop.f32.mrf.mxu1 }
 0x111   :  { %v3108_v31 = vpop.f32.mrf.mxu0 }
 0x112   :  { %v4522_v34 = vadd.f32 %v3170_v23, %v1889_v26  ;;  %v3109_v35 = vadd.f32 %v3108_v31, %v3107_v24  ;;  %v3172_v36 = vpop.f32.mrf.mxu1 }
 0x113   :  { %v3173_v37 = vadd.f32 %v3172_v36, %v3171_v27  ;;  %v3110_v38 = vpop.f32.mrf.mxu0  ;;  %2477 = vmatmul.mubr.bf16.gmra.mxu0 %v2831_v25 }
 0x114   :  { %v1892_v39 = vadd.f32 %v3109_v35, %v4417_v16  ;;  %v3174_v40 = vpop.f32.mrf.mxu1  ;;  %2574 = vmatmul.mubr.bf16.gmra.mxu1 %v2833_v29  ;;  %2484 = vmatprep.mubr.bf16.mxu0 %v2848_v30 }
 0x115   :  { %v3111_v41 = vpop.f32.mrf.mxu0  ;;  %2581 = vmatprep.mubr.bf16.mxu1 %v2850_v32 }
 0x116   :  { %v4525_v42 = vadd.f32 %v3173_v37, %v1892_v39  ;;  %v3112_v45 = vadd.f32 %v3111_v41, %v3110_v38  ;;  %v3175_v46 = vpop.f32.mrf.mxu1 }
 0x117   :  { %v3176_v47 = vadd.f32 %v3175_v46, %v3174_v40  ;;  %v3113_v48 = vpop.f32.mrf.mxu0 }
 0x118   :  { %v1897_v50 = vadd.f32 %v3112_v45, %v4417_v16  ;;  %v3177_v51 = vpop.f32.mrf.mxu1 }
 0x119   :  { %v3114_v53 = vpop.f32.mrf.mxu0 }
 0x11a   :  { %v4528_v55 = vadd.f32 %v3176_v47, %v1897_v50  ;;  %v3115_v56 = vadd.f32 %v3114_v53, %v3113_v48  ;;  %v3178_v58 = vpop.f32.mrf.mxu1 }
 0x11b   :  { %v3179_v59 = vadd.f32 %v3178_v58, %v3177_v51  ;;  %v3116_v60 = vpop.f32.mrf.mxu0  ;;  %2485 = vmatmul.mubr.bf16.gmra.mxu0 %v2847_v49 }
 0x11c   :  { %v1900_v61 = vadd.f32 %v3115_v56, %v4417_v16  ;;  %v3180_v62 = vpop.f32.mrf.mxu1  ;;  %2582 = vmatmul.mubr.bf16.gmra.mxu1 %v2849_v52 }
 0x11d   :  { %v3117_v63 = vpop.f32.mrf.mxu0 }
 0x11e   :  { %v4531_v0 = vadd.f32 %v3179_v59, %v1900_v61  ;;  %v3118_v1 = vadd.f32 %v3117_v63, %v3116_v60  ;;  %v3181_v2 = vpop.f32.mrf.mxu1 }
 0x11f   :  { %v3182_v4 = vadd.f32 %v3181_v2, %v3180_v62  ;;  %v3119_v5 = vpop.f32.mrf.mxu0 }
 0x120   :  { %v1905_v7 = vadd.f32 %v3118_v1, %v4417_v16  ;;  %v3183_v8 = vpop.f32.mrf.mxu1 }
 0x121   :  { %v3120_v9 = vpop.f32.mrf.mxu0 }
 0x122   :  { %v4534_v10 = vadd.f32 %v3182_v4, %v1905_v7  ;;  %v3121_v11 = vadd.f32 %v3120_v9, %v3119_v5  ;;  %v3184_v12 = vpop.f32.mrf.mxu1 }
 0x123   :  { %v3185_v13 = vadd.f32 %v3184_v12, %v3183_v8  ;;  %v3202_v14 = vpop.f32.mrf.mxu0 }
 0x124   :  { %v1908_v15 = vadd.f32 %v3121_v11, %v4417_v16  ;;  %v3266_v19 = vpop.f32.mrf.mxu1 }
 0x125   :  { %v3203_v20 = vpop.f32.mrf.mxu0 }
 0x126   :  { %v4537_v21 = vadd.f32 %v3185_v13, %v1908_v15  ;;  %v3204_v22 = vadd.f32 %v3203_v20, %v3202_v14  ;;  %v3267_v23 = vpop.f32.mrf.mxu1 }
 0x127   :  { %v3268_v24 = vadd.f32 %v3267_v23, %v3266_v19  ;;  %v3205_v25 = vpop.f32.mrf.mxu0 }
 0x128   :  { %v2043_v26 = vadd.f32 %v3204_v22, %v4432_v33  ;;  %v3269_v27 = vpop.f32.mrf.mxu1 }
 0x129   :  { %v3206_v29 = vpop.f32.mrf.mxu0 }
 0x12a   :  { %v4540_v30 = vadd.f32 %v3268_v24, %v2043_v26  ;;  %v3207_v31 = vadd.f32 %v3206_v29, %v3205_v25  ;;  %v3270_v32 = vpop.f32.mrf.mxu1 }
 0x12b   :  { %v3271_v35 = vadd.f32 %v3270_v32, %v3269_v27  ;;  %v3208_v36 = vpop.f32.mrf.mxu0 }
 0x12c   :  { %v2046_v16 = vadd.f32 %v3207_v31, %v4441_v43  ;;  %v3272_v37 = vpop.f32.mrf.mxu1 }
 0x12d   :  { %v3209_v38 = vpop.f32.mrf.mxu0 }
 0x12e   :  { %v4543_v39 = vadd.f32 %v3271_v35, %v2046_v16  ;;  %v3210_v40 = vadd.f32 %v3209_v38, %v3208_v36  ;;  %v3273_v41 = vpop.f32.mrf.mxu1 }
 0x12f   :  { %v3274_v45 = vadd.f32 %v3273_v41, %v3272_v37  ;;  %v3211_v46 = vpop.f32.mrf.mxu0 }
 0x130   :  { %v2051_v33 = vadd.f32 %v3210_v40, %v4450_v57  ;;  %v3275_v47 = vpop.f32.mrf.mxu1 }
 0x131   :  { %v3212_v48 = vpop.f32.mrf.mxu0 }
 0x132   :  { %v4546_v49 = vadd.f32 %v3274_v45, %v2051_v33  ;;  %v3213_v50 = vadd.f32 %v3212_v48, %v3211_v46  ;;  %v3276_v51 = vpop.f32.mrf.mxu1 }
 0x133   :  { %v3277_v52 = vadd.f32 %v3276_v51, %v3275_v47  ;;  %v3214_v53 = vpop.f32.mrf.mxu0 }
 0x134   :  { %v2054_v43 = vadd.f32 %v3213_v50, %v4459_v3  ;;  %v3278_v56 = vpop.f32.mrf.mxu1 }
 0x135   :  { %v3215_v58 = vpop.f32.mrf.mxu0 }
 0x136   :  { %v4549_v59 = vadd.f32 %v3277_v52, %v2054_v43  ;;  %v3216_v60 = vadd.f32 %v3215_v58, %v3214_v53  ;;  %v3279_v61 = vpop.f32.mrf.mxu1 }
 0x137   :  { %v3280_v62 = vadd.f32 %v3279_v61, %v3278_v56  ;;  %v3217_v63 = vpop.f32.mrf.mxu0 }
 0x138   :  { %v2059_v57 = vadd.f32 %v3216_v60, %v4468_v18  ;;  %v3281_v1 = vpop.f32.mrf.mxu1 }
 0x139   :  { %v3218_v2 = vpop.f32.mrf.mxu0 }
 0x13a   :  { %v4552_v4 = vadd.f32 %v3280_v62, %v2059_v57  ;;  %v3219_v5 = vadd.f32 %v3218_v2, %v3217_v63  ;;  %v3282_v7 = vpop.f32.mrf.mxu1 }
 0x13b   :  { %v3283_v8 = vadd.f32 %v3282_v7, %v3281_v1  ;;  %v3220_v9 = vpop.f32.mrf.mxu0 }
 0x13c   :  { %v2062_v3 = vadd.f32 %v3219_v5, %v4477_v28  ;;  %v3284_v11 = vpop.f32.mrf.mxu1 }
 0x13d   :  { %v3221_v12 = vpop.f32.mrf.mxu0 }
 0x13e   :  { %v4555_v13 = vadd.f32 %v3283_v8, %v2062_v3  ;;  %v3222_v14 = vadd.f32 %v3221_v12, %v3220_v9  ;;  %v3285_v15 = vpop.f32.mrf.mxu1 }
 0x13f   :  { %v3286_v19 = vadd.f32 %v3285_v15, %v3284_v11  ;;  %v3223_v20 = vpop.f32.mrf.mxu0 }
 0x140   :  { %v2067_v18 = vadd.f32 %v3222_v14, %v4486_v44  ;;  %v3287_v22 = vpop.f32.mrf.mxu1 }
 0x141   :  { %v3224_v23 = vpop.f32.mrf.mxu0 }
 0x142   :  { %v4558_v24 = vadd.f32 %v3286_v19, %v2067_v18  ;;  %v3225_v25 = vadd.f32 %v3224_v23, %v3223_v20  ;;  %v3288_v26 = vpop.f32.mrf.mxu1 }
 0x143   :  { %v3289_v27 = vadd.f32 %v3288_v26, %v3287_v22  ;;  %v3226_v29 = vpop.f32.mrf.mxu0 }
 0x144   :  { %v2070_v28 = vadd.f32 %v3225_v25, %v4495_v54  ;;  %v3290_v31 = vpop.f32.mrf.mxu1 }
 0x145   :  { %v3227_v32 = vpop.f32.mrf.mxu0 }
 0x146   :  { %v4561_v35 = vadd.f32 %v3289_v27, %v2070_v28  ;;  %v3228_v36 = vadd.f32 %v3227_v32, %v3226_v29  ;;  %v3291_v16 = vpop.f32.mrf.mxu1 }
 0x147   :  { %v3292_v37 = vadd.f32 %v3291_v16, %v3290_v31  ;;  %v3229_v38 = vpop.f32.mrf.mxu0 }
 0x148   :  { %v2075_v44 = vadd.f32 %v3228_v36, %v4504_v6  ;;  %v3293_v40 = vpop.f32.mrf.mxu1 }
 0x149   :  { %v3230_v41 = vpop.f32.mrf.mxu0 }
 0x14a   :  { %v4564_v45 = vadd.f32 %v3292_v37, %v2075_v44  ;;  %v3231_v46 = vadd.f32 %v3230_v41, %v3229_v38  ;;  %v3294_v33 = vpop.f32.mrf.mxu1 }
 0x14b   :  { %v3295_v47 = vadd.f32 %v3294_v33, %v3293_v40  ;;  %v3232_v48 = vpop.f32.mrf.mxu0 }
 0x14c   :  { %v2078_v54 = vadd.f32 %v3231_v46, %v4513_v17  ;;  %v3296_v50 = vpop.f32.mrf.mxu1 }
 0x14d   :  { %v3233_v51 = vpop.f32.mrf.mxu0 }
 0x14e   :  { %v4567_v52 = vadd.f32 %v3295_v47, %v2078_v54  ;;  %v3234_v53 = vadd.f32 %v3233_v51, %v3232_v48  ;;  %v3297_v43 = vpop.f32.mrf.mxu1 }
 0x14f   :  { %v3298_v56 = vadd.f32 %v3297_v43, %v3296_v50  ;;  %v3235_v58 = vpop.f32.mrf.mxu0 }
 0x150   :  { %v2083_v6 = vadd.f32 %v3234_v53, %v4522_v34  ;;  %v3299_v60 = vpop.f32.mrf.mxu1 }
 0x151   :  { %v3236_v61 = vpop.f32.mrf.mxu0 }
 0x152   :  { %v4570_v62 = vadd.f32 %v3298_v56, %v2083_v6  ;;  %v3237_v63 = vadd.f32 %v3236_v61, %v3235_v58  ;;  %v3300_v57 = vpop.f32.mrf.mxu1 }
 0x153   :  { %v3301_v1 = vadd.f32 %v3300_v57, %v3299_v60  ;;  %v3238_v2 = vpop.f32.mrf.mxu0 }
 0x154   :  { %v2086_v17 = vadd.f32 %v3237_v63, %v4525_v42  ;;  %v3302_v5 = vpop.f32.mrf.mxu1 }
 0x155   :  { %v3239_v7 = vpop.f32.mrf.mxu0 }
 0x156   :  { %v4573_v8 = vadd.f32 %v3301_v1, %v2086_v17  ;;  %v3240_v9 = vadd.f32 %v3239_v7, %v3238_v2  ;;  %v3303_v3 = vpop.f32.mrf.mxu1 }
 0x157   :  { %v3304_v11 = vadd.f32 %v3303_v3, %v3302_v5  ;;  %v3241_v12 = vpop.f32.mrf.mxu0 }
 0x158   :  { %v2091_v34 = vadd.f32 %v3240_v9, %v4528_v55  ;;  %v3305_v14 = vpop.f32.mrf.mxu1 }
 0x159   :  { %v3242_v15 = vpop.f32.mrf.mxu0 }
 0x15a   :  { %v4576_v19 = vadd.f32 %v3304_v11, %v2091_v34  ;;  %v3243_v20 = vadd.f32 %v3242_v15, %v3241_v12  ;;  %v3306_v18 = vpop.f32.mrf.mxu1 }
 0x15b   :  { %v3307_v22 = vadd.f32 %v3306_v18, %v3305_v14  ;;  %v3244_v23 = vpop.f32.mrf.mxu0 }
 0x15c   :  { %v2094_v42 = vadd.f32 %v3243_v20, %v4531_v0  ;;  %v3308_v25 = vpop.f32.mrf.mxu1 }
 0x15d   :  { %v3245_v26 = vpop.f32.mrf.mxu0 }
 0x15e   :  { %v4579_v27 = vadd.f32 %v3307_v22, %v2094_v42  ;;  %v3246_v29 = vadd.f32 %v3245_v26, %v3244_v23  ;;  %v3309_v28 = vpop.f32.mrf.mxu1 }
 0x15f   :  { %v3310_v31 = vadd.f32 %v3309_v28, %v3308_v25  ;;  %v3247_v32 = vpop.f32.mrf.mxu0 }
 0x160   :  { %v2099_v55 = vadd.f32 %v3246_v29, %v4534_v10  ;;  %v3311_v36 = vpop.f32.mrf.mxu1 }
 0x161   :  { %v3248_v16 = vpop.f32.mrf.mxu0 }
 0x162   :  { %v4582_v37 = vadd.f32 %v3310_v31, %v2099_v55  ;;  %v3249_v38 = vadd.f32 %v3248_v16, %v3247_v32  ;;  %v3312_v44 = vpop.f32.mrf.mxu1 }
 0x163   :  { %v3313_v40 = vadd.f32 %v3312_v44, %v3311_v36  ;;  %v3330_v41 = vpop.f32.mrf.mxu0 }
 0x164   :  { %v2102_v0 = vadd.f32 %v3249_v38, %v4537_v21  ;;  %v3394_v46 = vpop.f32.mrf.mxu1 }
 0x165   :  { %v3331_v33 = vpop.f32.mrf.mxu0 }
 0x166   :  { %v4585_v47 = vadd.f32 %v3313_v40, %v2102_v0  ;;  %v3332_v48 = vadd.f32 %v3331_v33, %v3330_v41  ;;  %v3395_v54 = vpop.f32.mrf.mxu1 }
 0x167   :  { %v3396_v50 = vadd.f32 %v3395_v54, %v3394_v46  ;;  %v4587_v51 = vpop.f32.mrf.mxu0 }
 0x168   :  { %v2237_v10 = vadd.f32 %v3332_v48, %v4540_v30  ;;  %v4590_v53 = vpop.f32.mrf.mxu1 }
 0x169   :  { %v4592_v43 = vpop.f32.mrf.mxu0 }
 0x16a   :  { %v4594_v56 = vadd.f32 %v3396_v50, %v2237_v10  ;;  %v4596_v58 = vpop.f32.mrf.mxu1 }
 0x16b   :  { %v3336_v21 = vpop.f32.mrf.mxu0 }
 0x16c   :  { %v3400_v6 = vpop.f32.mrf.mxu1 }
 0x16d   :  { %v3337_v60 = vpop.f32.mrf.mxu0 }
 0x16e   :  { %v3338_v61 = vadd.f32 %v3337_v60, %v3336_v21  ;;  %v3401_v63 = vpop.f32.mrf.mxu1 }
 0x16f   :  { %v3402_v57 = vadd.f32 %v3401_v63, %v3400_v6  ;;  %v4598_v1 = vpop.f32.mrf.mxu0 }
 0x170   :  { %v2245_v2 = vadd.f32 %v3338_v61, %v4546_v49  ;;  %v4601_v17 = vpop.f32.mrf.mxu1 }
 0x171   :  { %v4603_v30 = vpop.f32.mrf.mxu0 }
 0x172   :  { %v4605_v5 = vadd.f32 %v3402_v57, %v2245_v2  ;;  %v4607_v7 = vpop.f32.mrf.mxu1 }
 0x173   :  { %v3342_v9 = vpop.f32.mrf.mxu0 }
 0x174   :  { %v3406_v3 = vpop.f32.mrf.mxu1 }
 0x175   :  { %v3343_v11 = vpop.f32.mrf.mxu0 }
 0x176   :  { %v3344_v12 = vadd.f32 %v3343_v11, %v3342_v9  ;;  %v3407_v34 = vpop.f32.mrf.mxu1 }
 0x177   :  { %v3408_v14 = vadd.f32 %v3407_v34, %v3406_v3  ;;  %v4609_v15 = vpop.f32.mrf.mxu0 }
 0x178   :  { %v2253_v20 = vadd.f32 %v3344_v12, %v4552_v4  ;;  %v4612_v18 = vpop.f32.mrf.mxu1 }
 0x179   :  { %v4614_v49 = vpop.f32.mrf.mxu0 }
 0x17a   :  { %v4616_v22 = vadd.f32 %v3408_v14, %v2253_v20  ;;  %v4618_v23 = vpop.f32.mrf.mxu1 }
 0x17b   :  { %v3348_v42 = vpop.f32.mrf.mxu0 }
 0x17c   :  { %v3412_v25 = vpop.f32.mrf.mxu1 }
 0x17d   :  { %v3349_v26 = vpop.f32.mrf.mxu0 }
 0x17e   :  { %v3350_v29 = vadd.f32 %v3349_v26, %v3348_v42  ;;  %v3413_v28 = vpop.f32.mrf.mxu1 }
 0x17f   :  { %v3414_v31 = vadd.f32 %v3413_v28, %v3412_v25  ;;  %v4620_v32 = vpop.f32.mrf.mxu0 }
 0x180   :  { %v2261_v55 = vadd.f32 %v3350_v29, %v4558_v24  ;;  %v4623_v36 = vpop.f32.mrf.mxu1 }
 0x181   :  { %v4625_v4 = vpop.f32.mrf.mxu0 }
 0x182   :  { %v4627_v16 = vadd.f32 %v3414_v31, %v2261_v55  ;;  %v4629_v38 = vpop.f32.mrf.mxu1 }
 0x183   :  { %v3354_v44 = vpop.f32.mrf.mxu0 }
 0x184   :  { %v3418_v40 = vpop.f32.mrf.mxu1 }
 0x185   :  { %v3355_v41 = vpop.f32.mrf.mxu0 }
 0x186   :  { %v3356_v0 = vadd.f32 %v3355_v41, %v3354_v44  ;;  %v3419_v46 = vpop.f32.mrf.mxu1 }
 0x187   :  { %v3420_v33 = vadd.f32 %v3419_v46, %v3418_v40  ;;  %v4631_v48 = vpop.f32.mrf.mxu0 }
 0x188   :  { %v2269_v54 = vadd.f32 %v3356_v0, %v4564_v45  ;;  %v4634_v50 = vpop.f32.mrf.mxu1 }
 0x189   :  { %v4636_v24 = vpop.f32.mrf.mxu0 }
 0x18a   :  { %v4638_v10 = vadd.f32 %v3420_v33, %v2269_v54  ;;  %v4640_v21 = vpop.f32.mrf.mxu1 }
 0x18b   :  { %v3360_v6 = vpop.f32.mrf.mxu0 }
 0x18c   :  { %v3424_v60 = vpop.f32.mrf.mxu1 }
 0x18d   :  { %v3361_v61 = vpop.f32.mrf.mxu0 }
 0x18e   :  { %v3362_v63 = vadd.f32 %v3361_v61, %v3360_v6  ;;  %v3425_v57 = vpop.f32.mrf.mxu1 }
 0x18f   :  { %v3426_v2 = vadd.f32 %v3425_v57, %v3424_v60  ;;  %v4642_v9 = vpop.f32.mrf.mxu0  ;;  %v3335_v57 = vadd.f32 %v4592_v43, %v4587_v51  ;;  %v3341_v51 = vadd.f32 %v4603_v30, %v4598_v1 }
 0x190   :  { %v2277_v3 = vadd.f32 %v3362_v63, %v4570_v62  ;;  %v4645_v11 = vpop.f32.mrf.mxu1 }
 0x191   :  { %v4647_v45 = vpop.f32.mrf.mxu0 }
 0x192   :  { %v4649_v12 = vadd.f32 %v3426_v2, %v2277_v3  ;;  %v4651_v34 = vpop.f32.mrf.mxu1 }
 0x193   :  { %v3366_v14 = vpop.f32.mrf.mxu0 }
 0x194   :  { %v3430_v20 = vpop.f32.mrf.mxu1 }
 0x195   :  { %v3367_v42 = vpop.f32.mrf.mxu0 }
 0x196   :  { %v3368_v25 = vadd.f32 %v3367_v42, %v3366_v14  ;;  %v3431_v26 = vpop.f32.mrf.mxu1 }
 0x197   :  { %v3432_v29 = vadd.f32 %v3431_v26, %v3430_v20  ;;  %v4653_v28 = vpop.f32.mrf.mxu0 }
 0x198   :  { %v2285_v31 = vadd.f32 %v3368_v25, %v4576_v19  ;;  %v4656_v55 = vpop.f32.mrf.mxu1  ;;  %v2240_v25 = vadd.f32 %v3335_v57, %v4543_v39 }
 0x199   :  { %v4658_v62 = vpop.f32.mrf.mxu0 }
 0x19a   :  { %v4660_v44 = vadd.f32 %v3432_v29, %v2285_v31  ;;  %v4662_v40 = vpop.f32.mrf.mxu1 }
 0x19b   :  { %v3372_v41 = vpop.f32.mrf.mxu0 }
 0x19c   :  { %v3436_v0 = vpop.f32.mrf.mxu1 }
 0x19d   :  { %v3373_v46 = vpop.f32.mrf.mxu0 }
 0x19e   :  { %v3374_v33 = vadd.f32 %v3373_v46, %v3372_v41  ;;  %v3437_v54 = vpop.f32.mrf.mxu1 }
 0x19f   :  { %v3438_v6 = vadd.f32 %v3437_v54, %v3436_v0  ;;  %v4664_v60 = vpop.f32.mrf.mxu0 }
 0x1a0   :  { %v2293_v61 = vadd.f32 %v3374_v33, %v4582_v37  ;;  %v4667_v63 = vpop.f32.mrf.mxu1  ;;  %v3399_v37 = vadd.f32 %v4596_v58, %v4590_v53 }
 0x1a1   :  { %v4669_v19 = vpop.f32.mrf.mxu0 }
 0x1a2   :  { %v4673_v2 = vadd.f32 %v3438_v6, %v2293_v61  ;;  %v4675_v3 = vpop.f32.mrf.mxu1  ;;  %v2337_v33 = vadd.f32 %v3399_v37, %v2240_v25 }
 0x1a3   :  { %4752 = vst [vmem:[#allocation3_spill] sm:$0xff] %v4675_v3  ;;  %v3458_v14 = vpop.f32.mrf.mxu0 }
 0x1a4   :  { %4751 = vst [vmem:[#allocation2_spill] sm:$0xff] %v4673_v2  ;;  %v3522_v20 = vpop.f32.mrf.mxu1 }
 0x1a5   :  { %v3459_v42 = vpop.f32.mrf.mxu0 }
 0x1a6   :  { %v3460_v26 = vadd.f32 %v3459_v42, %v3458_v14  ;;  %v3523_v29 = vpop.f32.mrf.mxu1  ;;  %v2248_v42 = vadd.f32 %v3341_v51, %v4549_v59  ;;  %v3347_v59 = vadd.f32 %v4614_v49, %v4609_v15 }
 0x1a7   :  { %v3461_v31 = vpop.f32.mrf.mxu0  ;;  %v3524_v0 = vadd.f32 %v3523_v29, %v3522_v20 }
 0x1a8   :  { %v2431_v41 = vadd.f32 %v3460_v26, %v4594_v56  ;;  %v3525_v46 = vpop.f32.mrf.mxu1  ;;  %v3405_v26 = vadd.f32 %v4607_v7, %v4601_v17 }
 0x1a9   :  { %v3462_v43 = vpop.f32.mrf.mxu0 }
 0x1aa   :  { %v2528_v54 = vadd.f32 %v3524_v0, %v2431_v41  ;;  %v3463_v6 = vadd.f32 %v3462_v43, %v3461_v31  ;;  %v3526_v61 = vpop.f32.mrf.mxu1  ;;  %v2345_v37 = vadd.f32 %v3405_v26, %v2248_v42 }
 0x1ab   :  { %v3464_v2 = vpop.f32.mrf.mxu0  ;;  %v3527_v57 = vadd.f32 %v3526_v61, %v3525_v46  ;;  %v2256_v61 = vadd.f32 %v3347_v59, %v4555_v13 }
 0x1ac   :  { %v2434_v39 = vadd.f32 %v3463_v6, %v2337_v33  ;;  %v3528_v14 = vpop.f32.mrf.mxu1  ;;  %v2606_v53 = vmul.f32 0.2, %v2528_v54  ;;  %vm2590_vm0 = vcmp.ge.f32.partialorder %v2528_v54, 0.0 }
 0x1ad   :  { %v3465_v3 = vpop.f32.mrf.mxu0 }
 0x1ae   :  { %v2531_v58 = vadd.f32 %v3527_v57, %v2434_v39  ;;  %v3466_v56 = vadd.f32 %v3465_v3, %v3464_v2  ;;  %v3529_v20 = vpop.f32.mrf.mxu1  ;;  %v2622_v0 = vsel %vm2590_vm0, %v2528_v54, %v2606_v53  ;;  %v3411_v57 = vadd.f32 %v4618_v23, %v4612_v18 }
 0x1af   :  { %v3467_v1 = vpop.f32.mrf.mxu0  ;;  %v3530_v29 = vadd.f32 %v3529_v20, %v3528_v14  ;;  %v3353_v20 = vadd.f32 %v4625_v4, %v4620_v32 }
 0x1b0   :  { %vm2591_vm1 = vcmp.ge.f32.partialorder %v2531_v58, 0.0  ;;  %v2607_v30 = vmul.f32 0.2, %v2531_v58  ;;  %v2439_v25 = vadd.f32 %v3466_v56, %v4605_v5  ;;  %v3531_v31 = vpop.f32.mrf.mxu1  ;;  %v2353_v56 = vadd.f32 %v3411_v57, %v2256_v61 }
 0x1b1   :  { %v3468_v41 = vpop.f32.mrf.mxu0 }
 0x1b2   :  { %v2623_v46 = vsel %vm2591_vm1, %v2531_v58, %v2607_v30  ;;  %v2536_v2 = vadd.f32 %v3530_v29, %v2439_v25  ;;  %v3469_v3 = vadd.f32 %v3468_v41, %v3467_v1  ;;  %v3532_v51 = vpop.f32.mrf.mxu1 }
 0x1b3   :  { %v3014_v43 = vpack.c.bf16 %v2623_v46, %v2622_v0  ;;  %v3470_v17 = vpop.f32.mrf.mxu0  ;;  %v3533_v33 = vadd.f32 %v3532_v51, %v3531_v31  ;;  %v2264_v0 = vadd.f32 %v3353_v20, %v4561_v35 }
 0x1b4   :  { %v2442_v7 = vadd.f32 %v3469_v3, %v2345_v37  ;;  %v3534_v6 = vpop.f32.mrf.mxu1  ;;  %v2608_v39 = vmul.f32 0.2, %v2536_v2  ;;  %vm2592_vm2 = vcmp.ge.f32.partialorder %v2536_v2, 0.0  ;;  %v3417_v3 = vadd.f32 %v4629_v38, %v4623_v36 }
 0x1b5   :  { %3015 = vst [vmem:[%s4750_s3] sm:$0xff] %v3014_v43   ;;  %v3471_v5 = vpop.f32.mrf.mxu0 }
 0x1b6   :  { %v2539_v15 = vadd.f32 %v3533_v33, %v2442_v7  ;;  %v3472_v49 = vadd.f32 %v3471_v5, %v3470_v17  ;;  %v3535_v54 = vpop.f32.mrf.mxu1  ;;  %v2624_v1 = vsel %vm2592_vm2, %v2536_v2, %v2608_v39  ;;  %v2361_v33 = vadd.f32 %v3417_v3, %v2264_v0 }
 0x1b7   :  { %v3473_v14 = vpop.f32.mrf.mxu0  ;;  %v3536_v58 = vadd.f32 %v3535_v54, %v3534_v6  ;;  %v3359_v6 = vadd.f32 %v4636_v24, %v4631_v48  ;;  %v3429_v3 = vadd.f32 %v4651_v34, %v4645_v11 }
 0x1b8   :  { %vm2593_vm3 = vcmp.ge.f32.partialorder %v2539_v15, 0.0  ;;  %v2609_v42 = vmul.f32 0.2, %v2539_v15  ;;  %v2447_v53 = vadd.f32 %v3472_v49, %v4616_v22  ;;  %v3537_v13 = vpop.f32.mrf.mxu1 }
 0x1b9   :  { %v3474_v26 = vpop.f32.mrf.mxu0 }
 0x1ba   :  { %v2625_v30 = vsel %vm2593_vm3, %v2539_v15, %v2609_v42  ;;  %v2544_v25 = vadd.f32 %v3536_v58, %v2447_v53  ;;  %v3475_v29 = vadd.f32 %v3474_v26, %v3473_v14  ;;  %v3538_v31 = vpop.f32.mrf.mxu1  ;;  %v2272_v53 = vadd.f32 %v3359_v6, %v4567_v52 }
 0x1bb   :  { %v3019_v37 = vpack.c.bf16 %v2625_v30, %v2624_v1  ;;  %v3476_v18 = vpop.f32.mrf.mxu0  ;;  %v3539_v59 = vadd.f32 %v3538_v31, %v3537_v13 }
 0x1bc   :  { %v2450_v23 = vadd.f32 %v3475_v29, %v2353_v56  ;;  %v3540_v41 = vpop.f32.mrf.mxu1  ;;  %v2610_v46 = vmul.f32 0.2, %v2544_v25  ;;  %vm2594_vm4 = vcmp.ge.f32.partialorder %v2544_v25, 0.0  ;;  %v3423_v56 = vadd.f32 %v4640_v21, %v4634_v50 }
 0x1bd   :  { %3051 = vst [vmem:[%s4750_s3 + $0x8] sm:$0xff] %v3019_v37   ;;  %v3477_v22 = vpop.f32.mrf.mxu0  ;;  %v3365_v29 = vadd.f32 %v4647_v45, %v4642_v9 }
 0x1be   :  { %v2547_v32 = vadd.f32 %v3539_v59, %v2450_v23  ;;  %v3478_v4 = vadd.f32 %v3477_v22, %v3476_v18  ;;  %v3541_v2 = vpop.f32.mrf.mxu1  ;;  %v2626_v5 = vsel %vm2594_vm4, %v2544_v25, %v2610_v46  ;;  %v2369_v25 = vadd.f32 %v3423_v56, %v2272_v53 }
 0x1bf   :  { %v3479_v51 = vpop.f32.mrf.mxu0  ;;  %v3542_v7 = vadd.f32 %v3541_v2, %v3540_v41  ;;  %v3435_v53 = vadd.f32 %v4662_v40, %v4656_v55  ;;  %v3377_v56 = vadd.f32 %v4669_v19, %v4664_v60 }
 0x1c0   :  { %vm2595_vm5 = vcmp.ge.f32.partialorder %v2547_v32, 0.0  ;;  %v2611_v43 = vmul.f32 0.2, %v2547_v32  ;;  %v2455_v17 = vadd.f32 %v3478_v4, %v4627_v16  ;;  %v3543_v35 = vpop.f32.mrf.mxu1 }
 0x1c1   :  { %v3480_v61 = vpop.f32.mrf.mxu0 }
 0x1c2   :  { %v2627_v39 = vsel %vm2595_vm5, %v2547_v32, %v2611_v43  ;;  %v2552_v15 = vadd.f32 %v3542_v7, %v2455_v17  ;;  %v3481_v49 = vadd.f32 %v3480_v61, %v3479_v51  ;;  %v3544_v54 = vpop.f32.mrf.mxu1  ;;  %v2280_v32 = vadd.f32 %v3365_v29, %v4573_v8 }
 0x1c3   :  { %v3024_v57 = vpack.c.bf16 %v2627_v39, %v2626_v5  ;;  %v3482_v36 = vpop.f32.mrf.mxu0  ;;  %v3545_v14 = vadd.f32 %v3544_v54, %v3543_v35 }
 0x1c4   :  { %v2458_v38 = vadd.f32 %v3481_v49, %v2361_v33  ;;  %v3546_v42 = vpop.f32.mrf.mxu1  ;;  %v2612_v58 = vmul.f32 0.2, %v2552_v15  ;;  %vm2596_vm6 = vcmp.ge.f32.partialorder %v2552_v15, 0.0  ;;  %v2377_v35 = vadd.f32 %v3429_v3, %v2280_v32 }
 0x1c5   :  { %3052 = vst [vmem:[%s4750_s3 + $0x10] sm:$0xff] %v3024_v57   ;;  %v3483_v16 = vpop.f32.mrf.mxu0  ;;  %v3371_v33 = vadd.f32 %v4658_v62, %v4653_v28 }
 0x1c6   :  { %v2555_v48 = vadd.f32 %v3545_v14, %v2458_v38  ;;  %v3484_v24 = vadd.f32 %v3483_v16, %v3482_v36  ;;  %v3547_v13 = vpop.f32.mrf.mxu1  ;;  %v2628_v37 = vsel %vm2596_vm6, %v2552_v15, %v2612_v58 }
 0x1c7   :  { %v3485_v20 = vpop.f32.mrf.mxu0  ;;  %v3548_v30 = vadd.f32 %v3547_v13, %v3546_v42  ;;  %v2288_v38 = vadd.f32 %v3371_v33, %v4579_v27 }
 0x1c8   :  { %vm2597_vm7 = vcmp.ge.f32.partialorder %v2555_v48, 0.0  ;;  %v2613_v26 = vmul.f32 0.2, %v2555_v48  ;;  %v2463_v1 = vadd.f32 %v3484_v24, %v4638_v10  ;;  %v3549_v52 = vpop.f32.mrf.mxu1 }
 0x1c9   :  { %v3486_v31 = vpop.f32.mrf.mxu0  ;;  %v2385_v13 = vadd.f32 %v3435_v53, %v2288_v38 }
 0x1ca   :  { %v2629_v18 = vsel %vm2597_vm7, %v2555_v48, %v2613_v26  ;;  %v2560_v23 = vadd.f32 %v3548_v30, %v2463_v1  ;;  %v3487_v59 = vadd.f32 %v3486_v31, %v3485_v20  ;;  %v3550_v41 = vpop.f32.mrf.mxu1 }
 0x1cb   :  { %v3029_v0 = vpack.c.bf16 %v2629_v18, %v2628_v37  ;;  %v3488_v50 = vpop.f32.mrf.mxu0  ;;  %v3551_v22 = vadd.f32 %v3550_v41, %v3549_v52  ;;  %v2296_v18 = vadd.f32 %v3377_v56, %v4585_v47  ;;  %v4753_v41 = vld [vmem:[#allocation3_spill] sm:$0xff] }
 0x1cc   :  { %v2466_v21 = vadd.f32 %v3487_v59, %v2369_v25  ;;  %v3552_v46 = vpop.f32.mrf.mxu1  ;;  %v2614_v4 = vmul.f32 0.2, %v2560_v23  ;;  %vm2598_vm8 = vcmp.ge.f32.partialorder %v2560_v23, 0.0 }
 0x1cd   :  { %3053 = vst [vmem:[%s4750_s3 + $0x18] sm:$0xff] %v3029_v0   ;;  %v3489_v10 = vpop.f32.mrf.mxu0  ;;  %v3441_v0 = vadd.f32 %v4753_v41, %v4667_v63 }
 0x1ce   :  { %v2563_v9 = vadd.f32 %v3551_v22, %v2466_v21  ;;  %v3490_v45 = vadd.f32 %v3489_v10, %v3488_v50  ;;  %v3553_v2 = vpop.f32.mrf.mxu1  ;;  %v2630_v61 = vsel %vm2598_vm8, %v2560_v23, %v2614_v4  ;;  %v4754_v22 = vld [vmem:[#allocation2_spill] sm:$0xff] }
 0x1cf   :  { %v3491_v51 = vpop.f32.mrf.mxu0  ;;  %v3554_v7 = vadd.f32 %v3553_v2, %v3552_v46  ;;  %v2393_v10 = vadd.f32 %v3441_v0, %v2296_v18 }
 0x1d0   :  { %vm2599_vm9 = vcmp.ge.f32.partialorder %v2563_v9, 0.0  ;;  %v2615_v43 = vmul.f32 0.2, %v2563_v9  ;;  %v2471_v17 = vadd.f32 %v3490_v45, %v4649_v12  ;;  %v3555_v8 = vpop.f32.mrf.mxu1 }
 0x1d1   :  { %v3492_v6 = vpop.f32.mrf.mxu0 }
 0x1d2   :  { %v2631_v5 = vsel %vm2599_vm9, %v2563_v9, %v2615_v43  ;;  %v2568_v39 = vadd.f32 %v3554_v7, %v2471_v17  ;;  %v3493_v15 = vadd.f32 %v3492_v6, %v3491_v51  ;;  %v3556_v49 = vpop.f32.mrf.mxu1 }
 0x1d3   :  { %v3034_v54 = vpack.c.bf16 %v2631_v5, %v2630_v61  ;;  %v3494_v11 = vpop.f32.mrf.mxu0  ;;  %v3557_v57 = vadd.f32 %v3556_v49, %v3555_v8 }
 0x1d4   :  { %v2474_v34 = vadd.f32 %v3493_v15, %v2377_v35  ;;  %v3558_v36 = vpop.f32.mrf.mxu1  ;;  %v2616_v14 = vmul.f32 0.2, %v2568_v39  ;;  %vm2600_vm10 = vcmp.ge.f32.partialorder %v2568_v39, 0.0 }
 0x1d5   :  { %3054 = vst [vmem:[%s4750_s3 + $0x20] sm:$0xff] %v3034_v54   ;;  %v3495_v12 = vpop.f32.mrf.mxu0 }
 0x1d6   :  { %v2571_v28 = vadd.f32 %v3557_v57, %v2474_v34  ;;  %v3496_v62 = vadd.f32 %v3495_v12, %v3494_v11  ;;  %v3559_v42 = vpop.f32.mrf.mxu1  ;;  %v2632_v26 = vsel %vm2600_vm10, %v2568_v39, %v2616_v14 }
 0x1d7   :  { %v3497_v16 = vpop.f32.mrf.mxu0  ;;  %v3560_v24 = vadd.f32 %v3559_v42, %v3558_v36 }
 0x1d8   :  { %vm2601_vm11 = vcmp.ge.f32.partialorder %v2571_v28, 0.0  ;;  %v2617_v58 = vmul.f32 0.2, %v2571_v28  ;;  %v2479_v48 = vadd.f32 %v3496_v62, %v4660_v44  ;;  %v3561_v27 = vpop.f32.mrf.mxu1 }
 0x1d9   :  { %v3498_v20 = vpop.f32.mrf.mxu0 }
 0x1da   :  { %v2633_v1 = vsel %vm2601_vm11, %v2571_v28, %v2617_v58  ;;  %v2576_v30 = vadd.f32 %v3560_v24, %v2479_v48  ;;  %v3499_v52 = vadd.f32 %v3498_v20, %v3497_v16  ;;  %v3562_v25 = vpop.f32.mrf.mxu1 }
 0x1db   :  { %v3039_v29 = vpack.c.bf16 %v2633_v1, %v2632_v26  ;;  %v3500_v55 = vpop.f32.mrf.mxu0  ;;  %v3563_v31 = vadd.f32 %v3562_v25, %v3561_v27 }
 0x1dc   :  { %v2482_v40 = vadd.f32 %v3499_v52, %v2385_v13  ;;  %v3564_v37 = vpop.f32.mrf.mxu1  ;;  %v2618_v23 = vmul.f32 0.2, %v2576_v30  ;;  %vm2602_vm12 = vcmp.ge.f32.partialorder %v2576_v30, 0.0 }
 0x1dd   :  { %3055 = vst [vmem:[%s4750_s3 + $0x28] sm:$0xff] %v3039_v29   ;;  %v3501_v44 = vpop.f32.mrf.mxu0 }
 0x1de   :  { %v2579_v60 = vadd.f32 %v3563_v31, %v2482_v40  ;;  %v3502_v19 = vadd.f32 %v3501_v44, %v3500_v55  ;;  %v3565_v59 = vpop.f32.mrf.mxu1  ;;  %v2634_v9 = vsel %vm2602_vm12, %v2576_v30, %v2618_v23 }
 0x1df   :  { %v3503_v50 = vpop.f32.mrf.mxu0  ;;  %v3566_v32 = vadd.f32 %v3565_v59, %v3564_v37 }
 0x1e0   :  { %vm2603_vm13 = vcmp.ge.f32.partialorder %v2579_v60, 0.0  ;;  %v2619_v21 = vmul.f32 0.2, %v2579_v60  ;;  %v2487_v46 = vadd.f32 %v3502_v19, %v4754_v22  ;;  %v3567_v47 = vpop.f32.mrf.mxu1 }
 0x1e1   :  { %v3504_v4 = vpop.f32.mrf.mxu0 }
 0x1e2   :  { %v2635_v45 = vsel %vm2603_vm13, %v2579_v60, %v2619_v21  ;;  %v2584_v2 = vadd.f32 %v3566_v32, %v2487_v46  ;;  %v3505_v3 = vadd.f32 %v3504_v4, %v3503_v50  ;;  %v3568_v51 = vpop.f32.mrf.mxu1 }
 0x1e3   :  { %v3044_v43 = vpack.c.bf16 %v2635_v45, %v2634_v9  ;;  %v3569_v7 = vadd.f32 %v3568_v51, %v3567_v47 }
 0x1e4   :  { %v2490_v17 = vadd.f32 %v3505_v3, %v2393_v10  ;;  %v2620_v63 = vmul.f32 0.2, %v2584_v2  ;;  %vm2604_vm14 = vcmp.ge.f32.partialorder %v2584_v2, 0.0 }
 0x1e5   :  { %3056 = vst [vmem:[%s4750_s3 + $0x30] sm:$0xff] %v3044_v43  }
 0x1e6   :  { %v2587_v8 = vadd.f32 %v3569_v7, %v2490_v17  ;;  %v2636_v33 = vsel %vm2604_vm14, %v2584_v2, %v2620_v63 }
 0x1e8   :  { %vm2605_vm15 = vcmp.ge.f32.partialorder %v2587_v8, 0.0  ;;  %v2621_v35 = vmul.f32 0.2, %v2587_v8 }
 0x1ea   :  { %v2637_v6 = vsel %vm2605_vm15, %v2587_v8, %v2621_v35 }
 0x1eb   :  { %v3049_v61 = vpack.c.bf16 %v2637_v6, %v2636_v33 }
 0x1ed   :  { %3057 = vst [vmem:[%s4750_s3 + $0x38] sm:$0xff] %v3049_v61  }

// kernel: discriminator_forward.11
= control target key start
LH: loop header
LB: loop body
LE: loop exit
PB: predicated region body
PF: predicated region fallthrough
CT: control target
= control target key end

     0   :  { %s2707_s1 = inlined_call_operand.vmem [shape: bf16[2048,128], index: 1, kind: input, shape index: {}]   ;;  %s2708_s0 = inlined_call_operand.vmem [shape: bf16[32,2048], index: 0, kind: input, shape index: {}]   ;;  %s2709_s2 = inlined_call_operand.vmem [shape: f32[1,128], index: 2, kind: input, shape index: {}]   ;;  %s2710_s3 = inlined_call_operand.vmem [shape: bf16[32,128], index: 3, kind: output, shape index: {}]  }
   0x1   :  { %v2070_v0 = vld [vmem:[%s2707_s1 + $0x78] sm:$0xff]   ;;  %v2074_v4 = vld [vmem:[%s2707_s1 + $0x70] sm:$0xff]   ;;  %v2078_v8 = vld [vmem:[%s2707_s1 + $0x68] sm:$0xff]  }
   0x2   :  { %v2071_v1 = vld [vmem:[%s2707_s1 + $0xf8] sm:$0xff]   ;;  %1846 = vmatprep.subr.bf16.mxu0 %v2070_v0  ;;  %v2075_v5 = vld [vmem:[%s2707_s1 + $0xf0] sm:$0xff]   ;;  %v2079_v9 = vld [vmem:[%s2707_s1 + $0xe8] sm:$0xff]  }
   0x3   :  { %v2072_v2 = vld [vmem:[%s2707_s1 + $0x38] sm:$0xff]   ;;  %1874 = vmatprep.subr.bf16.mxu1 %v2071_v1  ;;  %v2076_v6 = vld [vmem:[%s2707_s1 + $0x30] sm:$0xff]   ;;  %v2080_v10 = vld [vmem:[%s2707_s1 + $0x28] sm:$0xff]  }
   0x4   :  { %v2073_v3 = vld [vmem:[%s2707_s1 + $0xb8] sm:$0xff]   ;;  %1847 = vmatpush3.bf16.msra.mxu0 %v2072_v2  ;;  %v2077_v7 = vld [vmem:[%s2707_s1 + $0xb0] sm:$0xff]   ;;  %v2081_v11 = vld [vmem:[%s2707_s1 + $0xa8] sm:$0xff]  }
   0x5   :  { %1875 = vmatpush3.bf16.msra.mxu1 %v2073_v3  ;;  %1848 = vmatprep.subr.bf16.mxu0 %v2074_v4  ;;  %v2082_v12 = vld [vmem:[%s2707_s1 + $0x60] sm:$0xff]   ;;  %v2086_v16 = vld [vmem:[%s2707_s1 + $0x58] sm:$0xff]   ;;  %v2090_v20 = vld [vmem:[%s2707_s1 + $0x50] sm:$0xff]  }
   0x6   :  { %1876 = vmatprep.subr.bf16.mxu1 %v2075_v5  ;;  %v2083_v13 = vld [vmem:[%s2707_s1 + $0xe0] sm:$0xff]   ;;  %v2087_v17 = vld [vmem:[%s2707_s1 + $0xd8] sm:$0xff]   ;;  %v2091_v21 = vld [vmem:[%s2707_s1 + $0xd0] sm:$0xff]  }
   0x7   :  { %v2084_v14 = vld [vmem:[%s2707_s1 + $0x20] sm:$0xff]   ;;  %v2088_v18 = vld [vmem:[%s2707_s1 + $0x18] sm:$0xff]   ;;  %v2092_v22 = vld [vmem:[%s2707_s1 + $0x10] sm:$0xff]  }
   0x8   :  { %1849 = vmatpush3.bf16.msra.mxu0 %v2076_v6  ;;  %v2085_v15 = vld [vmem:[%s2707_s1 + $0xa0] sm:$0xff]   ;;  %v2089_v19 = vld [vmem:[%s2707_s1 + $0x98] sm:$0xff]   ;;  %v2093_v23 = vld [vmem:[%s2707_s1 + $0x90] sm:$0xff]  }
   0x9   :  { %1877 = vmatpush3.bf16.msra.mxu1 %v2077_v7  ;;  %1850 = vmatprep.subr.bf16.mxu0 %v2078_v8  ;;  %v2094_v24 = vld [vmem:[%s2707_s1 + $0x48] sm:$0xff]   ;;  %v2098_v28 = vld [vmem:[%s2707_s1 + $0x40] sm:$0xff]   ;;  %v2102_v40 = vld [vmem:[%s2707_s1 + $0x178] sm:$0xff]  }
   0xa   :  { %1878 = vmatprep.subr.bf16.mxu1 %v2079_v9  ;;  %v2095_v25 = vld [vmem:[%s2707_s1 + $0xc8] sm:$0xff]   ;;  %v2099_v29 = vld [vmem:[%s2707_s1 + $0xc0] sm:$0xff]   ;;  %v2103_v41 = vld [vmem:[%s2707_s1 + $0x1f8] sm:$0xff]  }
   0xb   :  { %v2096_v26 = vld [vmem:[%s2707_s1 + $0x8] sm:$0xff]   ;;  %v2100_v30 = vld [vmem:[%s2707_s1] sm:$0xff]   ;;  %v2104_v42 = vld [vmem:[%s2707_s1 + $0x138] sm:$0xff]  }
   0xc   :  { %1851 = vmatpush3.bf16.msra.mxu0 %v2080_v10  ;;  %v2097_v27 = vld [vmem:[%s2707_s1 + $0x88] sm:$0xff]   ;;  %v2101_v31 = vld [vmem:[%s2707_s1 + $0x80] sm:$0xff]   ;;  %v2105_v43 = vld [vmem:[%s2707_s1 + $0x1b8] sm:$0xff]  }
   0xd   :  { %1879 = vmatpush3.bf16.msra.mxu1 %v2081_v11  ;;  %1852 = vmatprep.subr.bf16.mxu0 %v2082_v12  ;;  %v15_v32 = vld [vmem:[%s2708_s0] sm:$0xff]  ;;  %v16_v34 = vld [vmem:[%s2708_s0 + $0x8] sm:$0xff]  ;;  %v2106_v44 = vld [vmem:[%s2707_s1 + $0x170] sm:$0xff]  }
   0xe   :  { %1880 = vmatprep.subr.bf16.mxu1 %v2083_v13  ;;  %v23_v33 = vld [vmem:[%s2708_s0 + $0x40] sm:$0xff]  ;;  %v24_v37 = vld [vmem:[%s2708_s0 + $0x48] sm:$0xff]  ;;  %v2107_v45 = vld [vmem:[%s2707_s1 + $0x1f0] sm:$0xff]  }
   0xf   :  { %v1667_v35 = vcombine.low %v15_v32, %v23_v33  ;;  %v1668_v36 = vcombine.high %v15_v32, %v23_v33  ;;  %v1669_v38 = vcombine.low %v16_v34, %v24_v37  ;;  %v1670_v39 = vcombine.high %v16_v34, %v24_v37  ;;  %v2108_v46 = vld [vmem:[%s2707_s1 + $0x130] sm:$0xff]   ;;  %v2110_v48 = vld [vmem:[%s2707_s1 + $0x168] sm:$0xff]   ;;  %v2114_v52 = vld [vmem:[%s2707_s1 + $0x160] sm:$0xff]  }
  0x10   :  { %1853 = vmatpush3.bf16.msra.mxu0 %v2084_v14  ;;  %v2109_v47 = vld [vmem:[%s2707_s1 + $0x1b0] sm:$0xff]   ;;  %v2111_v49 = vld [vmem:[%s2707_s1 + $0x1e8] sm:$0xff]   ;;  %v2115_v53 = vld [vmem:[%s2707_s1 + $0x1e0] sm:$0xff]  }
  0x11   :  { %1881 = vmatpush3.bf16.msra.mxu1 %v2085_v15  ;;  %1854 = vmatprep.subr.bf16.mxu0 %v2086_v16  ;;  %v2112_v50 = vld [vmem:[%s2707_s1 + $0x128] sm:$0xff]   ;;  %v2116_v54 = vld [vmem:[%s2707_s1 + $0x120] sm:$0xff]   ;;  %v2118_v56 = vld [vmem:[%s2707_s1 + $0x158] sm:$0xff]  }
  0x12   :  { %1882 = vmatprep.subr.bf16.mxu1 %v2087_v17  ;;  %1270 = vmatprep.mubr.bf16.mxu0 %v1668_v36  ;;  %v2113_v51 = vld [vmem:[%s2707_s1 + $0x1a8] sm:$0xff]   ;;  %v2117_v55 = vld [vmem:[%s2707_s1 + $0x1a0] sm:$0xff]   ;;  %v2119_v57 = vld [vmem:[%s2707_s1 + $0x1d8] sm:$0xff]  }
  0x13   :  { %1319 = vmatprep.mubr.bf16.mxu1 %v1670_v39  ;;  %v2120_v58 = vld [vmem:[%s2707_s1 + $0x118] sm:$0xff]   ;;  %v31_v60 = vld [vmem:[%s2708_s0 + $0x80] sm:$0xff]  ;;  %v32_v0 = vld [vmem:[%s2708_s0 + $0x88] sm:$0xff] }
  0x14   :  { %1855 = vmatpush3.bf16.msra.mxu0 %v2088_v18  ;;  %v2121_v59 = vld [vmem:[%s2707_s1 + $0x198] sm:$0xff]   ;;  %v39_v61 = vld [vmem:[%s2708_s0 + $0xc0] sm:$0xff]  ;;  %v40_v1 = vld [vmem:[%s2708_s0 + $0xc8] sm:$0xff] }
  0x15   :  { %1883 = vmatpush3.bf16.msra.mxu1 %v2089_v19  ;;  %1856 = vmatprep.subr.bf16.mxu0 %v2090_v20  ;;  %v1684_v62 = vcombine.high %v31_v60, %v39_v61  ;;  %v1683_v63 = vcombine.low %v31_v60, %v39_v61  ;;  %v1686_v2 = vcombine.high %v32_v0, %v40_v1  ;;  %v2122_v3 = vld [vmem:[%s2707_s1 + $0x150] sm:$0xff]   ;;  %v2126_v8 = vld [vmem:[%s2707_s1 + $0x148] sm:$0xff]   ;;  %v2130_v12 = vld [vmem:[%s2707_s1 + $0x140] sm:$0xff]  }
  0x16   :  { %1884 = vmatprep.subr.bf16.mxu1 %v2091_v21  ;;  %v1685_v4 = vcombine.low %v32_v0, %v40_v1  ;;  %v2123_v5 = vld [vmem:[%s2707_s1 + $0x1d0] sm:$0xff]   ;;  %v2127_v9 = vld [vmem:[%s2707_s1 + $0x1c8] sm:$0xff]   ;;  %v2131_v13 = vld [vmem:[%s2707_s1 + $0x1c0] sm:$0xff]  }
  0x17   :  { %v2124_v6 = vld [vmem:[%s2707_s1 + $0x110] sm:$0xff]   ;;  %v2128_v10 = vld [vmem:[%s2707_s1 + $0x108] sm:$0xff]   ;;  %v2132_v14 = vld [vmem:[%s2707_s1 + $0x100] sm:$0xff]  }
  0x18   :  { %1857 = vmatpush3.bf16.msra.mxu0 %v2092_v22  ;;  %v2125_v7 = vld [vmem:[%s2707_s1 + $0x190] sm:$0xff]   ;;  %v2129_v11 = vld [vmem:[%s2707_s1 + $0x188] sm:$0xff]   ;;  %v2133_v15 = vld [vmem:[%s2707_s1 + $0x180] sm:$0xff]  }
  0x19   :  { %1885 = vmatpush3.bf16.msra.mxu1 %v2093_v23  ;;  %1858 = vmatprep.subr.bf16.mxu0 %v2094_v24  ;;  %v17_v16 = vld [vmem:[%s2708_s0 + $0x10] sm:$0xff]  ;;  %v18_v18 = vld [vmem:[%s2708_s0 + $0x18] sm:$0xff]  ;;  %v2142_v36 = vld [vmem:[%s2707_s1 + $0x268] sm:$0xff]  }
  0x1a   :  { %1886 = vmatprep.subr.bf16.mxu1 %v2095_v25  ;;  %v25_v17 = vld [vmem:[%s2708_s0 + $0x50] sm:$0xff]  ;;  %v26_v19 = vld [vmem:[%s2708_s0 + $0x58] sm:$0xff]  ;;  %v2143_v37 = vld [vmem:[%s2707_s1 + $0x2e8] sm:$0xff]  }
  0x1b   :  { %v1671_v20 = vcombine.low %v17_v16, %v25_v17  ;;  %v1672_v21 = vcombine.high %v17_v16, %v25_v17  ;;  %v1673_v22 = vcombine.low %v18_v18, %v26_v19  ;;  %v1674_v23 = vcombine.high %v18_v18, %v26_v19  ;;  %v2134_v24 = vld [vmem:[%s2707_s1 + $0x278] sm:$0xff]   ;;  %v33_v32 = vld [vmem:[%s2708_s0 + $0x90] sm:$0xff]  ;;  %v2162_v60 = vld [vmem:[%s2707_s1 + $0x240] sm:$0xff]  }
  0x1c   :  { %1859 = vmatpush3.bf16.msra.mxu0 %v2096_v26  ;;  %v2135_v25 = vld [vmem:[%s2707_s1 + $0x2f8] sm:$0xff]   ;;  %v41_v33 = vld [vmem:[%s2708_s0 + $0xd0] sm:$0xff]  ;;  %v2163_v61 = vld [vmem:[%s2707_s1 + $0x2c0] sm:$0xff]  }
  0x1d   :  { %1887 = vmatpush3.bf16.msra.mxu1 %v2097_v27  ;;  %1860 = vmatprep.subr.bf16.mxu0 %v2098_v28  ;;  %v2136_v26 = vld [vmem:[%s2707_s1 + $0x238] sm:$0xff]   ;;  %v2138_v28 = vld [vmem:[%s2707_s1 + $0x270] sm:$0xff]   ;;  %v1688_v34 = vcombine.high %v33_v32, %v41_v33  ;;  %v19_v0 = vld [vmem:[%s2708_s0 + $0x20] sm:$0xff] }
  0x1e   :  { %1888 = vmatprep.subr.bf16.mxu1 %v2099_v29  ;;  %v2137_v27 = vld [vmem:[%s2707_s1 + $0x2b8] sm:$0xff]   ;;  %v2139_v29 = vld [vmem:[%s2707_s1 + $0x2f0] sm:$0xff]   ;;  %v27_v1 = vld [vmem:[%s2708_s0 + $0x60] sm:$0xff] }
  0x1f   :  { %v42_v39 = vld [vmem:[%s2708_s0 + $0xd8] sm:$0xff]  ;;  %v35_v16 = vld [vmem:[%s2708_s0 + $0xa0] sm:$0xff] }
  0x20   :  { %1861 = vmatpush3.bf16.msra.mxu0 %v2100_v30  ;;  %v2140_v30 = vld [vmem:[%s2707_s1 + $0x230] sm:$0xff]   ;;  %v43_v17 = vld [vmem:[%s2708_s0 + $0xe0] sm:$0xff] }
  0x21   :  { %1889 = vmatpush3.bf16.msra.mxu1 %v2101_v31  ;;  %1902 = vmatprep.subr.bf16.mxu0 %v2102_v40  ;;  %v2141_v31 = vld [vmem:[%s2707_s1 + $0x2b0] sm:$0xff]   ;;  %v1692_v18 = vcombine.high %v35_v16, %v43_v17  ;;  %v1691_v19 = vcombine.low %v35_v16, %v43_v17 }
  0x22   :  { %1930 = vmatprep.subr.bf16.mxu1 %v2103_v41  ;;  %v2144_v41 = vld [vmem:[%s2707_s1 + $0x228] sm:$0xff]  }
  0x23   :  { %1271 = vmatmul.mubr.bf16.vlgmr.msra.gmra.mxu0 %v1667_v35  ;;  %v1687_v35 = vcombine.low %v33_v32, %v41_v33  ;;  %v2182_v32 = vld [vmem:[%s2707_s1 + $0x358] sm:$0xff]  }
  0x24   :  { %1320 = vmatmul.mubr.bf16.vlgmr.msra.gmra.mxu1 %v1669_v38  ;;  %1903 = vmatpush3.bf16.msra.mxu0 %v2104_v42  ;;  %v34_v38 = vld [vmem:[%s2708_s0 + $0x98] sm:$0xff] }
  0x25   :  { %1931 = vmatpush3.bf16.msra.mxu1 %v2105_v43  ;;  %1904 = vmatprep.subr.bf16.mxu0 %v2106_v44  ;;  %v1690_v40 = vcombine.high %v34_v38, %v42_v39  ;;  %v1689_v42 = vcombine.low %v34_v38, %v42_v39  ;;  %v2145_v43 = vld [vmem:[%s2707_s1 + $0x2a8] sm:$0xff]   ;;  %v2146_v44 = vld [vmem:[%s2707_s1 + $0x260] sm:$0xff]   ;;  %v2183_v33 = vld [vmem:[%s2707_s1 + $0x3d8] sm:$0xff]  }
  0x26   :  { %1932 = vmatprep.subr.bf16.mxu1 %v2107_v45  ;;  %1278 = vmatprep.mubr.bf16.mxu0 %v1684_v62  ;;  %v2147_v45 = vld [vmem:[%s2707_s1 + $0x2e0] sm:$0xff]   ;;  %v2188_v38 = vld [vmem:[%s2707_s1 + $0x310] sm:$0xff]  }
  0x27   :  { %1327 = vmatprep.mubr.bf16.mxu1 %v1686_v2  ;;  %v2164_v62 = vld [vmem:[%s2707_s1 + $0x200] sm:$0xff]   ;;  %v1675_v2 = vcombine.low %v19_v0, %v27_v1  ;;  %v2189_v39 = vld [vmem:[%s2707_s1 + $0x390] sm:$0xff]  }
  0x28   :  { %1905 = vmatpush3.bf16.msra.mxu0 %v2108_v46  ;;  %v2148_v46 = vld [vmem:[%s2707_s1 + $0x220] sm:$0xff]  }
  0x29   :  { %1933 = vmatpush3.bf16.msra.mxu1 %v2109_v47  ;;  %1906 = vmatprep.subr.bf16.mxu0 %v2110_v48  ;;  %v2149_v47 = vld [vmem:[%s2707_s1 + $0x2a0] sm:$0xff]   ;;  %v2150_v48 = vld [vmem:[%s2707_s1 + $0x258] sm:$0xff]  }
  0x2a   :  { %1934 = vmatprep.subr.bf16.mxu1 %v2111_v49  ;;  %v2151_v49 = vld [vmem:[%s2707_s1 + $0x2d8] sm:$0xff]  }
  0x2b   :  { %1279 = vmatmul.mubr.bf16.gmra.mxu0 %v1683_v63  ;;  %v2165_v63 = vld [vmem:[%s2707_s1 + $0x280] sm:$0xff]  }
  0x2c   :  { %1907 = vmatpush3.bf16.msra.mxu0 %v2112_v50  ;;  %1328 = vmatmul.mubr.bf16.gmra.mxu1 %v1685_v4  ;;  %v2152_v50 = vld [vmem:[%s2707_s1 + $0x218] sm:$0xff]   ;;  %v20_v4 = vld [vmem:[%s2708_s0 + $0x28] sm:$0xff] }
  0x2d   :  { %1935 = vmatpush3.bf16.msra.mxu1 %v2113_v51  ;;  %1908 = vmatprep.subr.bf16.mxu0 %v2114_v52  ;;  %v2153_v51 = vld [vmem:[%s2707_s1 + $0x298] sm:$0xff]   ;;  %v2154_v52 = vld [vmem:[%s2707_s1 + $0x250] sm:$0xff]  }
  0x2e   :  { %1936 = vmatprep.subr.bf16.mxu1 %v2115_v53  ;;  %1368 = vmatprep.mubr.bf16.mxu0 %v1672_v21  ;;  %v2155_v53 = vld [vmem:[%s2707_s1 + $0x2d0] sm:$0xff]   ;;  %v2175_v21 = vld [vmem:[%s2707_s1 + $0x3e8] sm:$0xff]  }
  0x2f   :  { %1417 = vmatprep.mubr.bf16.mxu1 %v1674_v23  ;;  %v44_v23 = vld [vmem:[%s2708_s0 + $0xe8] sm:$0xff] }
  0x30   :  { %1909 = vmatpush3.bf16.msra.mxu0 %v2116_v54  ;;  %v2156_v54 = vld [vmem:[%s2707_s1 + $0x210] sm:$0xff]  }
  0x31   :  { %1937 = vmatpush3.bf16.msra.mxu1 %v2117_v55  ;;  %1910 = vmatprep.subr.bf16.mxu0 %v2118_v56  ;;  %v2157_v55 = vld [vmem:[%s2707_s1 + $0x290] sm:$0xff]   ;;  %v2158_v56 = vld [vmem:[%s2707_s1 + $0x248] sm:$0xff]  }
  0x32   :  { %1938 = vmatprep.subr.bf16.mxu1 %v2119_v57  ;;  %v2159_v57 = vld [vmem:[%s2707_s1 + $0x2c8] sm:$0xff]  }
  0x34   :  { %1911 = vmatpush3.bf16.msra.mxu0 %v2120_v58  ;;  %v2160_v58 = vld [vmem:[%s2707_s1 + $0x208] sm:$0xff]  }
  0x35   :  { %1939 = vmatpush3.bf16.msra.mxu1 %v2121_v59  ;;  %1912 = vmatprep.subr.bf16.mxu0 %v2122_v3  ;;  %v2161_v59 = vld [vmem:[%s2707_s1 + $0x288] sm:$0xff]   ;;  %v1676_v3 = vcombine.high %v19_v0, %v27_v1 }
  0x36   :  { %1940 = vmatprep.subr.bf16.mxu1 %v2123_v5  ;;  %v28_v5 = vld [vmem:[%s2708_s0 + $0x68] sm:$0xff] }
  0x38   :  { %1913 = vmatpush3.bf16.msra.mxu0 %v2124_v6  ;;  %v1677_v6 = vcombine.low %v20_v4, %v28_v5 }
  0x39   :  { %1941 = vmatpush3.bf16.msra.mxu1 %v2125_v7  ;;  %1914 = vmatprep.subr.bf16.mxu0 %v2126_v8  ;;  %v1678_v7 = vcombine.high %v20_v4, %v28_v5  ;;  %v2166_v8 = vld [vmem:[%s2707_s1 + $0x378] sm:$0xff]  }
  0x3a   :  { %1942 = vmatprep.subr.bf16.mxu1 %v2127_v9  ;;  %v2167_v9 = vld [vmem:[%s2707_s1 + $0x3f8] sm:$0xff]  }
  0x3c   :  { %1915 = vmatpush3.bf16.msra.mxu0 %v2128_v10  ;;  %v2168_v10 = vld [vmem:[%s2707_s1 + $0x338] sm:$0xff]  }
  0x3d   :  { %1943 = vmatpush3.bf16.msra.mxu1 %v2129_v11  ;;  %1916 = vmatprep.subr.bf16.mxu0 %v2130_v12  ;;  %v2169_v11 = vld [vmem:[%s2707_s1 + $0x3b8] sm:$0xff]   ;;  %v2170_v12 = vld [vmem:[%s2707_s1 + $0x370] sm:$0xff]  }
  0x3e   :  { %1944 = vmatprep.subr.bf16.mxu1 %v2131_v13  ;;  %v2171_v13 = vld [vmem:[%s2707_s1 + $0x3f0] sm:$0xff]  }
  0x40   :  { %1917 = vmatpush3.bf16.msra.mxu0 %v2132_v14  ;;  %v2172_v14 = vld [vmem:[%s2707_s1 + $0x330] sm:$0xff]  }
  0x41   :  { %1945 = vmatpush3.bf16.msra.mxu1 %v2133_v15  ;;  %1958 = vmatprep.subr.bf16.mxu0 %v2134_v24  ;;  %v2173_v15 = vld [vmem:[%s2707_s1 + $0x3b0] sm:$0xff]  }
  0x42   :  { %1986 = vmatprep.subr.bf16.mxu1 %v2135_v25  ;;  %v2176_v25 = vld [vmem:[%s2707_s1 + $0x328] sm:$0xff]  }
  0x43   :  { %1369 = vmatmul.mubr.bf16.vlgmr.msra.gmra.mxu0 %v1671_v20  ;;  %v2174_v20 = vld [vmem:[%s2707_s1 + $0x368] sm:$0xff]  }
  0x44   :  { %1418 = vmatmul.mubr.bf16.vlgmr.msra.gmra.mxu1 %v1673_v22  ;;  %1959 = vmatpush3.bf16.msra.mxu0 %v2136_v26  ;;  %v36_v22 = vld [vmem:[%s2708_s0 + $0xa8] sm:$0xff] }
  0x45   :  { %1987 = vmatpush3.bf16.msra.mxu1 %v2137_v27  ;;  %1960 = vmatprep.subr.bf16.mxu0 %v2138_v28  ;;  %v1694_v24 = vcombine.high %v36_v22, %v44_v23  ;;  %v1693_v26 = vcombine.low %v36_v22, %v44_v23  ;;  %v2177_v27 = vld [vmem:[%s2707_s1 + $0x3a8] sm:$0xff]   ;;  %v2178_v28 = vld [vmem:[%s2707_s1 + $0x360] sm:$0xff]  }
  0x46   :  { %1988 = vmatprep.subr.bf16.mxu1 %v2139_v29  ;;  %1376 = vmatprep.mubr.bf16.mxu0 %v1688_v34  ;;  %v2179_v29 = vld [vmem:[%s2707_s1 + $0x3e0] sm:$0xff]   ;;  %v2184_v34 = vld [vmem:[%s2707_s1 + $0x318] sm:$0xff]  }
  0x47   :  { %1425 = vmatprep.mubr.bf16.mxu1 %v1690_v40  ;;  %v2190_v40 = vld [vmem:[%s2707_s1 + $0x348] sm:$0xff]  }
  0x48   :  { %1961 = vmatpush3.bf16.msra.mxu0 %v2140_v30  ;;  %v2180_v30 = vld [vmem:[%s2707_s1 + $0x320] sm:$0xff]  }
  0x49   :  { %1989 = vmatpush3.bf16.msra.mxu1 %v2141_v31  ;;  %1962 = vmatprep.subr.bf16.mxu0 %v2142_v36  ;;  %v2181_v31 = vld [vmem:[%s2707_s1 + $0x3a0] sm:$0xff]   ;;  %v2186_v36 = vld [vmem:[%s2707_s1 + $0x350] sm:$0xff]  }
  0x4a   :  { %1990 = vmatprep.subr.bf16.mxu1 %v2143_v37  ;;  %v2187_v37 = vld [vmem:[%s2707_s1 + $0x3d0] sm:$0xff]  }
  0x4b   :  { %1377 = vmatmul.mubr.bf16.gmra.mxu0 %v1687_v35  ;;  %v2185_v35 = vld [vmem:[%s2707_s1 + $0x398] sm:$0xff]  }
  0x4c   :  { %1963 = vmatpush3.bf16.msra.mxu0 %v2144_v41  ;;  %1426 = vmatmul.mubr.bf16.gmra.mxu1 %v1689_v42  ;;  %v2191_v41 = vld [vmem:[%s2707_s1 + $0x3c8] sm:$0xff]  }
  0x4d   :  { %1991 = vmatpush3.bf16.msra.mxu1 %v2145_v43  ;;  %1964 = vmatprep.subr.bf16.mxu0 %v2146_v44  ;;  %v2192_v42 = vld [vmem:[%s2707_s1 + $0x308] sm:$0xff]   ;;  %v2194_v44 = vld [vmem:[%s2707_s1 + $0x340] sm:$0xff]  }
  0x4e   :  { %1992 = vmatprep.subr.bf16.mxu1 %v2147_v45  ;;  %1466 = vmatprep.mubr.bf16.mxu0 %v1676_v3  ;;  %v2193_v43 = vld [vmem:[%s2707_s1 + $0x388] sm:$0xff]   ;;  %v2195_v45 = vld [vmem:[%s2707_s1 + $0x3c0] sm:$0xff]  }
  0x4f   :  { %1515 = vmatprep.mubr.bf16.mxu1 %v1678_v7 }
  0x50   :  { %1965 = vmatpush3.bf16.msra.mxu0 %v2148_v46  ;;  %v2196_v46 = vld [vmem:[%s2707_s1 + $0x300] sm:$0xff]  }
  0x51   :  { %1993 = vmatpush3.bf16.msra.mxu1 %v2149_v47  ;;  %1966 = vmatprep.subr.bf16.mxu0 %v2150_v48  ;;  %v2197_v47 = vld [vmem:[%s2707_s1 + $0x380] sm:$0xff]   ;;  %v21_v48 = vld [vmem:[%s2708_s0 + $0x30] sm:$0xff] }
  0x52   :  { %1994 = vmatprep.subr.bf16.mxu1 %v2151_v49  ;;  %v29_v49 = vld [vmem:[%s2708_s0 + $0x70] sm:$0xff] }
  0x54   :  { %1967 = vmatpush3.bf16.msra.mxu0 %v2152_v50  ;;  %v22_v50 = vld [vmem:[%s2708_s0 + $0x38] sm:$0xff] }
  0x55   :  { %1995 = vmatpush3.bf16.msra.mxu1 %v2153_v51  ;;  %1968 = vmatprep.subr.bf16.mxu0 %v2154_v52  ;;  %v1679_v51 = vcombine.low %v21_v48, %v29_v49  ;;  %v1680_v52 = vcombine.high %v21_v48, %v29_v49 }
  0x56   :  { %1996 = vmatprep.subr.bf16.mxu1 %v2155_v53  ;;  %v30_v53 = vld [vmem:[%s2708_s0 + $0x78] sm:$0xff] }
  0x58   :  { %1969 = vmatpush3.bf16.msra.mxu0 %v2156_v54  ;;  %v37_v54 = vld [vmem:[%s2708_s0 + $0xb0] sm:$0xff] }
  0x59   :  { %1997 = vmatpush3.bf16.msra.mxu1 %v2157_v55  ;;  %1970 = vmatprep.subr.bf16.mxu0 %v2158_v56  ;;  %v45_v55 = vld [vmem:[%s2708_s0 + $0xf0] sm:$0xff]  ;;  %v1681_v56 = vcombine.low %v22_v50, %v30_v53 }
  0x5a   :  { %1998 = vmatprep.subr.bf16.mxu1 %v2159_v57  ;;  %v1682_v57 = vcombine.high %v22_v50, %v30_v53 }
  0x5c   :  { %1971 = vmatpush3.bf16.msra.mxu0 %v2160_v58  ;;  %v1696_v58 = vcombine.high %v37_v54, %v45_v55 }
  0x5d   :  { %1999 = vmatpush3.bf16.msra.mxu1 %v2161_v59  ;;  %1972 = vmatprep.subr.bf16.mxu0 %v2162_v60  ;;  %v38_v59 = vld [vmem:[%s2708_s0 + $0xb8] sm:$0xff] }
  0x5e   :  { %2000 = vmatprep.subr.bf16.mxu1 %v2163_v61  ;;  %v46_v60 = vld [vmem:[%s2708_s0 + $0xf8] sm:$0xff] }
  0x5f   :  { %v1698_v61 = vcombine.high %v38_v59, %v46_v60 }
  0x60   :  { %1973 = vmatpush3.bf16.msra.mxu0 %v2164_v62  ;;  %v1695_v62 = vcombine.low %v37_v54, %v45_v55 }
  0x61   :  { %2001 = vmatpush3.bf16.msra.mxu1 %v2165_v63  ;;  %2014 = vmatprep.subr.bf16.mxu0 %v2166_v8  ;;  %v1697_v63 = vcombine.low %v38_v59, %v46_v60 }
  0x62   :  { %2042 = vmatprep.subr.bf16.mxu1 %v2167_v9 }
  0x63   :  { %1467 = vmatmul.mubr.bf16.vlgmr.msra.gmra.mxu0 %v1675_v2 }
  0x64   :  { %1516 = vmatmul.mubr.bf16.vlgmr.msra.gmra.mxu1 %v1677_v6  ;;  %2015 = vmatpush3.bf16.msra.mxu0 %v2168_v10 }
  0x65   :  { %2043 = vmatpush3.bf16.msra.mxu1 %v2169_v11  ;;  %2016 = vmatprep.subr.bf16.mxu0 %v2170_v12 }
  0x66   :  { %2044 = vmatprep.subr.bf16.mxu1 %v2171_v13  ;;  %1474 = vmatprep.mubr.bf16.mxu0 %v1692_v18 }
  0x67   :  { %1523 = vmatprep.mubr.bf16.mxu1 %v1694_v24 }
  0x68   :  { %2017 = vmatpush3.bf16.msra.mxu0 %v2172_v14 }
  0x69   :  { %2045 = vmatpush3.bf16.msra.mxu1 %v2173_v15  ;;  %2018 = vmatprep.subr.bf16.mxu0 %v2174_v20 }
  0x6a   :  { %2046 = vmatprep.subr.bf16.mxu1 %v2175_v21 }
  0x6b   :  { %1475 = vmatmul.mubr.bf16.gmra.mxu0 %v1691_v19 }
  0x6c   :  { %2019 = vmatpush3.bf16.msra.mxu0 %v2176_v25  ;;  %1524 = vmatmul.mubr.bf16.gmra.mxu1 %v1693_v26 }
  0x6d   :  { %2047 = vmatpush3.bf16.msra.mxu1 %v2177_v27  ;;  %2020 = vmatprep.subr.bf16.mxu0 %v2178_v28 }
  0x6e   :  { %2048 = vmatprep.subr.bf16.mxu1 %v2179_v29  ;;  %1564 = vmatprep.mubr.bf16.mxu0 %v1680_v52 }
  0x6f   :  { %1613 = vmatprep.mubr.bf16.mxu1 %v1682_v57 }
  0x70   :  { %2021 = vmatpush3.bf16.msra.mxu0 %v2180_v30 }
  0x71   :  { %2049 = vmatpush3.bf16.msra.mxu1 %v2181_v31  ;;  %2022 = vmatprep.subr.bf16.mxu0 %v2182_v32 }
  0x72   :  { %2050 = vmatprep.subr.bf16.mxu1 %v2183_v33 }
  0x74   :  { %2023 = vmatpush3.bf16.msra.mxu0 %v2184_v34 }
  0x75   :  { %2051 = vmatpush3.bf16.msra.mxu1 %v2185_v35  ;;  %2024 = vmatprep.subr.bf16.mxu0 %v2186_v36 }
  0x76   :  { %2052 = vmatprep.subr.bf16.mxu1 %v2187_v37 }
  0x78   :  { %2025 = vmatpush3.bf16.msra.mxu0 %v2188_v38 }
  0x79   :  { %2053 = vmatpush3.bf16.msra.mxu1 %v2189_v39  ;;  %2026 = vmatprep.subr.bf16.mxu0 %v2190_v40  ;;  %v1666_v40 = vld [vmem:[%s2709_s2] ss:$0 sm:$0xff] }
  0x7a   :  { %2054 = vmatprep.subr.bf16.mxu1 %v2191_v41 }
  0x7c   :  { %2027 = vmatpush3.bf16.msra.mxu0 %v2192_v42 }
  0x7d   :  { %2055 = vmatpush3.bf16.msra.mxu1 %v2193_v43  ;;  %2028 = vmatprep.subr.bf16.mxu0 %v2194_v44 }
  0x7e   :  { %2056 = vmatprep.subr.bf16.mxu1 %v2195_v45 }
  0x80   :  { %2029 = vmatpush3.bf16.msra.mxu0 %v2196_v46 }
  0x81   :  { %2057 = vmatpush3.bf16.msra.mxu1 %v2197_v47 }
  0x83   :  { %1565 = vmatmul.mubr.bf16.vlgmr.msra.gmra.mxu0 %v1679_v51 }
  0x84   :  { %1614 = vmatmul.mubr.bf16.vlgmr.msra.gmra.mxu1 %v1681_v56  ;;  %1572 = vmatprep.mubr.bf16.mxu0 %v1696_v58 }
  0x85   :  { %1621 = vmatprep.mubr.bf16.mxu1 %v1698_v61 }
  0x8b   :  { %1573 = vmatmul.mubr.bf16.gmra.mxu0 %v1695_v62 }
  0x8c   :  { %1622 = vmatmul.mubr.bf16.gmra.mxu1 %v1697_v63 }
  0xe3   :  { %v1862_v0 = vpop.f32.mrf.mxu0 }
  0xe4   :  { %v1890_v2 = vpop.f32.mrf.mxu1 }
  0xe5   :  { %v1863_v1 = vpop.f32.mrf.mxu0 }
  0xe6   :  { %v1891_v4 = vpop.f32.mrf.mxu1  ;;  %v1864_v39 = vadd.f32 %v1863_v1, %v1862_v0 }
  0xe7   :  { %v1865_v3 = vpop.f32.mrf.mxu0  ;;  %v1892_v45 = vadd.f32 %v1891_v4, %v1890_v2 }
  0xe8   :  { %v1893_v6 = vpop.f32.mrf.mxu1  ;;  %v1273_v44 = vadd.f32 %v1864_v39, %v1666_v40 }
  0xe9   :  { %v1866_v5 = vpop.f32.mrf.mxu0 }
  0xea   :  { %v1894_v8 = vpop.f32.mrf.mxu1  ;;  %v1867_v42 = vadd.f32 %v1866_v5, %v1865_v3  ;;  %v1322_v50 = vadd.f32 %v1892_v45, %v1273_v44 }
  0xeb   :  { %v1868_v7 = vpop.f32.mrf.mxu0  ;;  %v1895_v53 = vadd.f32 %v1894_v8, %v1893_v6 }
  0xec   :  { %v1896_v10 = vpop.f32.mrf.mxu1  ;;  %v1276_v48 = vadd.f32 %v1867_v42, %v1666_v40 }
  0xed   :  { %v1869_v9 = vpop.f32.mrf.mxu0 }
  0xee   :  { %v1897_v12 = vpop.f32.mrf.mxu1  ;;  %v1870_v51 = vadd.f32 %v1869_v9, %v1868_v7  ;;  %v1325_v57 = vadd.f32 %v1895_v53, %v1276_v48 }
  0xef   :  { %v1871_v11 = vpop.f32.mrf.mxu0  ;;  %v1898_v61 = vadd.f32 %v1897_v12, %v1896_v10 }
  0xf0   :  { %v1899_v14 = vpop.f32.mrf.mxu1  ;;  %v1281_v60 = vadd.f32 %v1870_v51, %v1666_v40 }
  0xf1   :  { %v1872_v13 = vpop.f32.mrf.mxu0 }
  0xf2   :  { %v1900_v16 = vpop.f32.mrf.mxu1  ;;  %v1873_v58 = vadd.f32 %v1872_v13, %v1871_v11  ;;  %v1330_v9 = vadd.f32 %v1898_v61, %v1281_v60 }
  0xf3   :  { %v1901_v4 = vadd.f32 %v1900_v16, %v1899_v14 }
  0xf4   :  { %v1284_v3 = vadd.f32 %v1873_v58, %v1666_v40 }
  0xf6   :  { %v1333_v12 = vadd.f32 %v1901_v4, %v1284_v3 }
 0x103   :  { %v1918_v15 = vpop.f32.mrf.mxu0 }
 0x104   :  { %v1946_v18 = vpop.f32.mrf.mxu1 }
 0x105   :  { %v1919_v17 = vpop.f32.mrf.mxu0 }
 0x106   :  { %v1947_v20 = vpop.f32.mrf.mxu1  ;;  %v1920_v47 = vadd.f32 %v1919_v17, %v1918_v15 }
 0x107   :  { %v1921_v19 = vpop.f32.mrf.mxu0  ;;  %v1948_v56 = vadd.f32 %v1947_v20, %v1946_v18 }
 0x108   :  { %v1949_v22 = vpop.f32.mrf.mxu1  ;;  %v1371_v55 = vadd.f32 %v1920_v47, %v1322_v50 }
 0x109   :  { %v1922_v21 = vpop.f32.mrf.mxu0 }
 0x10a   :  { %v1950_v24 = vpop.f32.mrf.mxu1  ;;  %v1923_v54 = vadd.f32 %v1922_v21, %v1921_v19  ;;  %v1420_v1 = vadd.f32 %v1948_v56, %v1371_v55 }
 0x10b   :  { %v1924_v23 = vpop.f32.mrf.mxu0  ;;  %v1951_v5 = vadd.f32 %v1950_v24, %v1949_v22 }
 0x10c   :  { %v1952_v25 = vpop.f32.mrf.mxu1  ;;  %v1374_v0 = vadd.f32 %v1923_v54, %v1325_v57 }
 0x10d   :  { %v1925_v26 = vpop.f32.mrf.mxu0 }
 0x10e   :  { %v1953_v27 = vpop.f32.mrf.mxu1  ;;  %v1926_v2 = vadd.f32 %v1925_v26, %v1924_v23  ;;  %v1423_v18 = vadd.f32 %v1951_v5, %v1374_v0 }
 0x10f   :  { %v1927_v28 = vpop.f32.mrf.mxu0  ;;  %v1954_v20 = vadd.f32 %v1953_v27, %v1952_v25 }
 0x110   :  { %v1955_v29 = vpop.f32.mrf.mxu1  ;;  %v1379_v13 = vadd.f32 %v1926_v2, %v1330_v9 }
 0x111   :  { %v1928_v30 = vpop.f32.mrf.mxu0 }
 0x112   :  { %v1956_v32 = vpop.f32.mrf.mxu1  ;;  %v1929_v19 = vadd.f32 %v1928_v30, %v1927_v28 }
 0x113   :  { %v1957_v22 = vadd.f32 %v1956_v32, %v1955_v29 }
 0x114   :  { %v1382_v16 = vadd.f32 %v1929_v19, %v1333_v12 }
 0x116   :  { %v1431_v47 = vadd.f32 %v1957_v22, %v1382_v16 }
 0x123   :  { %v1974_v31 = vpop.f32.mrf.mxu0 }
 0x124   :  { %v2002_v33 = vpop.f32.mrf.mxu1 }
 0x125   :  { %v1975_v34 = vpop.f32.mrf.mxu0 }
 0x126   :  { %v2003_v35 = vpop.f32.mrf.mxu1  ;;  %v1976_v62 = vadd.f32 %v1975_v34, %v1974_v31 }
 0x127   :  { %v1977_v36 = vpop.f32.mrf.mxu0  ;;  %v2004_v8 = vadd.f32 %v2003_v35, %v2002_v33 }
 0x128   :  { %v2005_v37 = vpop.f32.mrf.mxu1  ;;  %v1469_v6 = vadd.f32 %v1976_v62, %v1420_v1 }
 0x129   :  { %v1978_v38 = vpop.f32.mrf.mxu0 }
 0x12a   :  { %v2006_v41 = vpop.f32.mrf.mxu1  ;;  %v1979_v15 = vadd.f32 %v1978_v38, %v1977_v36  ;;  %v1518_v34 = vadd.f32 %v2004_v8, %v1469_v6  ;;  %v1428_v38 = vadd.f32 %v1954_v20, %v1379_v13 }
 0x12b   :  { %v1980_v43 = vpop.f32.mrf.mxu0  ;;  %v2007_v24 = vadd.f32 %v2006_v41, %v2005_v37 }
 0x12c   :  { %v2008_v46 = vpop.f32.mrf.mxu1  ;;  %v1472_v21 = vadd.f32 %v1979_v15, %v1423_v18 }
 0x12d   :  { %v1981_v49 = vpop.f32.mrf.mxu0 }
 0x12e   :  { %v2009_v52 = vpop.f32.mrf.mxu1  ;;  %v1982_v23 = vadd.f32 %v1981_v49, %v1980_v43  ;;  %v1521_v28 = vadd.f32 %v2007_v24, %v1472_v21 }
 0x12f   :  { %v1983_v59 = vpop.f32.mrf.mxu0  ;;  %v2010_v27 = vadd.f32 %v2009_v52, %v2008_v46 }
 0x130   :  { %v2011_v63 = vpop.f32.mrf.mxu1  ;;  %v1477_v25 = vadd.f32 %v1982_v23, %v1428_v38 }
 0x131   :  { %v1984_v7 = vpop.f32.mrf.mxu0 }
 0x132   :  { %v2012_v17 = vpop.f32.mrf.mxu1  ;;  %v1985_v30 = vadd.f32 %v1984_v7, %v1983_v59  ;;  %v1526_v41 = vadd.f32 %v2010_v27, %v1477_v25 }
 0x133   :  { %v2013_v32 = vadd.f32 %v2012_v17, %v2011_v63 }
 0x134   :  { %v1480_v29 = vadd.f32 %v1985_v30, %v1431_v47 }
 0x136   :  { %v1529_v59 = vadd.f32 %v2013_v32, %v1480_v29 }
 0x143   :  { %v2030_v11 = vpop.f32.mrf.mxu0 }
 0x144   :  { %v2058_v10 = vpop.f32.mrf.mxu1 }
 0x145   :  { %v2031_v31 = vpop.f32.mrf.mxu0 }
 0x146   :  { %v2032_v26 = vadd.f32 %v2031_v31, %v2030_v11  ;;  %v2059_v14 = vpop.f32.mrf.mxu1 }
 0x147   :  { %v2033_v36 = vpop.f32.mrf.mxu0  ;;  %v2060_v35 = vadd.f32 %v2059_v14, %v2058_v10 }
 0x148   :  { %v1567_v33 = vadd.f32 %v2032_v26, %v1518_v34  ;;  %v2061_v39 = vpop.f32.mrf.mxu1 }
 0x149   :  { %v2034_v40 = vpop.f32.mrf.mxu0 }
 0x14a   :  { %v1616_v42 = vadd.f32 %v2060_v35, %v1567_v33  ;;  %v2035_v44 = vadd.f32 %v2034_v40, %v2033_v36  ;;  %v2062_v45 = vpop.f32.mrf.mxu1 }
 0x14b   :  { %v2036_v43 = vpop.f32.mrf.mxu0  ;;  %v2063_v49 = vadd.f32 %v2062_v45, %v2061_v39 }
 0x14c   :  { %v1570_v48 = vadd.f32 %v2035_v44, %v1521_v28  ;;  %v2064_v50 = vpop.f32.mrf.mxu1  ;;  %v1634_v51 = vmul.f32 0.2, %v1616_v42  ;;  %vm1630_vm0 = vcmp.ge.f32.partialorder %v1616_v42, 0.0 }
 0x14d   :  { %v2037_v37 = vpop.f32.mrf.mxu0 }
 0x14e   :  { %v1619_v53 = vadd.f32 %v2063_v49, %v1570_v48  ;;  %v2038_v54 = vadd.f32 %v2037_v37, %v2036_v43  ;;  %v2065_v55 = vpop.f32.mrf.mxu1  ;;  %v1638_v61 = vsel %vm1630_vm0, %v1616_v42, %v1634_v51 }
 0x14f   :  { %v2039_v56 = vpop.f32.mrf.mxu0  ;;  %v2066_v57 = vadd.f32 %v2065_v55, %v2064_v50 }
 0x150   :  { %vm1631_vm1 = vcmp.ge.f32.partialorder %v1619_v53, 0.0  ;;  %v1635_v46 = vmul.f32 0.2, %v1619_v53  ;;  %v1575_v52 = vadd.f32 %v2038_v54, %v1526_v41  ;;  %v2067_v58 = vpop.f32.mrf.mxu1 }
 0x151   :  { %v2040_v60 = vpop.f32.mrf.mxu0 }
 0x152   :  { %v1639_v62 = vsel %vm1631_vm1, %v1619_v53, %v1635_v46  ;;  %v1624_v0 = vadd.f32 %v2066_v57, %v1575_v52  ;;  %v2041_v1 = vadd.f32 %v2040_v60, %v2039_v56  ;;  %v2068_v63 = vpop.f32.mrf.mxu1 }
 0x153   :  { %v1838_v2 = vpack.c.bf16 %v1639_v62, %v1638_v61  ;;  %v2069_v4 = vadd.f32 %v2068_v63, %v2067_v58 }
 0x154   :  { %v1578_v3 = vadd.f32 %v2041_v1, %v1529_v59  ;;  %v1636_v5 = vmul.f32 0.2, %v1624_v0  ;;  %vm1632_vm2 = vcmp.ge.f32.partialorder %v1624_v0, 0.0 }
 0x155   :  { %1839 = vst [vmem:[%s2710_s3] sm:$0xff] %v1838_v2  }
 0x156   :  { %v1627_v15 = vadd.f32 %v2069_v4, %v1578_v3  ;;  %v1640_v9 = vsel %vm1632_vm2, %v1624_v0, %v1636_v5 }
 0x158   :  { %vm1633_vm3 = vcmp.ge.f32.partialorder %v1627_v15, 0.0  ;;  %v1637_v7 = vmul.f32 0.2, %v1627_v15 }
 0x15a   :  { %v1641_v6 = vsel %vm1633_vm3, %v1627_v15, %v1637_v7 }
 0x15b   :  { %v1843_v8 = vpack.c.bf16 %v1641_v6, %v1640_v9 }
 0x15d   :  { %1845 = vst [vmem:[%s2710_s3 + $0x8] sm:$0xff] %v1843_v8  }

// kernel: discriminator_forward.14
= control target key start
LH: loop header
LB: loop body
LE: loop exit
PB: predicated region body
PF: predicated region fallthrough
CT: control target
= control target key end

     0   :  { %s313_s6 = smov 0   ;;  %s315_s7 = smov 0   ;;  %s349_s0 = inlined_call_operand.vmem [shape: bf16[2,4,128], index: 0, kind: input, shape index: {}]   ;;  %s350_s1 = inlined_call_operand.vmem [shape: bf16[2,4,128], index: 1, kind: output, shape index: {}]  }
   0x1   :  { %s317_s8 = smov 0  }
   0x2 LB: > { %s23_s9 = sadd.s32 1, %s297_s7  ;;  %p248_p0 = scmp.ge.s32.totalorder %s301_s8, 1  ;;  %s301_s8 = sphi %s317_s8, %s11_s8   ;;  %s297_s7 = sphi %s315_s7, %s352_s7   ;;  %s293_s6 = sphi %s313_s6, %s351_s6  }
   0x3   : > { %p25_p1 = scmp.ge.s32.totalorder %s23_s9, 2  ;;  %p105_p2 = scmp.lt.s32.totalorder %s301_s8, 3 }
   0x5   : > { %s354_s9 = smov (%p25_p1, %s23_s9), 0  ;;  %p106_p3 = pnand %p248_p0, %p105_p2 }
   0x6   : > { %p129_p4 = scmp.lt.s32.totalorder (!%p106_p3), %s293_s6, 1 }
   0x7   : > { %109 = sbr.rel (%p106_p3) target bundleno = 73 (0x49), region = 24 }
   0xc   : > { %s356_s6 = smov (!%p129_p4, %s293_s6), 1  ;;  %vm145_vm0 = vcmask 1043456  }
   0xd   : > { %s249_s10 = sshll.u32 %s356_s6, 1 }
   0xe   : > { %s135_s13 = scalar_lea.vmem %s349_s0, %s249_s10  ;;  %s142_s16 = scalar_lea.vmem %s350_s1, %s249_s10 }
   0xf   : > { %v143_v0 = vld [vmem:[%s135_s13] sm:$0x3] }
  0x10   : > { %v144_v1 = vunpack.c.l.bf16 %v143_v0 }
  0x12   : > { %v146_v2 = vsel %vm145_vm0, %v144_v1, 0.0 }
  0x13   : > { %v147_v3 = vrot.slane %v146_v2, 4 }
  0x15   : > { %v148_v4 = vadd.f32 %v147_v3, %v146_v2 }
  0x17   : > { %v149_v5 = vrot.slane %v148_v4, 2 }
  0x19   : > { %v150_v6 = vadd.f32 %v149_v5, %v148_v4 }
  0x1b   : > { %v151_v7 = vrot.slane %v150_v6, 1 }
  0x1d   : > { %v152_v8 = vadd.f32 %v151_v7, %v150_v6 }
  0x1f   : > { %v154_v9 = vmul.f32 0.25, %v152_v8 }
  0x21   : > { %v155_v10 = vsub.f32 %v144_v1, %v154_v9 }
  0x23   : > { %v156_v11 = vmul.f32 %v155_v10, %v155_v10 }
  0x25   : > { %v157_v12 = vsel %vm145_vm0, %v156_v11, 0.0 }
  0x26   : > { %v158_v13 = vrot.slane %v157_v12, 4 }
  0x28   : > { %v159_v14 = vadd.f32 %v158_v13, %v157_v12 }
  0x2a   : > { %v160_v15 = vrot.slane %v159_v14, 2 }
  0x2c   : > { %v161_v16 = vadd.f32 %v160_v15, %v159_v14 }
  0x2e   : > { %v162_v17 = vrot.slane %v161_v16, 1 }
  0x30   : > { %v163_v18 = vadd.f32 %v162_v17, %v161_v16 }
  0x32   : > { %v164_v19 = vmul.f32 0.25, %v163_v18 }
  0x34   : > { %v165_v20 = vadd.f32 1e-05, %v164_v19 }
  0x36   : > { %277 = vrsqrt.f32 %v165_v20 }
  0x43   : > { %v278_v21 = vpop.eup %277 }
  0x44   : > { %v167_v22 = vmul.f32 %v278_v21, %v155_v10 }
  0x46   : > { %v168_v23 = vpack.c.bf16 %v167_v22, %v167_v22 }
  0x48   : > { %169 = vst [vmem:[%s142_s16] sm:$0x3] %v168_v23 }
  0x49 PF: > { %s11_s8 = sadd.s32 1, %s301_s8   ;;  %s351_s6 = smov %s297_s7 }
  0x4a   : > { %p8_p5 = scmp.ge.s32.totalorder %s11_s8, 4   ;;  %s352_s7 = smov %s354_s9 }
  0x4c   :  { %10 = sbr.rel (!%p8_p5) target bundleno = 2 (0x2), region = 54 }

// kernel: discriminator_forward.13
= control target key start
LH: loop header
LB: loop body
LE: loop exit
PB: predicated region body
PF: predicated region fallthrough
CT: control target
= control target key end

     0   :  { %s2338_s1 = inlined_call_operand.vmem [shape: bf16[2048,128], index: 1, kind: input, shape index: {}]   ;;  %s2339_s0 = inlined_call_operand.vmem [shape: bf16[8,2048], index: 0, kind: input, shape index: {}]   ;;  %s2340_s2 = inlined_call_operand.vmem [shape: f32[1,128], index: 2, kind: input, shape index: {}]   ;;  %s2341_s3 = inlined_call_operand.vmem [shape: bf16[8,128], index: 3, kind: output, shape index: {}]  }
   0x1   :  { %v1760_v0 = vld [vmem:[%s2338_s1 + $0x78] sm:$0xff]   ;;  %v1764_v4 = vld [vmem:[%s2338_s1 + $0x70] sm:$0xff]   ;;  %v1768_v8 = vld [vmem:[%s2338_s1 + $0x68] sm:$0xff]  }
   0x2   :  { %v1761_v1 = vld [vmem:[%s2338_s1 + $0xf8] sm:$0xff]   ;;  %1584 = vmatprep.subr.bf16.mxu0 %v1760_v0  ;;  %v1765_v5 = vld [vmem:[%s2338_s1 + $0xf0] sm:$0xff]   ;;  %v1769_v9 = vld [vmem:[%s2338_s1 + $0xe8] sm:$0xff]  }
   0x3   :  { %v1762_v2 = vld [vmem:[%s2338_s1 + $0x38] sm:$0xff]   ;;  %1606 = vmatprep.subr.bf16.mxu1 %v1761_v1  ;;  %v1766_v6 = vld [vmem:[%s2338_s1 + $0x30] sm:$0xff]   ;;  %v1770_v10 = vld [vmem:[%s2338_s1 + $0x28] sm:$0xff]  }
   0x4   :  { %v1763_v3 = vld [vmem:[%s2338_s1 + $0xb8] sm:$0xff]   ;;  %1585 = vmatpush3.bf16.msra.mxu0 %v1762_v2  ;;  %v1767_v7 = vld [vmem:[%s2338_s1 + $0xb0] sm:$0xff]   ;;  %v1771_v11 = vld [vmem:[%s2338_s1 + $0xa8] sm:$0xff]  }
   0x5   :  { %1607 = vmatpush3.bf16.msra.mxu1 %v1763_v3  ;;  %1586 = vmatprep.subr.bf16.mxu0 %v1764_v4  ;;  %v1772_v12 = vld [vmem:[%s2338_s1 + $0x60] sm:$0xff]   ;;  %v1776_v16 = vld [vmem:[%s2338_s1 + $0x58] sm:$0xff]   ;;  %v1780_v20 = vld [vmem:[%s2338_s1 + $0x50] sm:$0xff]  }
   0x6   :  { %1608 = vmatprep.subr.bf16.mxu1 %v1765_v5  ;;  %v1773_v13 = vld [vmem:[%s2338_s1 + $0xe0] sm:$0xff]   ;;  %v1777_v17 = vld [vmem:[%s2338_s1 + $0xd8] sm:$0xff]   ;;  %v1781_v21 = vld [vmem:[%s2338_s1 + $0xd0] sm:$0xff]  }
   0x7   :  { %v1774_v14 = vld [vmem:[%s2338_s1 + $0x20] sm:$0xff]   ;;  %v1778_v18 = vld [vmem:[%s2338_s1 + $0x18] sm:$0xff]   ;;  %v1782_v22 = vld [vmem:[%s2338_s1 + $0x10] sm:$0xff]  }
   0x8   :  { %1587 = vmatpush3.bf16.msra.mxu0 %v1766_v6  ;;  %v1775_v15 = vld [vmem:[%s2338_s1 + $0xa0] sm:$0xff]   ;;  %v1779_v19 = vld [vmem:[%s2338_s1 + $0x98] sm:$0xff]   ;;  %v1783_v23 = vld [vmem:[%s2338_s1 + $0x90] sm:$0xff]  }
   0x9   :  { %1609 = vmatpush3.bf16.msra.mxu1 %v1767_v7  ;;  %1588 = vmatprep.subr.bf16.mxu0 %v1768_v8  ;;  %v1784_v24 = vld [vmem:[%s2338_s1 + $0x48] sm:$0xff]   ;;  %v1788_v28 = vld [vmem:[%s2338_s1 + $0x40] sm:$0xff]   ;;  %v1796_v38 = vld [vmem:[%s2338_s1 + $0x178] sm:$0xff]  }
   0xa   :  { %1610 = vmatprep.subr.bf16.mxu1 %v1769_v9  ;;  %v1785_v25 = vld [vmem:[%s2338_s1 + $0xc8] sm:$0xff]   ;;  %v1789_v29 = vld [vmem:[%s2338_s1 + $0xc0] sm:$0xff]   ;;  %v1797_v39 = vld [vmem:[%s2338_s1 + $0x1f8] sm:$0xff]  }
   0xb   :  { %v1786_v26 = vld [vmem:[%s2338_s1 + $0x8] sm:$0xff]   ;;  %v1790_v30 = vld [vmem:[%s2338_s1] sm:$0xff]   ;;  %v1798_v40 = vld [vmem:[%s2338_s1 + $0x138] sm:$0xff]  }
   0xc   :  { %1589 = vmatpush3.bf16.msra.mxu0 %v1770_v10  ;;  %v1787_v27 = vld [vmem:[%s2338_s1 + $0x88] sm:$0xff]   ;;  %v1791_v31 = vld [vmem:[%s2338_s1 + $0x80] sm:$0xff]   ;;  %v1799_v41 = vld [vmem:[%s2338_s1 + $0x1b8] sm:$0xff]  }
   0xd   :  { %1611 = vmatpush3.bf16.msra.mxu1 %v1771_v11  ;;  %1590 = vmatprep.subr.bf16.mxu0 %v1772_v12  ;;  %v15_v32 = vld [vmem:[%s2339_s0] sm:$0xff]  ;;  %v16_v33 = vld [vmem:[%s2339_s0 + $0x8] sm:$0xff]  ;;  %v1800_v42 = vld [vmem:[%s2338_s1 + $0x170] sm:$0xff]  }
   0xe   :  { %1612 = vmatprep.subr.bf16.mxu1 %v1773_v13  ;;  %v1440_v34 = vcombine.low %v15_v32, %v15_v32  ;;  %v1441_v35 = vcombine.high %v15_v32, %v15_v32  ;;  %v1442_v36 = vcombine.low %v16_v33, %v16_v33  ;;  %v1443_v37 = vcombine.high %v16_v33, %v16_v33  ;;  %v1801_v43 = vld [vmem:[%s2338_s1 + $0x1f0] sm:$0xff]   ;;  %v1804_v46 = vld [vmem:[%s2338_s1 + $0x168] sm:$0xff]   ;;  %v1808_v50 = vld [vmem:[%s2338_s1 + $0x160] sm:$0xff]  }
   0xf   :  { %v1802_v44 = vld [vmem:[%s2338_s1 + $0x130] sm:$0xff]   ;;  %v1805_v47 = vld [vmem:[%s2338_s1 + $0x1e8] sm:$0xff]   ;;  %v1809_v51 = vld [vmem:[%s2338_s1 + $0x1e0] sm:$0xff]  }
  0x10   :  { %1591 = vmatpush3.bf16.msra.mxu0 %v1774_v14  ;;  %1142 = vmatprep.mubr.bf16.mxu0 %v1441_v35  ;;  %v1803_v45 = vld [vmem:[%s2338_s1 + $0x1b0] sm:$0xff]   ;;  %v1806_v48 = vld [vmem:[%s2338_s1 + $0x128] sm:$0xff]   ;;  %v1810_v52 = vld [vmem:[%s2338_s1 + $0x120] sm:$0xff]  }
  0x11   :  { %1613 = vmatpush3.bf16.msra.mxu1 %v1775_v15  ;;  %1592 = vmatprep.subr.bf16.mxu0 %v1776_v16  ;;  %v1807_v49 = vld [vmem:[%s2338_s1 + $0x1a8] sm:$0xff]   ;;  %v1811_v53 = vld [vmem:[%s2338_s1 + $0x1a0] sm:$0xff]   ;;  %v1812_v54 = vld [vmem:[%s2338_s1 + $0x158] sm:$0xff]  }
  0x12   :  { %1614 = vmatprep.subr.bf16.mxu1 %v1777_v17  ;;  %1182 = vmatprep.mubr.bf16.mxu1 %v1443_v37  ;;  %v1813_v55 = vld [vmem:[%s2338_s1 + $0x1d8] sm:$0xff]   ;;  %v1816_v58 = vld [vmem:[%s2338_s1 + $0x150] sm:$0xff]   ;;  %v1820_v62 = vld [vmem:[%s2338_s1 + $0x148] sm:$0xff]  }
  0x13   :  { %v1814_v56 = vld [vmem:[%s2338_s1 + $0x118] sm:$0xff]   ;;  %v1817_v59 = vld [vmem:[%s2338_s1 + $0x1d0] sm:$0xff]   ;;  %v1821_v63 = vld [vmem:[%s2338_s1 + $0x1c8] sm:$0xff]  }
  0x14   :  { %1593 = vmatpush3.bf16.msra.mxu0 %v1778_v18  ;;  %v1815_v57 = vld [vmem:[%s2338_s1 + $0x198] sm:$0xff]   ;;  %v1818_v60 = vld [vmem:[%s2338_s1 + $0x110] sm:$0xff]   ;;  %v1822_v0 = vld [vmem:[%s2338_s1 + $0x108] sm:$0xff]  }
  0x15   :  { %1615 = vmatpush3.bf16.msra.mxu1 %v1779_v19  ;;  %1594 = vmatprep.subr.bf16.mxu0 %v1780_v20  ;;  %v1819_v61 = vld [vmem:[%s2338_s1 + $0x190] sm:$0xff]   ;;  %v1823_v1 = vld [vmem:[%s2338_s1 + $0x188] sm:$0xff]   ;;  %v1824_v2 = vld [vmem:[%s2338_s1 + $0x140] sm:$0xff]  }
  0x16   :  { %1616 = vmatprep.subr.bf16.mxu1 %v1781_v21  ;;  %v1825_v3 = vld [vmem:[%s2338_s1 + $0x1c0] sm:$0xff]   ;;  %v17_v6 = vld [vmem:[%s2339_s0 + $0x10] sm:$0xff]  ;;  %v18_v9 = vld [vmem:[%s2339_s0 + $0x18] sm:$0xff] }
  0x17   :  { %v1826_v4 = vld [vmem:[%s2338_s1 + $0x100] sm:$0xff]   ;;  %v1444_v7 = vcombine.low %v17_v6, %v17_v6  ;;  %v1445_v8 = vcombine.high %v17_v6, %v17_v6  ;;  %v1446_v10 = vcombine.low %v18_v9, %v18_v9  ;;  %v1447_v11 = vcombine.high %v18_v9, %v18_v9  ;;  %v1832_v12 = vld [vmem:[%s2338_s1 + $0x278] sm:$0xff]   ;;  %v1836_v16 = vld [vmem:[%s2338_s1 + $0x270] sm:$0xff]  }
  0x18   :  { %1595 = vmatpush3.bf16.msra.mxu0 %v1782_v22  ;;  %v1827_v5 = vld [vmem:[%s2338_s1 + $0x180] sm:$0xff]   ;;  %v1833_v13 = vld [vmem:[%s2338_s1 + $0x2f8] sm:$0xff]   ;;  %v1837_v17 = vld [vmem:[%s2338_s1 + $0x2f0] sm:$0xff]  }
  0x19   :  { %1617 = vmatpush3.bf16.msra.mxu1 %v1783_v23  ;;  %1596 = vmatprep.subr.bf16.mxu0 %v1784_v24  ;;  %v1834_v14 = vld [vmem:[%s2338_s1 + $0x238] sm:$0xff]   ;;  %v1838_v18 = vld [vmem:[%s2338_s1 + $0x230] sm:$0xff]   ;;  %v1840_v20 = vld [vmem:[%s2338_s1 + $0x268] sm:$0xff]  }
  0x1a   :  { %1618 = vmatprep.subr.bf16.mxu1 %v1785_v25  ;;  %v1835_v15 = vld [vmem:[%s2338_s1 + $0x2b8] sm:$0xff]   ;;  %v1839_v19 = vld [vmem:[%s2338_s1 + $0x2b0] sm:$0xff]   ;;  %v1841_v21 = vld [vmem:[%s2338_s1 + $0x2e8] sm:$0xff]  }
  0x1b   :  { %v1842_v22 = vld [vmem:[%s2338_s1 + $0x228] sm:$0xff]   ;;  %v1844_v24 = vld [vmem:[%s2338_s1 + $0x260] sm:$0xff]   ;;  %v1852_v32 = vld [vmem:[%s2338_s1 + $0x250] sm:$0xff]  }
  0x1c   :  { %1597 = vmatpush3.bf16.msra.mxu0 %v1786_v26  ;;  %v1843_v23 = vld [vmem:[%s2338_s1 + $0x2a8] sm:$0xff]   ;;  %v1845_v25 = vld [vmem:[%s2338_s1 + $0x2e0] sm:$0xff]   ;;  %v1853_v33 = vld [vmem:[%s2338_s1 + $0x2d0] sm:$0xff]  }
  0x1d   :  { %1619 = vmatpush3.bf16.msra.mxu1 %v1787_v27  ;;  %1598 = vmatprep.subr.bf16.mxu0 %v1788_v28  ;;  %v1846_v26 = vld [vmem:[%s2338_s1 + $0x220] sm:$0xff]   ;;  %v1848_v28 = vld [vmem:[%s2338_s1 + $0x258] sm:$0xff]   ;;  %v1855_v35 = vld [vmem:[%s2338_s1 + $0x290] sm:$0xff]  }
  0x1e   :  { %1620 = vmatprep.subr.bf16.mxu1 %v1789_v29  ;;  %v1847_v27 = vld [vmem:[%s2338_s1 + $0x2a0] sm:$0xff]   ;;  %v1849_v29 = vld [vmem:[%s2338_s1 + $0x2d8] sm:$0xff]   ;;  %v1857_v37 = vld [vmem:[%s2338_s1 + $0x2c8] sm:$0xff]  }
  0x1f   :  { %v1888_v6 = vld [vmem:[%s2338_s1 + $0x350] sm:$0xff]  }
  0x20   :  { %1599 = vmatpush3.bf16.msra.mxu0 %v1790_v30  ;;  %v1850_v30 = vld [vmem:[%s2338_s1 + $0x218] sm:$0xff]   ;;  %v1891_v9 = vld [vmem:[%s2338_s1 + $0x390] sm:$0xff]  }
  0x21   :  { %1621 = vmatpush3.bf16.msra.mxu1 %v1791_v31  ;;  %1628 = vmatprep.subr.bf16.mxu0 %v1796_v38  ;;  %v1851_v31 = vld [vmem:[%s2338_s1 + $0x298] sm:$0xff]   ;;  %v1858_v38 = vld [vmem:[%s2338_s1 + $0x208] sm:$0xff]  }
  0x22   :  { %1650 = vmatprep.subr.bf16.mxu1 %v1797_v39  ;;  %v1859_v39 = vld [vmem:[%s2338_s1 + $0x288] sm:$0xff]  }
  0x23   :  { %1143 = vmatmul.mubr.bf16.vlgmr.msra.gmra.mxu0 %v1440_v34  ;;  %v1854_v34 = vld [vmem:[%s2338_s1 + $0x210] sm:$0xff]  }
  0x24   :  { %1183 = vmatmul.mubr.bf16.vlgmr.msra.gmra.mxu1 %v1442_v36  ;;  %1629 = vmatpush3.bf16.msra.mxu0 %v1798_v40  ;;  %v1856_v36 = vld [vmem:[%s2338_s1 + $0x248] sm:$0xff]   ;;  %v1860_v40 = vld [vmem:[%s2338_s1 + $0x240] sm:$0xff]  }
  0x25   :  { %1651 = vmatpush3.bf16.msra.mxu1 %v1799_v41  ;;  %1630 = vmatprep.subr.bf16.mxu0 %v1800_v42  ;;  %v1861_v41 = vld [vmem:[%s2338_s1 + $0x2c0] sm:$0xff]  }
  0x26   :  { %1652 = vmatprep.subr.bf16.mxu1 %v1801_v43  ;;  %1222 = vmatprep.mubr.bf16.mxu0 %v1445_v8  ;;  %v1862_v42 = vld [vmem:[%s2338_s1 + $0x200] sm:$0xff]   ;;  %v1890_v8 = vld [vmem:[%s2338_s1 + $0x310] sm:$0xff]  }
  0x27   :  { %1262 = vmatprep.mubr.bf16.mxu1 %v1447_v11  ;;  %v1863_v43 = vld [vmem:[%s2338_s1 + $0x280] sm:$0xff]   ;;  %v1893_v11 = vld [vmem:[%s2338_s1 + $0x3c8] sm:$0xff]  }
  0x28   :  { %1631 = vmatpush3.bf16.msra.mxu0 %v1802_v44  ;;  %v19_v44 = vld [vmem:[%s2339_s0 + $0x20] sm:$0xff] }
  0x29   :  { %1653 = vmatpush3.bf16.msra.mxu1 %v1803_v45  ;;  %1632 = vmatprep.subr.bf16.mxu0 %v1804_v46  ;;  %v20_v45 = vld [vmem:[%s2339_s0 + $0x28] sm:$0xff]  ;;  %v1448_v46 = vcombine.low %v19_v44, %v19_v44 }
  0x2a   :  { %1654 = vmatprep.subr.bf16.mxu1 %v1805_v47  ;;  %v1449_v47 = vcombine.high %v19_v44, %v19_v44 }
  0x2c   :  { %1633 = vmatpush3.bf16.msra.mxu0 %v1806_v48  ;;  %v1450_v48 = vcombine.low %v20_v45, %v20_v45 }
  0x2d   :  { %1655 = vmatpush3.bf16.msra.mxu1 %v1807_v49  ;;  %1634 = vmatprep.subr.bf16.mxu0 %v1808_v50  ;;  %v1451_v49 = vcombine.high %v20_v45, %v20_v45  ;;  %v1868_v50 = vld [vmem:[%s2338_s1 + $0x378] sm:$0xff]  }
  0x2e   :  { %1656 = vmatprep.subr.bf16.mxu1 %v1809_v51  ;;  %v1869_v51 = vld [vmem:[%s2338_s1 + $0x3f8] sm:$0xff]  }
  0x30   :  { %1635 = vmatpush3.bf16.msra.mxu0 %v1810_v52  ;;  %v1870_v52 = vld [vmem:[%s2338_s1 + $0x338] sm:$0xff]  }
  0x31   :  { %1657 = vmatpush3.bf16.msra.mxu1 %v1811_v53  ;;  %1636 = vmatprep.subr.bf16.mxu0 %v1812_v54  ;;  %v1871_v53 = vld [vmem:[%s2338_s1 + $0x3b8] sm:$0xff]   ;;  %v1872_v54 = vld [vmem:[%s2338_s1 + $0x370] sm:$0xff]  }
  0x32   :  { %1658 = vmatprep.subr.bf16.mxu1 %v1813_v55  ;;  %v1873_v55 = vld [vmem:[%s2338_s1 + $0x3f0] sm:$0xff]  }
  0x34   :  { %1637 = vmatpush3.bf16.msra.mxu0 %v1814_v56  ;;  %v1874_v56 = vld [vmem:[%s2338_s1 + $0x330] sm:$0xff]  }
  0x35   :  { %1659 = vmatpush3.bf16.msra.mxu1 %v1815_v57  ;;  %1638 = vmatprep.subr.bf16.mxu0 %v1816_v58  ;;  %v1875_v57 = vld [vmem:[%s2338_s1 + $0x3b0] sm:$0xff]   ;;  %v1876_v58 = vld [vmem:[%s2338_s1 + $0x368] sm:$0xff]  }
  0x36   :  { %1660 = vmatprep.subr.bf16.mxu1 %v1817_v59  ;;  %v1877_v59 = vld [vmem:[%s2338_s1 + $0x3e8] sm:$0xff]  }
  0x38   :  { %1639 = vmatpush3.bf16.msra.mxu0 %v1818_v60  ;;  %v1878_v60 = vld [vmem:[%s2338_s1 + $0x328] sm:$0xff]  }
  0x39   :  { %1661 = vmatpush3.bf16.msra.mxu1 %v1819_v61  ;;  %1640 = vmatprep.subr.bf16.mxu0 %v1820_v62  ;;  %v1879_v61 = vld [vmem:[%s2338_s1 + $0x3a8] sm:$0xff]   ;;  %v1880_v62 = vld [vmem:[%s2338_s1 + $0x360] sm:$0xff]  }
  0x3a   :  { %1662 = vmatprep.subr.bf16.mxu1 %v1821_v63  ;;  %v1881_v63 = vld [vmem:[%s2338_s1 + $0x3e0] sm:$0xff]  }
  0x3c   :  { %1641 = vmatpush3.bf16.msra.mxu0 %v1822_v0  ;;  %v1882_v0 = vld [vmem:[%s2338_s1 + $0x320] sm:$0xff]  }
  0x3d   :  { %1663 = vmatpush3.bf16.msra.mxu1 %v1823_v1  ;;  %1642 = vmatprep.subr.bf16.mxu0 %v1824_v2  ;;  %v1883_v1 = vld [vmem:[%s2338_s1 + $0x3a0] sm:$0xff]   ;;  %v1884_v2 = vld [vmem:[%s2338_s1 + $0x358] sm:$0xff]  }
  0x3e   :  { %1664 = vmatprep.subr.bf16.mxu1 %v1825_v3  ;;  %v1885_v3 = vld [vmem:[%s2338_s1 + $0x3d8] sm:$0xff]  }
  0x40   :  { %1643 = vmatpush3.bf16.msra.mxu0 %v1826_v4  ;;  %v1886_v4 = vld [vmem:[%s2338_s1 + $0x318] sm:$0xff]  }
  0x41   :  { %1665 = vmatpush3.bf16.msra.mxu1 %v1827_v5  ;;  %1672 = vmatprep.subr.bf16.mxu0 %v1832_v12  ;;  %v1887_v5 = vld [vmem:[%s2338_s1 + $0x398] sm:$0xff]   ;;  %v1894_v12 = vld [vmem:[%s2338_s1 + $0x308] sm:$0xff]  }
  0x42   :  { %1694 = vmatprep.subr.bf16.mxu1 %v1833_v13  ;;  %v1895_v13 = vld [vmem:[%s2338_s1 + $0x388] sm:$0xff]  }
  0x43   :  { %1223 = vmatmul.mubr.bf16.vlgmr.msra.gmra.mxu0 %v1444_v7  ;;  %v1889_v7 = vld [vmem:[%s2338_s1 + $0x3d0] sm:$0xff]  }
  0x44   :  { %1263 = vmatmul.mubr.bf16.vlgmr.msra.gmra.mxu1 %v1446_v10  ;;  %1673 = vmatpush3.bf16.msra.mxu0 %v1834_v14  ;;  %v1892_v10 = vld [vmem:[%s2338_s1 + $0x348] sm:$0xff]   ;;  %v1896_v14 = vld [vmem:[%s2338_s1 + $0x340] sm:$0xff]  }
  0x45   :  { %1695 = vmatpush3.bf16.msra.mxu1 %v1835_v15  ;;  %1674 = vmatprep.subr.bf16.mxu0 %v1836_v16  ;;  %v1897_v15 = vld [vmem:[%s2338_s1 + $0x3c0] sm:$0xff]  }
  0x46   :  { %1696 = vmatprep.subr.bf16.mxu1 %v1837_v17  ;;  %1302 = vmatprep.mubr.bf16.mxu0 %v1449_v47  ;;  %v1898_v16 = vld [vmem:[%s2338_s1 + $0x300] sm:$0xff]  }
  0x47   :  { %1342 = vmatprep.mubr.bf16.mxu1 %v1451_v49  ;;  %v1899_v17 = vld [vmem:[%s2338_s1 + $0x380] sm:$0xff]  }
  0x48   :  { %1675 = vmatpush3.bf16.msra.mxu0 %v1838_v18  ;;  %v21_v18 = vld [vmem:[%s2339_s0 + $0x30] sm:$0xff] }
  0x49   :  { %1697 = vmatpush3.bf16.msra.mxu1 %v1839_v19  ;;  %1676 = vmatprep.subr.bf16.mxu0 %v1840_v20  ;;  %v22_v19 = vld [vmem:[%s2339_s0 + $0x38] sm:$0xff]  ;;  %v1452_v20 = vcombine.low %v21_v18, %v21_v18 }
  0x4a   :  { %1698 = vmatprep.subr.bf16.mxu1 %v1841_v21  ;;  %v1453_v21 = vcombine.high %v21_v18, %v21_v18 }
  0x4c   :  { %1677 = vmatpush3.bf16.msra.mxu0 %v1842_v22  ;;  %v1454_v22 = vcombine.low %v22_v19, %v22_v19 }
  0x4d   :  { %1699 = vmatpush3.bf16.msra.mxu1 %v1843_v23  ;;  %1678 = vmatprep.subr.bf16.mxu0 %v1844_v24  ;;  %v1455_v23 = vcombine.high %v22_v19, %v22_v19 }
  0x4e   :  { %1700 = vmatprep.subr.bf16.mxu1 %v1845_v25 }
  0x50   :  { %1679 = vmatpush3.bf16.msra.mxu0 %v1846_v26  ;;  %v1439_v26 = vld [vmem:[%s2340_s2] ss:$0 sm:$0xff] }
  0x51   :  { %1701 = vmatpush3.bf16.msra.mxu1 %v1847_v27  ;;  %1680 = vmatprep.subr.bf16.mxu0 %v1848_v28 }
  0x52   :  { %1702 = vmatprep.subr.bf16.mxu1 %v1849_v29 }
  0x54   :  { %1681 = vmatpush3.bf16.msra.mxu0 %v1850_v30 }
  0x55   :  { %1703 = vmatpush3.bf16.msra.mxu1 %v1851_v31  ;;  %1682 = vmatprep.subr.bf16.mxu0 %v1852_v32 }
  0x56   :  { %1704 = vmatprep.subr.bf16.mxu1 %v1853_v33 }
  0x58   :  { %1683 = vmatpush3.bf16.msra.mxu0 %v1854_v34 }
  0x59   :  { %1705 = vmatpush3.bf16.msra.mxu1 %v1855_v35  ;;  %1684 = vmatprep.subr.bf16.mxu0 %v1856_v36 }
  0x5a   :  { %1706 = vmatprep.subr.bf16.mxu1 %v1857_v37 }
  0x5c   :  { %1685 = vmatpush3.bf16.msra.mxu0 %v1858_v38 }
  0x5d   :  { %1707 = vmatpush3.bf16.msra.mxu1 %v1859_v39  ;;  %1686 = vmatprep.subr.bf16.mxu0 %v1860_v40 }
  0x5e   :  { %1708 = vmatprep.subr.bf16.mxu1 %v1861_v41 }
  0x60   :  { %1687 = vmatpush3.bf16.msra.mxu0 %v1862_v42 }
  0x61   :  { %1709 = vmatpush3.bf16.msra.mxu1 %v1863_v43  ;;  %1716 = vmatprep.subr.bf16.mxu0 %v1868_v50 }
  0x62   :  { %1738 = vmatprep.subr.bf16.mxu1 %v1869_v51 }
  0x63   :  { %1303 = vmatmul.mubr.bf16.vlgmr.msra.gmra.mxu0 %v1448_v46 }
  0x64   :  { %1343 = vmatmul.mubr.bf16.vlgmr.msra.gmra.mxu1 %v1450_v48  ;;  %1717 = vmatpush3.bf16.msra.mxu0 %v1870_v52 }
  0x65   :  { %1739 = vmatpush3.bf16.msra.mxu1 %v1871_v53  ;;  %1718 = vmatprep.subr.bf16.mxu0 %v1872_v54 }
  0x66   :  { %1740 = vmatprep.subr.bf16.mxu1 %v1873_v55  ;;  %1382 = vmatprep.mubr.bf16.mxu0 %v1453_v21 }
  0x67   :  { %1422 = vmatprep.mubr.bf16.mxu1 %v1455_v23 }
  0x68   :  { %1719 = vmatpush3.bf16.msra.mxu0 %v1874_v56 }
  0x69   :  { %1741 = vmatpush3.bf16.msra.mxu1 %v1875_v57  ;;  %1720 = vmatprep.subr.bf16.mxu0 %v1876_v58 }
  0x6a   :  { %1742 = vmatprep.subr.bf16.mxu1 %v1877_v59 }
  0x6c   :  { %1721 = vmatpush3.bf16.msra.mxu0 %v1878_v60 }
  0x6d   :  { %1743 = vmatpush3.bf16.msra.mxu1 %v1879_v61  ;;  %1722 = vmatprep.subr.bf16.mxu0 %v1880_v62 }
  0x6e   :  { %1744 = vmatprep.subr.bf16.mxu1 %v1881_v63 }
  0x70   :  { %1723 = vmatpush3.bf16.msra.mxu0 %v1882_v0 }
  0x71   :  { %1745 = vmatpush3.bf16.msra.mxu1 %v1883_v1  ;;  %1724 = vmatprep.subr.bf16.mxu0 %v1884_v2 }
  0x72   :  { %1746 = vmatprep.subr.bf16.mxu1 %v1885_v3 }
  0x74   :  { %1725 = vmatpush3.bf16.msra.mxu0 %v1886_v4 }
  0x75   :  { %1747 = vmatpush3.bf16.msra.mxu1 %v1887_v5  ;;  %1726 = vmatprep.subr.bf16.mxu0 %v1888_v6 }
  0x76   :  { %1748 = vmatprep.subr.bf16.mxu1 %v1889_v7 }
  0x78   :  { %1727 = vmatpush3.bf16.msra.mxu0 %v1890_v8 }
  0x79   :  { %1749 = vmatpush3.bf16.msra.mxu1 %v1891_v9  ;;  %1728 = vmatprep.subr.bf16.mxu0 %v1892_v10 }
  0x7a   :  { %1750 = vmatprep.subr.bf16.mxu1 %v1893_v11 }
  0x7c   :  { %1729 = vmatpush3.bf16.msra.mxu0 %v1894_v12 }
  0x7d   :  { %1751 = vmatpush3.bf16.msra.mxu1 %v1895_v13  ;;  %1730 = vmatprep.subr.bf16.mxu0 %v1896_v14 }
  0x7e   :  { %1752 = vmatprep.subr.bf16.mxu1 %v1897_v15 }
  0x80   :  { %1731 = vmatpush3.bf16.msra.mxu0 %v1898_v16 }
  0x81   :  { %1753 = vmatpush3.bf16.msra.mxu1 %v1899_v17 }
  0x83   :  { %1383 = vmatmul.mubr.bf16.vlgmr.msra.gmra.mxu0 %v1452_v20 }
  0x84   :  { %1423 = vmatmul.mubr.bf16.vlgmr.msra.gmra.mxu1 %v1454_v22 }
  0xe3   :  { %v1600_v24 = vpop.f32.mrf.mxu0 }
  0xe4   :  { %v1622_v25 = vpop.f32.mrf.mxu1 }
  0xe5   :  { %v1601_v27 = vpop.f32.mrf.mxu0 }
  0xe6   :  { %v1623_v28 = vpop.f32.mrf.mxu1  ;;  %v1602_v29 = vadd.f32 %v1601_v27, %v1600_v24 }
  0xe7   :  { %v1624_v30 = vadd.f32 %v1623_v28, %v1622_v25  ;;  %v1603_v31 = vpop.f32.mrf.mxu0 }
  0xe8   :  { %v1625_v32 = vpop.f32.mrf.mxu1  ;;  %v1145_v33 = vadd.f32 %v1602_v29, %v1439_v26 }
  0xe9   :  { %v1604_v34 = vpop.f32.mrf.mxu0 }
  0xea   :  { %v1626_v35 = vpop.f32.mrf.mxu1  ;;  %v1185_v36 = vadd.f32 %v1624_v30, %v1145_v33 }
 0x103   :  { %v1644_v37 = vpop.f32.mrf.mxu0 }
 0x104   :  { %v1666_v38 = vpop.f32.mrf.mxu1 }
 0x105   :  { %v1645_v39 = vpop.f32.mrf.mxu0 }
 0x106   :  { %v1667_v40 = vpop.f32.mrf.mxu1  ;;  %v1646_v53 = vadd.f32 %v1645_v39, %v1644_v37 }
 0x107   :  { %v1647_v41 = vpop.f32.mrf.mxu0  ;;  %v1668_v55 = vadd.f32 %v1667_v40, %v1666_v38 }
 0x108   :  { %v1669_v42 = vpop.f32.mrf.mxu1  ;;  %v1225_v54 = vadd.f32 %v1646_v53, %v1185_v36 }
 0x109   :  { %v1648_v43 = vpop.f32.mrf.mxu0 }
 0x10a   :  { %v1670_v44 = vpop.f32.mrf.mxu1  ;;  %v1265_v57 = vadd.f32 %v1668_v55, %v1225_v54 }
 0x123   :  { %v1688_v45 = vpop.f32.mrf.mxu0 }
 0x124   :  { %v1710_v46 = vpop.f32.mrf.mxu1 }
 0x125   :  { %v1689_v47 = vpop.f32.mrf.mxu0 }
 0x126   :  { %v1711_v48 = vpop.f32.mrf.mxu1  ;;  %v1690_v56 = vadd.f32 %v1689_v47, %v1688_v45 }
 0x127   :  { %v1691_v49 = vpop.f32.mrf.mxu0  ;;  %v1712_v59 = vadd.f32 %v1711_v48, %v1710_v46 }
 0x128   :  { %v1713_v50 = vpop.f32.mrf.mxu1  ;;  %v1305_v58 = vadd.f32 %v1690_v56, %v1265_v57 }
 0x129   :  { %v1692_v51 = vpop.f32.mrf.mxu0 }
 0x12a   :  { %v1714_v52 = vpop.f32.mrf.mxu1  ;;  %v1345_v63 = vadd.f32 %v1712_v59, %v1305_v58 }
 0x143   :  { %v1732_v60 = vpop.f32.mrf.mxu0 }
 0x144   :  { %v1754_v61 = vpop.f32.mrf.mxu1 }
 0x145   :  { %v1733_v62 = vpop.f32.mrf.mxu0 }
 0x146   :  { %v1734_v0 = vadd.f32 %v1733_v62, %v1732_v60  ;;  %v1755_v1 = vpop.f32.mrf.mxu1 }
 0x147   :  { %v1735_v2 = vpop.f32.mrf.mxu0  ;;  %v1756_v4 = vadd.f32 %v1755_v1, %v1754_v61 }
 0x148   :  { %v1385_v3 = vadd.f32 %v1734_v0, %v1345_v63  ;;  %v1757_v5 = vpop.f32.mrf.mxu1 }
 0x149   :  { %v1736_v6 = vpop.f32.mrf.mxu0 }
 0x14a   :  { %v1425_v7 = vadd.f32 %v1756_v4, %v1385_v3  ;;  %v1758_v8 = vpop.f32.mrf.mxu1 }
 0x14c   :  { %vm1430_vm0 = vcmp.ge.f32.partialorder %v1425_v7, 0.0  ;;  %v1431_v9 = vmul.f32 0.2, %v1425_v7 }
 0x14e   :  { %v1432_v10 = vsel %vm1430_vm0, %v1425_v7, %v1431_v9 }
 0x14f   :  { %v1433_v11 = vpack.c.bf16 %v1432_v10, %v1432_v10 }
 0x151   :  { %1434 = vst [vmem:[%s2341_s3] sm:$0xf] %v1433_v11 }

// kernel: discriminator_forward.15
= control target key start
LH: loop header
LB: loop body
LE: loop exit
PB: predicated region body
PF: predicated region fallthrough
CT: control target
= control target key end

     0   :  { %s2335_s1 = inlined_call_operand.vmem [shape: bf16[2048,128], index: 1, kind: input, shape index: {}]   ;;  %s2336_s0 = inlined_call_operand.vmem [shape: bf16[8,2048], index: 0, kind: input, shape index: {}]   ;;  %s2337_s2 = inlined_call_operand.vmem [shape: f32[1,128], index: 2, kind: input, shape index: {}]   ;;  %s2338_s3 = inlined_call_operand.vmem [shape: bf16[8,128], index: 3, kind: output, shape index: {}]  }
   0x1   :  { %v1757_v0 = vld [vmem:[%s2335_s1 + $0x78] sm:$0xff]   ;;  %v1761_v4 = vld [vmem:[%s2335_s1 + $0x70] sm:$0xff]   ;;  %v1765_v8 = vld [vmem:[%s2335_s1 + $0x68] sm:$0xff]  }
   0x2   :  { %v1758_v1 = vld [vmem:[%s2335_s1 + $0xf8] sm:$0xff]   ;;  %1581 = vmatprep.subr.bf16.mxu0 %v1757_v0  ;;  %v1762_v5 = vld [vmem:[%s2335_s1 + $0xf0] sm:$0xff]   ;;  %v1766_v9 = vld [vmem:[%s2335_s1 + $0xe8] sm:$0xff]  }
   0x3   :  { %v1759_v2 = vld [vmem:[%s2335_s1 + $0x38] sm:$0xff]   ;;  %1603 = vmatprep.subr.bf16.mxu1 %v1758_v1  ;;  %v1763_v6 = vld [vmem:[%s2335_s1 + $0x30] sm:$0xff]   ;;  %v1767_v10 = vld [vmem:[%s2335_s1 + $0x28] sm:$0xff]  }
   0x4   :  { %v1760_v3 = vld [vmem:[%s2335_s1 + $0xb8] sm:$0xff]   ;;  %1582 = vmatpush3.bf16.msra.mxu0 %v1759_v2  ;;  %v1764_v7 = vld [vmem:[%s2335_s1 + $0xb0] sm:$0xff]   ;;  %v1768_v11 = vld [vmem:[%s2335_s1 + $0xa8] sm:$0xff]  }
   0x5   :  { %1604 = vmatpush3.bf16.msra.mxu1 %v1760_v3  ;;  %1583 = vmatprep.subr.bf16.mxu0 %v1761_v4  ;;  %v1769_v12 = vld [vmem:[%s2335_s1 + $0x60] sm:$0xff]   ;;  %v1773_v16 = vld [vmem:[%s2335_s1 + $0x58] sm:$0xff]   ;;  %v1777_v20 = vld [vmem:[%s2335_s1 + $0x50] sm:$0xff]  }
   0x6   :  { %1605 = vmatprep.subr.bf16.mxu1 %v1762_v5  ;;  %v1770_v13 = vld [vmem:[%s2335_s1 + $0xe0] sm:$0xff]   ;;  %v1774_v17 = vld [vmem:[%s2335_s1 + $0xd8] sm:$0xff]   ;;  %v1778_v21 = vld [vmem:[%s2335_s1 + $0xd0] sm:$0xff]  }
   0x7   :  { %v1771_v14 = vld [vmem:[%s2335_s1 + $0x20] sm:$0xff]   ;;  %v1775_v18 = vld [vmem:[%s2335_s1 + $0x18] sm:$0xff]   ;;  %v1779_v22 = vld [vmem:[%s2335_s1 + $0x10] sm:$0xff]  }
   0x8   :  { %1584 = vmatpush3.bf16.msra.mxu0 %v1763_v6  ;;  %v1772_v15 = vld [vmem:[%s2335_s1 + $0xa0] sm:$0xff]   ;;  %v1776_v19 = vld [vmem:[%s2335_s1 + $0x98] sm:$0xff]   ;;  %v1780_v23 = vld [vmem:[%s2335_s1 + $0x90] sm:$0xff]  }
   0x9   :  { %1606 = vmatpush3.bf16.msra.mxu1 %v1764_v7  ;;  %1585 = vmatprep.subr.bf16.mxu0 %v1765_v8  ;;  %v1781_v24 = vld [vmem:[%s2335_s1 + $0x48] sm:$0xff]   ;;  %v1785_v28 = vld [vmem:[%s2335_s1 + $0x40] sm:$0xff]   ;;  %v1793_v38 = vld [vmem:[%s2335_s1 + $0x178] sm:$0xff]  }
   0xa   :  { %1607 = vmatprep.subr.bf16.mxu1 %v1766_v9  ;;  %v1782_v25 = vld [vmem:[%s2335_s1 + $0xc8] sm:$0xff]   ;;  %v1786_v29 = vld [vmem:[%s2335_s1 + $0xc0] sm:$0xff]   ;;  %v1794_v39 = vld [vmem:[%s2335_s1 + $0x1f8] sm:$0xff]  }
   0xb   :  { %v1783_v26 = vld [vmem:[%s2335_s1 + $0x8] sm:$0xff]   ;;  %v1787_v30 = vld [vmem:[%s2335_s1] sm:$0xff]   ;;  %v1795_v40 = vld [vmem:[%s2335_s1 + $0x138] sm:$0xff]  }
   0xc   :  { %1586 = vmatpush3.bf16.msra.mxu0 %v1767_v10  ;;  %v1784_v27 = vld [vmem:[%s2335_s1 + $0x88] sm:$0xff]   ;;  %v1788_v31 = vld [vmem:[%s2335_s1 + $0x80] sm:$0xff]   ;;  %v1796_v41 = vld [vmem:[%s2335_s1 + $0x1b8] sm:$0xff]  }
   0xd   :  { %1608 = vmatpush3.bf16.msra.mxu1 %v1768_v11  ;;  %1587 = vmatprep.subr.bf16.mxu0 %v1769_v12  ;;  %v15_v32 = vld [vmem:[%s2336_s0] sm:$0xff]  ;;  %v16_v33 = vld [vmem:[%s2336_s0 + $0x8] sm:$0xff]  ;;  %v1797_v42 = vld [vmem:[%s2335_s1 + $0x170] sm:$0xff]  }
   0xe   :  { %1609 = vmatprep.subr.bf16.mxu1 %v1770_v13  ;;  %v1437_v34 = vcombine.low %v15_v32, %v15_v32  ;;  %v1438_v35 = vcombine.high %v15_v32, %v15_v32  ;;  %v1439_v36 = vcombine.low %v16_v33, %v16_v33  ;;  %v1440_v37 = vcombine.high %v16_v33, %v16_v33  ;;  %v1798_v43 = vld [vmem:[%s2335_s1 + $0x1f0] sm:$0xff]   ;;  %v1801_v46 = vld [vmem:[%s2335_s1 + $0x168] sm:$0xff]   ;;  %v1805_v50 = vld [vmem:[%s2335_s1 + $0x160] sm:$0xff]  }
   0xf   :  { %v1799_v44 = vld [vmem:[%s2335_s1 + $0x130] sm:$0xff]   ;;  %v1802_v47 = vld [vmem:[%s2335_s1 + $0x1e8] sm:$0xff]   ;;  %v1806_v51 = vld [vmem:[%s2335_s1 + $0x1e0] sm:$0xff]  }
  0x10   :  { %1588 = vmatpush3.bf16.msra.mxu0 %v1771_v14  ;;  %1142 = vmatprep.mubr.bf16.mxu0 %v1438_v35  ;;  %v1800_v45 = vld [vmem:[%s2335_s1 + $0x1b0] sm:$0xff]   ;;  %v1803_v48 = vld [vmem:[%s2335_s1 + $0x128] sm:$0xff]   ;;  %v1807_v52 = vld [vmem:[%s2335_s1 + $0x120] sm:$0xff]  }
  0x11   :  { %1610 = vmatpush3.bf16.msra.mxu1 %v1772_v15  ;;  %1589 = vmatprep.subr.bf16.mxu0 %v1773_v16  ;;  %v1804_v49 = vld [vmem:[%s2335_s1 + $0x1a8] sm:$0xff]   ;;  %v1808_v53 = vld [vmem:[%s2335_s1 + $0x1a0] sm:$0xff]   ;;  %v1809_v54 = vld [vmem:[%s2335_s1 + $0x158] sm:$0xff]  }
  0x12   :  { %1611 = vmatprep.subr.bf16.mxu1 %v1774_v17  ;;  %1182 = vmatprep.mubr.bf16.mxu1 %v1440_v37  ;;  %v1810_v55 = vld [vmem:[%s2335_s1 + $0x1d8] sm:$0xff]   ;;  %v1813_v58 = vld [vmem:[%s2335_s1 + $0x150] sm:$0xff]   ;;  %v1817_v62 = vld [vmem:[%s2335_s1 + $0x148] sm:$0xff]  }
  0x13   :  { %v1811_v56 = vld [vmem:[%s2335_s1 + $0x118] sm:$0xff]   ;;  %v1814_v59 = vld [vmem:[%s2335_s1 + $0x1d0] sm:$0xff]   ;;  %v1818_v63 = vld [vmem:[%s2335_s1 + $0x1c8] sm:$0xff]  }
  0x14   :  { %1590 = vmatpush3.bf16.msra.mxu0 %v1775_v18  ;;  %v1812_v57 = vld [vmem:[%s2335_s1 + $0x198] sm:$0xff]   ;;  %v1815_v60 = vld [vmem:[%s2335_s1 + $0x110] sm:$0xff]   ;;  %v1819_v0 = vld [vmem:[%s2335_s1 + $0x108] sm:$0xff]  }
  0x15   :  { %1612 = vmatpush3.bf16.msra.mxu1 %v1776_v19  ;;  %1591 = vmatprep.subr.bf16.mxu0 %v1777_v20  ;;  %v1816_v61 = vld [vmem:[%s2335_s1 + $0x190] sm:$0xff]   ;;  %v1820_v1 = vld [vmem:[%s2335_s1 + $0x188] sm:$0xff]   ;;  %v1821_v2 = vld [vmem:[%s2335_s1 + $0x140] sm:$0xff]  }
  0x16   :  { %1613 = vmatprep.subr.bf16.mxu1 %v1778_v21  ;;  %v1822_v3 = vld [vmem:[%s2335_s1 + $0x1c0] sm:$0xff]   ;;  %v17_v6 = vld [vmem:[%s2336_s0 + $0x10] sm:$0xff]  ;;  %v18_v9 = vld [vmem:[%s2336_s0 + $0x18] sm:$0xff] }
  0x17   :  { %v1823_v4 = vld [vmem:[%s2335_s1 + $0x100] sm:$0xff]   ;;  %v1441_v7 = vcombine.low %v17_v6, %v17_v6  ;;  %v1442_v8 = vcombine.high %v17_v6, %v17_v6  ;;  %v1443_v10 = vcombine.low %v18_v9, %v18_v9  ;;  %v1444_v11 = vcombine.high %v18_v9, %v18_v9  ;;  %v1829_v12 = vld [vmem:[%s2335_s1 + $0x278] sm:$0xff]   ;;  %v1833_v16 = vld [vmem:[%s2335_s1 + $0x270] sm:$0xff]  }
  0x18   :  { %1592 = vmatpush3.bf16.msra.mxu0 %v1779_v22  ;;  %v1824_v5 = vld [vmem:[%s2335_s1 + $0x180] sm:$0xff]   ;;  %v1830_v13 = vld [vmem:[%s2335_s1 + $0x2f8] sm:$0xff]   ;;  %v1834_v17 = vld [vmem:[%s2335_s1 + $0x2f0] sm:$0xff]  }
  0x19   :  { %1614 = vmatpush3.bf16.msra.mxu1 %v1780_v23  ;;  %1593 = vmatprep.subr.bf16.mxu0 %v1781_v24  ;;  %v1831_v14 = vld [vmem:[%s2335_s1 + $0x238] sm:$0xff]   ;;  %v1835_v18 = vld [vmem:[%s2335_s1 + $0x230] sm:$0xff]   ;;  %v1837_v20 = vld [vmem:[%s2335_s1 + $0x268] sm:$0xff]  }
  0x1a   :  { %1615 = vmatprep.subr.bf16.mxu1 %v1782_v25  ;;  %v1832_v15 = vld [vmem:[%s2335_s1 + $0x2b8] sm:$0xff]   ;;  %v1836_v19 = vld [vmem:[%s2335_s1 + $0x2b0] sm:$0xff]   ;;  %v1838_v21 = vld [vmem:[%s2335_s1 + $0x2e8] sm:$0xff]  }
  0x1b   :  { %v1839_v22 = vld [vmem:[%s2335_s1 + $0x228] sm:$0xff]   ;;  %v1841_v24 = vld [vmem:[%s2335_s1 + $0x260] sm:$0xff]   ;;  %v1849_v32 = vld [vmem:[%s2335_s1 + $0x250] sm:$0xff]  }
  0x1c   :  { %1594 = vmatpush3.bf16.msra.mxu0 %v1783_v26  ;;  %v1840_v23 = vld [vmem:[%s2335_s1 + $0x2a8] sm:$0xff]   ;;  %v1842_v25 = vld [vmem:[%s2335_s1 + $0x2e0] sm:$0xff]   ;;  %v1850_v33 = vld [vmem:[%s2335_s1 + $0x2d0] sm:$0xff]  }
  0x1d   :  { %1616 = vmatpush3.bf16.msra.mxu1 %v1784_v27  ;;  %1595 = vmatprep.subr.bf16.mxu0 %v1785_v28  ;;  %v1843_v26 = vld [vmem:[%s2335_s1 + $0x220] sm:$0xff]   ;;  %v1845_v28 = vld [vmem:[%s2335_s1 + $0x258] sm:$0xff]   ;;  %v1852_v35 = vld [vmem:[%s2335_s1 + $0x290] sm:$0xff]  }
  0x1e   :  { %1617 = vmatprep.subr.bf16.mxu1 %v1786_v29  ;;  %v1844_v27 = vld [vmem:[%s2335_s1 + $0x2a0] sm:$0xff]   ;;  %v1846_v29 = vld [vmem:[%s2335_s1 + $0x2d8] sm:$0xff]   ;;  %v1854_v37 = vld [vmem:[%s2335_s1 + $0x2c8] sm:$0xff]  }
  0x1f   :  { %v1885_v6 = vld [vmem:[%s2335_s1 + $0x350] sm:$0xff]  }
  0x20   :  { %1596 = vmatpush3.bf16.msra.mxu0 %v1787_v30  ;;  %v1847_v30 = vld [vmem:[%s2335_s1 + $0x218] sm:$0xff]   ;;  %v1888_v9 = vld [vmem:[%s2335_s1 + $0x390] sm:$0xff]  }
  0x21   :  { %1618 = vmatpush3.bf16.msra.mxu1 %v1788_v31  ;;  %1625 = vmatprep.subr.bf16.mxu0 %v1793_v38  ;;  %v1848_v31 = vld [vmem:[%s2335_s1 + $0x298] sm:$0xff]   ;;  %v1855_v38 = vld [vmem:[%s2335_s1 + $0x208] sm:$0xff]  }
  0x22   :  { %1647 = vmatprep.subr.bf16.mxu1 %v1794_v39  ;;  %v1856_v39 = vld [vmem:[%s2335_s1 + $0x288] sm:$0xff]  }
  0x23   :  { %1143 = vmatmul.mubr.bf16.vlgmr.msra.gmra.mxu0 %v1437_v34  ;;  %v1851_v34 = vld [vmem:[%s2335_s1 + $0x210] sm:$0xff]  }
  0x24   :  { %1183 = vmatmul.mubr.bf16.vlgmr.msra.gmra.mxu1 %v1439_v36  ;;  %1626 = vmatpush3.bf16.msra.mxu0 %v1795_v40  ;;  %v1853_v36 = vld [vmem:[%s2335_s1 + $0x248] sm:$0xff]   ;;  %v1857_v40 = vld [vmem:[%s2335_s1 + $0x240] sm:$0xff]  }
  0x25   :  { %1648 = vmatpush3.bf16.msra.mxu1 %v1796_v41  ;;  %1627 = vmatprep.subr.bf16.mxu0 %v1797_v42  ;;  %v1858_v41 = vld [vmem:[%s2335_s1 + $0x2c0] sm:$0xff]  }
  0x26   :  { %1649 = vmatprep.subr.bf16.mxu1 %v1798_v43  ;;  %1222 = vmatprep.mubr.bf16.mxu0 %v1442_v8  ;;  %v1859_v42 = vld [vmem:[%s2335_s1 + $0x200] sm:$0xff]   ;;  %v1887_v8 = vld [vmem:[%s2335_s1 + $0x310] sm:$0xff]  }
  0x27   :  { %1262 = vmatprep.mubr.bf16.mxu1 %v1444_v11  ;;  %v1860_v43 = vld [vmem:[%s2335_s1 + $0x280] sm:$0xff]   ;;  %v1890_v11 = vld [vmem:[%s2335_s1 + $0x3c8] sm:$0xff]  }
  0x28   :  { %1628 = vmatpush3.bf16.msra.mxu0 %v1799_v44  ;;  %v19_v44 = vld [vmem:[%s2336_s0 + $0x20] sm:$0xff] }
  0x29   :  { %1650 = vmatpush3.bf16.msra.mxu1 %v1800_v45  ;;  %1629 = vmatprep.subr.bf16.mxu0 %v1801_v46  ;;  %v20_v45 = vld [vmem:[%s2336_s0 + $0x28] sm:$0xff]  ;;  %v1445_v46 = vcombine.low %v19_v44, %v19_v44 }
  0x2a   :  { %1651 = vmatprep.subr.bf16.mxu1 %v1802_v47  ;;  %v1446_v47 = vcombine.high %v19_v44, %v19_v44 }
  0x2c   :  { %1630 = vmatpush3.bf16.msra.mxu0 %v1803_v48  ;;  %v1447_v48 = vcombine.low %v20_v45, %v20_v45 }
  0x2d   :  { %1652 = vmatpush3.bf16.msra.mxu1 %v1804_v49  ;;  %1631 = vmatprep.subr.bf16.mxu0 %v1805_v50  ;;  %v1448_v49 = vcombine.high %v20_v45, %v20_v45  ;;  %v1865_v50 = vld [vmem:[%s2335_s1 + $0x378] sm:$0xff]  }
  0x2e   :  { %1653 = vmatprep.subr.bf16.mxu1 %v1806_v51  ;;  %v1866_v51 = vld [vmem:[%s2335_s1 + $0x3f8] sm:$0xff]  }
  0x30   :  { %1632 = vmatpush3.bf16.msra.mxu0 %v1807_v52  ;;  %v1867_v52 = vld [vmem:[%s2335_s1 + $0x338] sm:$0xff]  }
  0x31   :  { %1654 = vmatpush3.bf16.msra.mxu1 %v1808_v53  ;;  %1633 = vmatprep.subr.bf16.mxu0 %v1809_v54  ;;  %v1868_v53 = vld [vmem:[%s2335_s1 + $0x3b8] sm:$0xff]   ;;  %v1869_v54 = vld [vmem:[%s2335_s1 + $0x370] sm:$0xff]  }
  0x32   :  { %1655 = vmatprep.subr.bf16.mxu1 %v1810_v55  ;;  %v1870_v55 = vld [vmem:[%s2335_s1 + $0x3f0] sm:$0xff]  }
  0x34   :  { %1634 = vmatpush3.bf16.msra.mxu0 %v1811_v56  ;;  %v1871_v56 = vld [vmem:[%s2335_s1 + $0x330] sm:$0xff]  }
  0x35   :  { %1656 = vmatpush3.bf16.msra.mxu1 %v1812_v57  ;;  %1635 = vmatprep.subr.bf16.mxu0 %v1813_v58  ;;  %v1872_v57 = vld [vmem:[%s2335_s1 + $0x3b0] sm:$0xff]   ;;  %v1873_v58 = vld [vmem:[%s2335_s1 + $0x368] sm:$0xff]  }
  0x36   :  { %1657 = vmatprep.subr.bf16.mxu1 %v1814_v59  ;;  %v1874_v59 = vld [vmem:[%s2335_s1 + $0x3e8] sm:$0xff]  }
  0x38   :  { %1636 = vmatpush3.bf16.msra.mxu0 %v1815_v60  ;;  %v1875_v60 = vld [vmem:[%s2335_s1 + $0x328] sm:$0xff]  }
  0x39   :  { %1658 = vmatpush3.bf16.msra.mxu1 %v1816_v61  ;;  %1637 = vmatprep.subr.bf16.mxu0 %v1817_v62  ;;  %v1876_v61 = vld [vmem:[%s2335_s1 + $0x3a8] sm:$0xff]   ;;  %v1877_v62 = vld [vmem:[%s2335_s1 + $0x360] sm:$0xff]  }
  0x3a   :  { %1659 = vmatprep.subr.bf16.mxu1 %v1818_v63  ;;  %v1878_v63 = vld [vmem:[%s2335_s1 + $0x3e0] sm:$0xff]  }
  0x3c   :  { %1638 = vmatpush3.bf16.msra.mxu0 %v1819_v0  ;;  %v1879_v0 = vld [vmem:[%s2335_s1 + $0x320] sm:$0xff]  }
  0x3d   :  { %1660 = vmatpush3.bf16.msra.mxu1 %v1820_v1  ;;  %1639 = vmatprep.subr.bf16.mxu0 %v1821_v2  ;;  %v1880_v1 = vld [vmem:[%s2335_s1 + $0x3a0] sm:$0xff]   ;;  %v1881_v2 = vld [vmem:[%s2335_s1 + $0x358] sm:$0xff]  }
  0x3e   :  { %1661 = vmatprep.subr.bf16.mxu1 %v1822_v3  ;;  %v1882_v3 = vld [vmem:[%s2335_s1 + $0x3d8] sm:$0xff]  }
  0x40   :  { %1640 = vmatpush3.bf16.msra.mxu0 %v1823_v4  ;;  %v1883_v4 = vld [vmem:[%s2335_s1 + $0x318] sm:$0xff]  }
  0x41   :  { %1662 = vmatpush3.bf16.msra.mxu1 %v1824_v5  ;;  %1669 = vmatprep.subr.bf16.mxu0 %v1829_v12  ;;  %v1884_v5 = vld [vmem:[%s2335_s1 + $0x398] sm:$0xff]   ;;  %v1891_v12 = vld [vmem:[%s2335_s1 + $0x308] sm:$0xff]  }
  0x42   :  { %1691 = vmatprep.subr.bf16.mxu1 %v1830_v13  ;;  %v1892_v13 = vld [vmem:[%s2335_s1 + $0x388] sm:$0xff]  }
  0x43   :  { %1223 = vmatmul.mubr.bf16.vlgmr.msra.gmra.mxu0 %v1441_v7  ;;  %v1886_v7 = vld [vmem:[%s2335_s1 + $0x3d0] sm:$0xff]  }
  0x44   :  { %1263 = vmatmul.mubr.bf16.vlgmr.msra.gmra.mxu1 %v1443_v10  ;;  %1670 = vmatpush3.bf16.msra.mxu0 %v1831_v14  ;;  %v1889_v10 = vld [vmem:[%s2335_s1 + $0x348] sm:$0xff]   ;;  %v1893_v14 = vld [vmem:[%s2335_s1 + $0x340] sm:$0xff]  }
  0x45   :  { %1692 = vmatpush3.bf16.msra.mxu1 %v1832_v15  ;;  %1671 = vmatprep.subr.bf16.mxu0 %v1833_v16  ;;  %v1894_v15 = vld [vmem:[%s2335_s1 + $0x3c0] sm:$0xff]  }
  0x46   :  { %1693 = vmatprep.subr.bf16.mxu1 %v1834_v17  ;;  %1302 = vmatprep.mubr.bf16.mxu0 %v1446_v47  ;;  %v1895_v16 = vld [vmem:[%s2335_s1 + $0x300] sm:$0xff]  }
  0x47   :  { %1342 = vmatprep.mubr.bf16.mxu1 %v1448_v49  ;;  %v1896_v17 = vld [vmem:[%s2335_s1 + $0x380] sm:$0xff]  }
  0x48   :  { %1672 = vmatpush3.bf16.msra.mxu0 %v1835_v18  ;;  %v21_v18 = vld [vmem:[%s2336_s0 + $0x30] sm:$0xff] }
  0x49   :  { %1694 = vmatpush3.bf16.msra.mxu1 %v1836_v19  ;;  %1673 = vmatprep.subr.bf16.mxu0 %v1837_v20  ;;  %v22_v19 = vld [vmem:[%s2336_s0 + $0x38] sm:$0xff]  ;;  %v1449_v20 = vcombine.low %v21_v18, %v21_v18 }
  0x4a   :  { %1695 = vmatprep.subr.bf16.mxu1 %v1838_v21  ;;  %v1450_v21 = vcombine.high %v21_v18, %v21_v18 }
  0x4c   :  { %1674 = vmatpush3.bf16.msra.mxu0 %v1839_v22  ;;  %v1451_v22 = vcombine.low %v22_v19, %v22_v19 }
  0x4d   :  { %1696 = vmatpush3.bf16.msra.mxu1 %v1840_v23  ;;  %1675 = vmatprep.subr.bf16.mxu0 %v1841_v24  ;;  %v1452_v23 = vcombine.high %v22_v19, %v22_v19 }
  0x4e   :  { %1697 = vmatprep.subr.bf16.mxu1 %v1842_v25 }
  0x50   :  { %1676 = vmatpush3.bf16.msra.mxu0 %v1843_v26  ;;  %v1436_v26 = vld [vmem:[%s2337_s2] ss:$0 sm:$0xff] }
  0x51   :  { %1698 = vmatpush3.bf16.msra.mxu1 %v1844_v27  ;;  %1677 = vmatprep.subr.bf16.mxu0 %v1845_v28 }
  0x52   :  { %1699 = vmatprep.subr.bf16.mxu1 %v1846_v29 }
  0x54   :  { %1678 = vmatpush3.bf16.msra.mxu0 %v1847_v30 }
  0x55   :  { %1700 = vmatpush3.bf16.msra.mxu1 %v1848_v31  ;;  %1679 = vmatprep.subr.bf16.mxu0 %v1849_v32 }
  0x56   :  { %1701 = vmatprep.subr.bf16.mxu1 %v1850_v33 }
  0x58   :  { %1680 = vmatpush3.bf16.msra.mxu0 %v1851_v34 }
  0x59   :  { %1702 = vmatpush3.bf16.msra.mxu1 %v1852_v35  ;;  %1681 = vmatprep.subr.bf16.mxu0 %v1853_v36 }
  0x5a   :  { %1703 = vmatprep.subr.bf16.mxu1 %v1854_v37 }
  0x5c   :  { %1682 = vmatpush3.bf16.msra.mxu0 %v1855_v38 }
  0x5d   :  { %1704 = vmatpush3.bf16.msra.mxu1 %v1856_v39  ;;  %1683 = vmatprep.subr.bf16.mxu0 %v1857_v40 }
  0x5e   :  { %1705 = vmatprep.subr.bf16.mxu1 %v1858_v41 }
  0x60   :  { %1684 = vmatpush3.bf16.msra.mxu0 %v1859_v42 }
  0x61   :  { %1706 = vmatpush3.bf16.msra.mxu1 %v1860_v43  ;;  %1713 = vmatprep.subr.bf16.mxu0 %v1865_v50 }
  0x62   :  { %1735 = vmatprep.subr.bf16.mxu1 %v1866_v51 }
  0x63   :  { %1303 = vmatmul.mubr.bf16.vlgmr.msra.gmra.mxu0 %v1445_v46 }
  0x64   :  { %1343 = vmatmul.mubr.bf16.vlgmr.msra.gmra.mxu1 %v1447_v48  ;;  %1714 = vmatpush3.bf16.msra.mxu0 %v1867_v52 }
  0x65   :  { %1736 = vmatpush3.bf16.msra.mxu1 %v1868_v53  ;;  %1715 = vmatprep.subr.bf16.mxu0 %v1869_v54 }
  0x66   :  { %1737 = vmatprep.subr.bf16.mxu1 %v1870_v55  ;;  %1382 = vmatprep.mubr.bf16.mxu0 %v1450_v21 }
  0x67   :  { %1422 = vmatprep.mubr.bf16.mxu1 %v1452_v23 }
  0x68   :  { %1716 = vmatpush3.bf16.msra.mxu0 %v1871_v56 }
  0x69   :  { %1738 = vmatpush3.bf16.msra.mxu1 %v1872_v57  ;;  %1717 = vmatprep.subr.bf16.mxu0 %v1873_v58 }
  0x6a   :  { %1739 = vmatprep.subr.bf16.mxu1 %v1874_v59 }
  0x6c   :  { %1718 = vmatpush3.bf16.msra.mxu0 %v1875_v60 }
  0x6d   :  { %1740 = vmatpush3.bf16.msra.mxu1 %v1876_v61  ;;  %1719 = vmatprep.subr.bf16.mxu0 %v1877_v62 }
  0x6e   :  { %1741 = vmatprep.subr.bf16.mxu1 %v1878_v63 }
  0x70   :  { %1720 = vmatpush3.bf16.msra.mxu0 %v1879_v0 }
  0x71   :  { %1742 = vmatpush3.bf16.msra.mxu1 %v1880_v1  ;;  %1721 = vmatprep.subr.bf16.mxu0 %v1881_v2 }
  0x72   :  { %1743 = vmatprep.subr.bf16.mxu1 %v1882_v3 }
  0x74   :  { %1722 = vmatpush3.bf16.msra.mxu0 %v1883_v4 }
  0x75   :  { %1744 = vmatpush3.bf16.msra.mxu1 %v1884_v5  ;;  %1723 = vmatprep.subr.bf16.mxu0 %v1885_v6 }
  0x76   :  { %1745 = vmatprep.subr.bf16.mxu1 %v1886_v7 }
  0x78   :  { %1724 = vmatpush3.bf16.msra.mxu0 %v1887_v8 }
  0x79   :  { %1746 = vmatpush3.bf16.msra.mxu1 %v1888_v9  ;;  %1725 = vmatprep.subr.bf16.mxu0 %v1889_v10 }
  0x7a   :  { %1747 = vmatprep.subr.bf16.mxu1 %v1890_v11 }
  0x7c   :  { %1726 = vmatpush3.bf16.msra.mxu0 %v1891_v12 }
  0x7d   :  { %1748 = vmatpush3.bf16.msra.mxu1 %v1892_v13  ;;  %1727 = vmatprep.subr.bf16.mxu0 %v1893_v14 }
  0x7e   :  { %1749 = vmatprep.subr.bf16.mxu1 %v1894_v15 }
  0x80   :  { %1728 = vmatpush3.bf16.msra.mxu0 %v1895_v16 }
  0x81   :  { %1750 = vmatpush3.bf16.msra.mxu1 %v1896_v17 }
  0x83   :  { %1383 = vmatmul.mubr.bf16.vlgmr.msra.gmra.mxu0 %v1449_v20 }
  0x84   :  { %1423 = vmatmul.mubr.bf16.vlgmr.msra.gmra.mxu1 %v1451_v22 }
  0xe3   :  { %v1597_v24 = vpop.f32.mrf.mxu0 }
  0xe4   :  { %v1619_v25 = vpop.f32.mrf.mxu1 }
  0xe5   :  { %v1598_v27 = vpop.f32.mrf.mxu0 }
  0xe6   :  { %v1620_v28 = vpop.f32.mrf.mxu1  ;;  %v1599_v29 = vadd.f32 %v1598_v27, %v1597_v24 }
  0xe7   :  { %v1621_v30 = vadd.f32 %v1620_v28, %v1619_v25  ;;  %v1600_v31 = vpop.f32.mrf.mxu0 }
  0xe8   :  { %v1622_v32 = vpop.f32.mrf.mxu1  ;;  %v1145_v33 = vadd.f32 %v1599_v29, %v1436_v26 }
  0xe9   :  { %v1601_v34 = vpop.f32.mrf.mxu0 }
  0xea   :  { %v1623_v35 = vpop.f32.mrf.mxu1  ;;  %v1185_v36 = vadd.f32 %v1621_v30, %v1145_v33 }
 0x103   :  { %v1641_v37 = vpop.f32.mrf.mxu0 }
 0x104   :  { %v1663_v38 = vpop.f32.mrf.mxu1 }
 0x105   :  { %v1642_v39 = vpop.f32.mrf.mxu0 }
 0x106   :  { %v1664_v40 = vpop.f32.mrf.mxu1  ;;  %v1643_v53 = vadd.f32 %v1642_v39, %v1641_v37 }
 0x107   :  { %v1644_v41 = vpop.f32.mrf.mxu0  ;;  %v1665_v55 = vadd.f32 %v1664_v40, %v1663_v38 }
 0x108   :  { %v1666_v42 = vpop.f32.mrf.mxu1  ;;  %v1225_v54 = vadd.f32 %v1643_v53, %v1185_v36 }
 0x109   :  { %v1645_v43 = vpop.f32.mrf.mxu0 }
 0x10a   :  { %v1667_v44 = vpop.f32.mrf.mxu1  ;;  %v1265_v57 = vadd.f32 %v1665_v55, %v1225_v54 }
 0x123   :  { %v1685_v45 = vpop.f32.mrf.mxu0 }
 0x124   :  { %v1707_v46 = vpop.f32.mrf.mxu1 }
 0x125   :  { %v1686_v47 = vpop.f32.mrf.mxu0 }
 0x126   :  { %v1708_v48 = vpop.f32.mrf.mxu1  ;;  %v1687_v56 = vadd.f32 %v1686_v47, %v1685_v45 }
 0x127   :  { %v1688_v49 = vpop.f32.mrf.mxu0  ;;  %v1709_v59 = vadd.f32 %v1708_v48, %v1707_v46 }
 0x128   :  { %v1710_v50 = vpop.f32.mrf.mxu1  ;;  %v1305_v58 = vadd.f32 %v1687_v56, %v1265_v57 }
 0x129   :  { %v1689_v51 = vpop.f32.mrf.mxu0 }
 0x12a   :  { %v1711_v52 = vpop.f32.mrf.mxu1  ;;  %v1345_v63 = vadd.f32 %v1709_v59, %v1305_v58 }
 0x143   :  { %v1729_v60 = vpop.f32.mrf.mxu0 }
 0x144   :  { %v1751_v61 = vpop.f32.mrf.mxu1 }
 0x145   :  { %v1730_v62 = vpop.f32.mrf.mxu0 }
 0x146   :  { %v1731_v0 = vadd.f32 %v1730_v62, %v1729_v60  ;;  %v1752_v1 = vpop.f32.mrf.mxu1 }
 0x147   :  { %v1732_v2 = vpop.f32.mrf.mxu0  ;;  %v1753_v4 = vadd.f32 %v1752_v1, %v1751_v61 }
 0x148   :  { %v1385_v3 = vadd.f32 %v1731_v0, %v1345_v63  ;;  %v1754_v5 = vpop.f32.mrf.mxu1 }
 0x149   :  { %v1733_v6 = vpop.f32.mrf.mxu0 }
 0x14a   :  { %v1425_v7 = vadd.f32 %v1753_v4, %v1385_v3  ;;  %v1755_v8 = vpop.f32.mrf.mxu1 }
 0x14c   :  { %v1430_v9 = vpack.c.bf16 %v1425_v7, %v1425_v7 }
 0x14e   :  { %1431 = vst [vmem:[%s2338_s3] sm:$0xf] %v1430_v9 }

</bundles_post_ra>
